<compile_context>
chip_gen: v7x
topology: tpu7x:2x2x1
jax: 0.10.0
libtpu: 0.0.40
codegen_flags: <defaults>
</compile_context>

<pallas_src>
import jax
import jax.numpy as jnp
import numpy as np
from jax import lax
from jax.experimental import pallas as pl
from jax.experimental.pallas import tpu as pltpu

_EPS = 1e-5


# ----------------------------------------------------------------------------
# Parameter construction (deterministic, mirrors the PyTorch module's shapes)
# ----------------------------------------------------------------------------
def _bn_init(key, n):
    k1, k2, k3, k4 = jax.random.split(key, 4)
    return dict(
        gamma=1.0 + 0.1 * jax.random.normal(k1, (n,), jnp.float32),
        beta=0.1 * jax.random.normal(k2, (n,), jnp.float32),
        mean=0.1 * jax.random.normal(k3, (n,), jnp.float32),
        var=0.5 + jax.random.uniform(k4, (n,), jnp.float32),
    )


def init_params(in_planes, out_planes, groups, kernel_size, key):
    gp = out_planes // groups
    keys = jax.random.split(key, 5)
    return dict(
        # qkv_transform: Conv1d(in_planes, 2*out_planes, k=1, bias=False)
        w_conv=jax.random.normal(keys[0], (2 * out_planes, in_planes), jnp.float32)
        * np.sqrt(1.0 / in_planes),
        # relative position embedding table
        relative=jax.random.normal(keys[1], (2 * gp, 2 * kernel_size - 1), jnp.float32)
        * np.sqrt(1.0 / gp),
        bn_qkv=_bn_init(keys[2], 2 * out_planes),
        bn_sim=_bn_init(keys[3], 3 * groups),
        bn_out=_bn_init(keys[4], 2 * out_planes),
        f_qr=0.1,
        f_kr=0.1,
        f_sve=0.1,
        f_sv=1.0,
    )


def _bn_affine(bn):
    scale = bn["gamma"] / jnp.sqrt(bn["var"] + _EPS)
    shift = bn["beta"] - bn["mean"] * scale
    return scale, shift


# ----------------------------------------------------------------------------
# Pallas forward
# ----------------------------------------------------------------------------
def axial_attention_forward(x, params, *, groups, out_planes, kernel_size,
                            width=False, block_rows=128):
    N, C, H, W = x.shape
    G, OP, KS = groups, out_planes, kernel_size
    GP = OP // G          # group_planes
    GPH = GP // 2         # q / k channels per group
    f32 = jnp.float32

    # -------------------- host-side folding of BN / gates --------------------
    s_qkv, sh_qkv = _bn_affine(params["bn_qkv"])
    w_bn = params["w_conv"] * s_qkv[:, None]          # (2*OP, C)
    b_bn = sh_qkv                                     # (2*OP,)

    s_out, sh_out = _bn_affine(params["bn_out"])
    sv_scale = s_out[0::2] * params["f_sv"]           # (OP,)  scales sv
    sve_scale = s_out[1::2] * params["f_sve"]         # (OP,)  scales sve
    o_shift = sh_out[0::2] + sh_out[1::2]             # (OP,)

    # fold sv_scale into the v rows of the projection (v only feeds sv)
    v_rows = (jnp.arange(G)[:, None] * 2 * GP + GP
              + jnp.arange(GP)[None, :]).reshape(-1)
    row_scale = jnp.ones((2 * OP,), f32).at[v_rows].set(sv_scale)
    w_fold = w_bn * row_scale[:, None]
    b_fold = b_bn * row_scale

    # block-diagonal expansion over the axial position: the whole projection
    # becomes a single (2*OP*KS, C*KS) @ (C*KS, TB) MXU matmul whose rows are
    # already ordered as (channel, position) planes.
    eye = jnp.eye(KS, dtype=f32)
    w_exp = jnp.einsum("oc,ij->oicj", w_fold, eye).reshape(2 * OP * KS, C * KS)
    b_exp = jnp.repeat(b_fold, KS)[:, None]           # (2*OP*KS, 1)

    # relative-position embeddings, re-indexed to (j, i) order and pre-scaled
    rel_idx = (jnp.arange(KS)[:, None] - jnp.arange(KS)[None, :]) + KS - 1
    all_emb = params["relative"][:, rel_idx]          # (2*GP, KS, KS) [c, i, j]
    q_emb, k_emb, v_emb = all_emb[:GPH], all_emb[GPH:GP], all_emb[GP:]

    s_sim, sh_sim = _bn_affine(params["bn_sim"])
    s_qk = s_sim[:G]
    s_qr = s_sim[G:2 * G] * params["f_qr"]
    s_kr = s_sim[2 * G:] * params["f_kr"]
    sim_shift = sh_sim[:G] + sh_sim[G:2 * G] + sh_sim[2 * G:]

    q_emb_t = jnp.transpose(q_emb, (0, 2, 1))          # [c, j, i]
    v_emb_t = jnp.transpose(v_emb, (0, 2, 1))          # [c, j, i]
    qe_fold = (s_qr[:, None, None, None] * q_emb_t[None]).reshape(
        G * GPH, KS, KS)[..., None].astype(f32)        # (G*GPH, KS, KS, 1)
    ke_fold = (s_kr[:, None, None, None] * k_emb[None]).reshape(
        G * GPH, KS, KS)[..., None].astype(f32)        # (G*GPH, KS, KS, 1)
    ve_fold = (sve_scale.reshape(G, GP)[:, :, None, None] * v_emb_t[None]
               ).reshape(G * GP, KS, KS)[..., None].astype(f32)   # (OP,KS,KS,1)

    simp = jnp.stack([s_qk, sim_shift], axis=0).astype(f32)   # (2, G) -> SMEM
    osh = o_shift[:, None, None].astype(f32)                  # (OP, 1, 1)

    # -------------------- data layout --------------------
    if width:
        xb = jnp.transpose(x, (0, 2, 1, 3))   # (N, H, C, W): attend along W
    else:
        xb = jnp.transpose(x, (0, 3, 1, 2))   # (N, W, C, H): attend along H
    Nb, Wb, Cb, Hax = xb.shape
    assert Hax == KS, "axial length must equal kernel_size"
    B = Nb * Wb
    # (C*H, B): row = c*H + i, trailing (lane) axis = batched rows
    x_flat = jnp.transpose(xb.reshape(B, Cb, Hax), (1, 2, 0)).reshape(
        Cb * Hax, B).astype(f32)

    TB = block_rows
    nblk = -(-B // TB)
    Bp = nblk * TB
    if Bp != B:
        x_flat = jnp.pad(x_flat, ((0, 0), (0, Bp - B)))

    CH = Cb * Hax
    OPH2 = 2 * OP * Hax

    # -------------------- the kernel --------------------
    def kernel(x_ref, w_ref, b_ref, qe_ref, ke_ref, ve_ref, simp_ref,
               osh_ref, out_ref):
        # folded qkv projection: row (o*H + i) = channel o, axial position i.
        qkv = lax.dot_general(
            w_ref[...], x_ref[...], (((1,), (0,)), ((), ())),
            preferred_element_type=jnp.float32) + b_ref[...]    # (2*OP*H, TB)

        chans = []
        for g in range(G):                      # G is small & static -> unrolled
            grow = g * 2 * GP * Hax

            def plane(cc, _grow=grow):
                r0 = _grow + cc * Hax
                return qkv[r0:r0 + Hax, :]                      # (H, TB)

            # similarity in (j, i, rows) layout; lane dim = rows
            qk = None
            rel = None
            for c in range(GPH):
                q_p = plane(c)                                  # Q[c]: (H_i, TB)
                k_p = plane(GPH + c)                            # K[c]: (H_j, TB)
                t_qk = k_p[:, None, :] * q_p[None, :, :]
                t_rel = (qe_ref[g * GPH + c] * q_p[None, :, :]
                         + ke_ref[g * GPH + c] * k_p[:, None, :])
                qk = t_qk if qk is None else qk + t_qk
                rel = t_rel if rel is None else rel + t_rel
            sim = simp_ref[0, g] * qk + rel + simp_ref[1, g]    # (H_j, H_i, TB)

            # softmax over j (leading axis => plain vreg max/add; EUP exp/rcp)
            sim = sim - jnp.max(sim, axis=0, keepdims=True)
            e = jnp.exp(sim)
            p = e * pl.reciprocal(jnp.sum(e, axis=0, keepdims=True),
                                  approx=True)

            for c in range(GP):
                v_p = plane(GP + c)             # V[c] (f_sv * bn scale pre-folded)
                sv_c = jnp.sum(p * v_p[:, None, :], axis=0)      # (H_i, TB)
                sve_c = jnp.sum(p * ve_ref[g * GP + c], axis=0)  # (H_i, TB)
                chans.append(sv_c + sve_c)

        # single lane-dense store per grid step
        out_ref[...] = jnp.stack(chans, axis=0) + osh_ref[...]

    out_flat = pl.pallas_call(
        kernel,
        out_shape=jax.ShapeDtypeStruct((OP, Hax, Bp), jnp.float32),
        grid_spec=pltpu.PrefetchScalarGridSpec(
            num_scalar_prefetch=0,
            grid=(nblk,),
            in_specs=[
                pl.BlockSpec((CH, TB), lambda r: (0, r)),             # x rows
                pl.BlockSpec((OPH2, CH), lambda r: (0, 0)),           # W_exp
                pl.BlockSpec((OPH2, 1), lambda r: (0, 0)),            # bias
                pl.BlockSpec((G * GPH, Hax, Hax, 1),
                             lambda r: (0, 0, 0, 0)),                 # q_emb
                pl.BlockSpec((G * GPH, Hax, Hax, 1),
                             lambda r: (0, 0, 0, 0)),                 # k_emb
                pl.BlockSpec((G * GP, Hax, Hax, 1),
                             lambda r: (0, 0, 0, 0)),                 # v_emb
                pl.BlockSpec(memory_space=pltpu.MemorySpace.SMEM),    # sim scal
                pl.BlockSpec((OP, 1, 1), lambda r: (0, 0, 0)),        # out shift
            ],
            out_specs=pl.BlockSpec((OP, Hax, TB), lambda r: (0, 0, r)),
        ),
        compiler_params=pltpu.CompilerParams(
            dimension_semantics=("parallel",)),
    )(x_flat, w_exp, b_exp, qe_fold, ke_fold, ve_fold, simp, osh)

    out = out_flat[:, :, :B].reshape(OP, Hax, Nb, Wb)
    if width:
        out = jnp.transpose(out, (2, 0, 3, 1))   # (N, OP, H, W)
    else:
        out = jnp.transpose(out, (2, 0, 1, 3))   # (N, OP, H, W)
    # TODO(synk): stride > 1 AvgPool2d path not implemented (stride=1 used).
    return out


# ----------------------------------------------------------------------------
# Pure-JAX reference (direct transcription of the PyTorch forward, eval-mode BN)
# ----------------------------------------------------------------------------
def reference_forward(x, params, *, groups, out_planes, kernel_size, width=False):
    G, OP, KS = groups, out_planes, kernel_size
    GP = OP // G
    GPH = GP // 2
    if width:
        xp = jnp.transpose(x, (0, 2, 1, 3))
    else:
        xp = jnp.transpose(x, (0, 3, 1, 2))
    N_, W_, C_, H_ = xp.shape
    B = N_ * W_
    xb = xp.reshape(B, C_, H_)

    qkv = jnp.einsum("oc,bch->boh", params["w_conv"], xb, precision="highest")
    s, sh = _bn_affine(params["bn_qkv"])
    qkv = qkv * s[None, :, None] + sh[None, :, None]
    qkv = qkv.reshape(B, G, 2 * GP, H_)
    q, k, v = qkv[:, :, :GPH], qkv[:, :, GPH:GP], qkv[:, :, GP:]

    rel_idx = (jnp.arange(KS)[:, None] - jnp.arange(KS)[None, :]) + KS - 1
    all_emb = params["relative"][:, rel_idx]
    qe, ke, ve = all_emb[:GPH], all_emb[GPH:GP], all_emb[GP:]

    qr = jnp.einsum("bgci,cij->bgij", q, qe, precision="highest") * params["f_qr"]
    kr = jnp.swapaxes(
        jnp.einsum("bgci,cij->bgij", k, ke, precision="highest"), 2, 3
    ) * params["f_kr"]
    qk = jnp.einsum("bgci,bgcj->bgij", q, k, precision="highest")

    stacked = jnp.concatenate([qk, qr, kr], axis=1)
    s, sh = _bn_affine(params["bn_sim"])
    stacked = stacked * s[None, :, None, None] + sh[None, :, None, None]
    sim = stacked.reshape(B, 3, G, H_, H_).sum(axis=1)
    sim = jax.nn.softmax(sim, axis=3)

    sv = jnp.einsum("bgij,bgcj->bgci", sim, v, precision="highest") * params["f_sv"]
    sve = jnp.einsum("bgij,cij->bgci", sim, ve, precision="highest") * params["f_sve"]
    stacked_out = jnp.concatenate([sv, sve], axis=-1).reshape(B, 2 * OP, H_)
    s, sh = _bn_affine(params["bn_out"])
    stacked_out = stacked_out * s[None, :, None] + sh[None, :, None]
    out = stacked_out.reshape(N_, W_, OP, 2, H_).sum(axis=-2)
    if width:
        return jnp.transpose(out, (0, 2, 1, 3))
    return jnp.transpose(out, (0, 2, 3, 1))


# ----------------------------------------------------------------------------
if __name__ == "__main__":
    key = jax.random.PRNGKey(0)
    kx, kp = jax.random.split(key)

    # small shapes consistent with the module: axial length (H) == kernel_size;
    # W = 96 gives B = N*W = 192 rows -> 2 row-blocks of 128 (exercises both
    # the multi-block grid and the zero-padding path).
    N, in_planes, H, W = 2, 16, 8, 96
    out_planes, groups, kernel_size = 16, 4, 8

    x = jax.random.normal(kx, (N, in_planes, H, W), jnp.float32)
    params = init_params(in_planes, out_planes, groups, kernel_size, kp)

    out = axial_attention_forward(
        x, params, groups=groups, out_planes=out_planes,
        kernel_size=kernel_size, width=False)
    out = jax.block_until_ready(out)

    ref = reference_forward(
        x, params, groups=groups, out_planes=out_planes,
        kernel_size=kernel_size, width=False)
    ref = jax.block_until_ready(ref)

    assert out.shape == (N, out_planes, H, W), out.shape
    if not np.allclose(np.asarray(out), np.asarray(ref), atol=2e-2, rtol=2e-2):
        max_err = float(jnp.max(jnp.abs(out - ref)))
        raise AssertionError(f"Pallas output mismatch, max abs err = {max_err}")

    print("KERNEL_OK")
</pallas_src>

<mosaic_0001>
module attributes {stable_mosaic.version = 11 : i64} {
  func.func @kernel(%arg0: i32, %arg1: memref<128x128xf32, #tpu.memory_space<vmem>>, %arg2: memref<256x128xf32, #tpu.memory_space<vmem>>, %arg3: memref<256x1xf32, #tpu.memory_space<vmem>>, %arg4: memref<8x8x8x1xf32, #tpu.memory_space<vmem>>, %arg5: memref<8x8x8x1xf32, #tpu.memory_space<vmem>>, %arg6: memref<16x8x8x1xf32, #tpu.memory_space<vmem>>, %arg7: memref<2x4xf32, #tpu.memory_space<smem>>, %arg8: memref<16x1x1xf32, #tpu.memory_space<vmem>>, %arg9: memref<16x8x128xf32, #tpu.memory_space<vmem>>) attributes {dimension_semantics = [#tpu.dimension_semantics<parallel>], iteration_bounds = array<i64: 2>, scalar_prefetch = 0 : i64, scratch_operands = 0 : i64, tpu.core_type = #tpu.core_type<tc>, window_params = [{transform_indices = @transform_0, window_bounds = array<i64: 128, 128>}, {pipeline_mode = #tpu.pipeline_mode<synchronous>, transform_indices = @transform_1, window_bounds = array<i64: 256, 128>}, {pipeline_mode = #tpu.pipeline_mode<synchronous>, transform_indices = @transform_2, window_bounds = array<i64: 256, 1>}, {pipeline_mode = #tpu.pipeline_mode<synchronous>, transform_indices = @transform_3, window_bounds = array<i64: 8, 8, 8, 1>}, {pipeline_mode = #tpu.pipeline_mode<synchronous>, transform_indices = @transform_4, window_bounds = array<i64: 8, 8, 8, 1>}, {pipeline_mode = #tpu.pipeline_mode<synchronous>, transform_indices = @transform_5, window_bounds = array<i64: 16, 8, 8, 1>}, {transform_indices = @transform_6, window_bounds = array<i64: 2, 4>}, {pipeline_mode = #tpu.pipeline_mode<synchronous>, transform_indices = @transform_7, window_bounds = array<i64: 16, 1, 1>}, {transform_indices = @transform_8, window_bounds = array<i64: 16, 8, 128>}]} {
    %c0 = arith.constant 0 : index
    %c0_0 = arith.constant 0 : index
    %0 = vector.load %arg2[%c0, %c0_0] : memref<256x128xf32, #tpu.memory_space<vmem>>, vector<256x128xf32>
    %c0_1 = arith.constant 0 : index
    %c0_2 = arith.constant 0 : index
    %1 = vector.load %arg1[%c0_1, %c0_2] : memref<128x128xf32, #tpu.memory_space<vmem>>, vector<128x128xf32>
    %cst = arith.constant dense<0.000000e+00> : vector<256x128xf32>
    %2 = tpu.matmul %0, %1, %cst {dimension_numbers = #tpu.dot_dimension_numbers<[1], [0], [0], [1], [0, 0, 1, 1], [], []>} : vector<256x128xf32>, vector<128x128xf32>, vector<256x128xf32> -> vector<256x128xf32>
    %c0_3 = arith.constant 0 : index
    %c0_4 = arith.constant 0 : index
    %3 = vector.load %arg3[%c0_3, %c0_4] : memref<256x1xf32, #tpu.memory_space<vmem>>, vector<256x1xf32>
    %4 = vector.broadcast %3 : vector<256x1xf32> to vector<256x128xf32>
    %5 = arith.addf %2, %4 : vector<256x128xf32>
    %6 = vector.extract_strided_slice %5 {offsets = [0, 0], sizes = [8, 128], strides = [1, 1]} : vector<256x128xf32> to vector<8x128xf32>
    %7 = vector.extract_strided_slice %5 {offsets = [16, 0], sizes = [8, 128], strides = [1, 1]} : vector<256x128xf32> to vector<8x128xf32>
    %8 = vector.shape_cast %7 : vector<8x128xf32> to vector<8x1x128xf32>
    %9 = vector.shape_cast %6 : vector<8x128xf32> to vector<1x8x128xf32>
    %10 = vector.broadcast %8 : vector<8x1x128xf32> to vector<8x8x128xf32>
    %11 = vector.broadcast %9 : vector<1x8x128xf32> to vector<8x8x128xf32>
    %12 = arith.mulf %10, %11 : vector<8x8x128xf32>
    %c0_5 = arith.constant 0 : index
    %c0_6 = arith.constant 0 : index
    %c0_7 = arith.constant 0 : index
    %c0_8 = arith.constant 0 : index
    %13 = vector.load %arg4[%c0_5, %c0_6, %c0_7, %c0_8] : memref<8x8x8x1xf32, #tpu.memory_space<vmem>>, vector<1x8x8x1xf32>
    %14 = vector.shape_cast %13 : vector<1x8x8x1xf32> to vector<8x8x1xf32>
    %15 = vector.shape_cast %6 : vector<8x128xf32> to vector<1x8x128xf32>
    %16 = vector.broadcast %14 : vector<8x8x1xf32> to vector<8x8x128xf32>
    %17 = vector.broadcast %15 : vector<1x8x128xf32> to vector<8x8x128xf32>
    %18 = arith.mulf %16, %17 : vector<8x8x128xf32>
    %c0_9 = arith.constant 0 : index
    %c0_10 = arith.constant 0 : index
    %c0_11 = arith.constant 0 : index
    %c0_12 = arith.constant 0 : index
    %19 = vector.load %arg5[%c0_9, %c0_10, %c0_11, %c0_12] : memref<8x8x8x1xf32, #tpu.memory_space<vmem>>, vector<1x8x8x1xf32>
    %20 = vector.shape_cast %19 : vector<1x8x8x1xf32> to vector<8x8x1xf32>
    %21 = vector.shape_cast %7 : vector<8x128xf32> to vector<8x1x128xf32>
    %22 = vector.broadcast %20 : vector<8x8x1xf32> to vector<8x8x128xf32>
    %23 = vector.broadcast %21 : vector<8x1x128xf32> to vector<8x8x128xf32>
    %24 = arith.mulf %22, %23 : vector<8x8x128xf32>
    %25 = arith.addf %18, %24 : vector<8x8x128xf32>
    %26 = vector.extract_strided_slice %5 {offsets = [8, 0], sizes = [8, 128], strides = [1, 1]} : vector<256x128xf32> to vector<8x128xf32>
    %27 = vector.extract_strided_slice %5 {offsets = [24, 0], sizes = [8, 128], strides = [1, 1]} : vector<256x128xf32> to vector<8x128xf32>
    %28 = vector.shape_cast %27 : vector<8x128xf32> to vector<8x1x128xf32>
    %29 = vector.shape_cast %26 : vector<8x128xf32> to vector<1x8x128xf32>
    %30 = vector.broadcast %28 : vector<8x1x128xf32> to vector<8x8x128xf32>
    %31 = vector.broadcast %29 : vector<1x8x128xf32> to vector<8x8x128xf32>
    %32 = arith.mulf %30, %31 : vector<8x8x128xf32>
    %c1 = arith.constant 1 : index
    %c0_13 = arith.constant 0 : index
    %c0_14 = arith.constant 0 : index
    %c0_15 = arith.constant 0 : index
    %33 = vector.load %arg4[%c1, %c0_13, %c0_14, %c0_15] : memref<8x8x8x1xf32, #tpu.memory_space<vmem>>, vector<1x8x8x1xf32>
    %34 = vector.shape_cast %33 : vector<1x8x8x1xf32> to vector<8x8x1xf32>
    %35 = vector.shape_cast %26 : vector<8x128xf32> to vector<1x8x128xf32>
    %36 = vector.broadcast %34 : vector<8x8x1xf32> to vector<8x8x128xf32>
    %37 = vector.broadcast %35 : vector<1x8x128xf32> to vector<8x8x128xf32>
    %38 = arith.mulf %36, %37 : vector<8x8x128xf32>
    %c1_16 = arith.constant 1 : index
    %c0_17 = arith.constant 0 : index
    %c0_18 = arith.constant 0 : index
    %c0_19 = arith.constant 0 : index
    %39 = vector.load %arg5[%c1_16, %c0_17, %c0_18, %c0_19] : memref<8x8x8x1xf32, #tpu.memory_space<vmem>>, vector<1x8x8x1xf32>
    %40 = vector.shape_cast %39 : vector<1x8x8x1xf32> to vector<8x8x1xf32>
    %41 = vector.shape_cast %27 : vector<8x128xf32> to vector<8x1x128xf32>
    %42 = vector.broadcast %40 : vector<8x8x1xf32> to vector<8x8x128xf32>
    %43 = vector.broadcast %41 : vector<8x1x128xf32> to vector<8x8x128xf32>
    %44 = arith.mulf %42, %43 : vector<8x8x128xf32>
    %45 = arith.addf %38, %44 : vector<8x8x128xf32>
    %46 = arith.addf %12, %32 : vector<8x8x128xf32>
    %47 = arith.addf %25, %45 : vector<8x8x128xf32>
    %c0_20 = arith.constant 0 : index
    %c0_21 = arith.constant 0 : index
    %48 = memref.load %arg7[%c0_20, %c0_21] : memref<2x4xf32, #tpu.memory_space<smem>>
    %49 = vector.broadcast %48 : f32 to vector<8x8x128xf32>
    %50 = arith.mulf %49, %46 : vector<8x8x128xf32>
    %51 = arith.addf %50, %47 : vector<8x8x128xf32>
    %c1_22 = arith.constant 1 : index
    %c0_23 = arith.constant 0 : index
    %52 = memref.load %arg7[%c1_22, %c0_23] : memref<2x4xf32, #tpu.memory_space<smem>>
    %53 = vector.broadcast %52 : f32 to vector<8x8x128xf32>
    %54 = arith.addf %51, %53 : vector<8x8x128xf32>
    %cst_24 = arith.constant dense<0xFF800000> : vector<8x128xf32>
    %55 = vector.multi_reduction <maximumf>, %54, %cst_24 [0] : vector<8x8x128xf32> to vector<8x128xf32>
    %56 = vector.shape_cast %55 : vector<8x128xf32> to vector<1x8x128xf32>
    %57 = vector.broadcast %56 : vector<1x8x128xf32> to vector<8x8x128xf32>
    %58 = arith.subf %54, %57 : vector<8x8x128xf32>
    %59 = math.exp %58 : vector<8x8x128xf32>
    %cst_25 = arith.constant dense<0.000000e+00> : vector<8x128xf32>
    %60 = vector.multi_reduction <add>, %59, %cst_25 [0] : vector<8x8x128xf32> to vector<8x128xf32>
    %61 = vector.shape_cast %60 : vector<8x128xf32> to vector<1x8x128xf32>
    %62 = tpu.reciprocal %61 {approx = true} : vector<1x8x128xf32> -> vector<1x8x128xf32>
    %63 = vector.broadcast %62 : vector<1x8x128xf32> to vector<8x8x128xf32>
    %64 = arith.mulf %59, %63 : vector<8x8x128xf32>
    %65 = vector.extract_strided_slice %5 {offsets = [32, 0], sizes = [8, 128], strides = [1, 1]} : vector<256x128xf32> to vector<8x128xf32>
    %66 = vector.shape_cast %65 : vector<8x128xf32> to vector<8x1x128xf32>
    %67 = vector.broadcast %66 : vector<8x1x128xf32> to vector<8x8x128xf32>
    %68 = arith.mulf %64, %67 : vector<8x8x128xf32>
    %cst_26 = arith.constant dense<0.000000e+00> : vector<8x128xf32>
    %69 = vector.multi_reduction <add>, %68, %cst_26 [0] : vector<8x8x128xf32> to vector<8x128xf32>
    %c0_27 = arith.constant 0 : index
    %c0_28 = arith.constant 0 : index
    %c0_29 = arith.constant 0 : index
    %c0_30 = arith.constant 0 : index
    %70 = vector.load %arg6[%c0_27, %c0_28, %c0_29, %c0_30] : memref<16x8x8x1xf32, #tpu.memory_space<vmem>>, vector<1x8x8x1xf32>
    %71 = vector.shape_cast %70 : vector<1x8x8x1xf32> to vector<8x8x1xf32>
    %72 = vector.broadcast %71 : vector<8x8x1xf32> to vector<8x8x128xf32>
    %73 = arith.mulf %64, %72 : vector<8x8x128xf32>
    %cst_31 = arith.constant dense<0.000000e+00> : vector<8x128xf32>
    %74 = vector.multi_reduction <add>, %73, %cst_31 [0] : vector<8x8x128xf32> to vector<8x128xf32>
    %75 = arith.addf %69, %74 : vector<8x128xf32>
    %76 = vector.extract_strided_slice %5 {offsets = [40, 0], sizes = [8, 128], strides = [1, 1]} : vector<256x128xf32> to vector<8x128xf32>
    %77 = vector.shape_cast %76 : vector<8x128xf32> to vector<8x1x128xf32>
    %78 = vector.broadcast %77 : vector<8x1x128xf32> to vector<8x8x128xf32>
    %79 = arith.mulf %64, %78 : vector<8x8x128xf32>
    %cst_32 = arith.constant dense<0.000000e+00> : vector<8x128xf32>
    %80 = vector.multi_reduction <add>, %79, %cst_32 [0] : vector<8x8x128xf32> to vector<8x128xf32>
    %c1_33 = arith.constant 1 : index
    %c0_34 = arith.constant 0 : index
    %c0_35 = arith.constant 0 : index
    %c0_36 = arith.constant 0 : index
    %81 = vector.load %arg6[%c1_33, %c0_34, %c0_35, %c0_36] : memref<16x8x8x1xf32, #tpu.memory_space<vmem>>, vector<1x8x8x1xf32>
    %82 = vector.shape_cast %81 : vector<1x8x8x1xf32> to vector<8x8x1xf32>
    %83 = vector.broadcast %82 : vector<8x8x1xf32> to vector<8x8x128xf32>
    %84 = arith.mulf %64, %83 : vector<8x8x128xf32>
    %cst_37 = arith.constant dense<0.000000e+00> : vector<8x128xf32>
    %85 = vector.multi_reduction <add>, %84, %cst_37 [0] : vector<8x8x128xf32> to vector<8x128xf32>
    %86 = arith.addf %80, %85 : vector<8x128xf32>
    %87 = vector.extract_strided_slice %5 {offsets = [48, 0], sizes = [8, 128], strides = [1, 1]} : vector<256x128xf32> to vector<8x128xf32>
    %88 = vector.shape_cast %87 : vector<8x128xf32> to vector<8x1x128xf32>
    %89 = vector.broadcast %88 : vector<8x1x128xf32> to vector<8x8x128xf32>
    %90 = arith.mulf %64, %89 : vector<8x8x128xf32>
    %cst_38 = arith.constant dense<0.000000e+00> : vector<8x128xf32>
    %91 = vector.multi_reduction <add>, %90, %cst_38 [0] : vector<8x8x128xf32> to vector<8x128xf32>
    %c2 = arith.constant 2 : index
    %c0_39 = arith.constant 0 : index
    %c0_40 = arith.constant 0 : index
    %c0_41 = arith.constant 0 : index
    %92 = vector.load %arg6[%c2, %c0_39, %c0_40, %c0_41] : memref<16x8x8x1xf32, #tpu.memory_space<vmem>>, vector<1x8x8x1xf32>
    %93 = vector.shape_cast %92 : vector<1x8x8x1xf32> to vector<8x8x1xf32>
    %94 = vector.broadcast %93 : vector<8x8x1xf32> to vector<8x8x128xf32>
    %95 = arith.mulf %64, %94 : vector<8x8x128xf32>
    %cst_42 = arith.constant dense<0.000000e+00> : vector<8x128xf32>
    %96 = vector.multi_reduction <add>, %95, %cst_42 [0] : vector<8x8x128xf32> to vector<8x128xf32>
    %97 = arith.addf %91, %96 : vector<8x128xf32>
    %98 = vector.extract_strided_slice %5 {offsets = [56, 0], sizes = [8, 128], strides = [1, 1]} : vector<256x128xf32> to vector<8x128xf32>
    %99 = vector.shape_cast %98 : vector<8x128xf32> to vector<8x1x128xf32>
    %100 = vector.broadcast %99 : vector<8x1x128xf32> to vector<8x8x128xf32>
    %101 = arith.mulf %64, %100 : vector<8x8x128xf32>
    %cst_43 = arith.constant dense<0.000000e+00> : vector<8x128xf32>
    %102 = vector.multi_reduction <add>, %101, %cst_43 [0] : vector<8x8x128xf32> to vector<8x128xf32>
    %c3 = arith.constant 3 : index
    %c0_44 = arith.constant 0 : index
    %c0_45 = arith.constant 0 : index
    %c0_46 = arith.constant 0 : index
    %103 = vector.load %arg6[%c3, %c0_44, %c0_45, %c0_46] : memref<16x8x8x1xf32, #tpu.memory_space<vmem>>, vector<1x8x8x1xf32>
    %104 = vector.shape_cast %103 : vector<1x8x8x1xf32> to vector<8x8x1xf32>
    %105 = vector.broadcast %104 : vector<8x8x1xf32> to vector<8x8x128xf32>
    %106 = arith.mulf %64, %105 : vector<8x8x128xf32>
    %cst_47 = arith.constant dense<0.000000e+00> : vector<8x128xf32>
    %107 = vector.multi_reduction <add>, %106, %cst_47 [0] : vector<8x8x128xf32> to vector<8x128xf32>
    %108 = arith.addf %102, %107 : vector<8x128xf32>
    %109 = vector.extract_strided_slice %5 {offsets = [64, 0], sizes = [8, 128], strides = [1, 1]} : vector<256x128xf32> to vector<8x128xf32>
    %110 = vector.extract_strided_slice %5 {offsets = [80, 0], sizes = [8, 128], strides = [1, 1]} : vector<256x128xf32> to vector<8x128xf32>
    %111 = vector.shape_cast %110 : vector<8x128xf32> to vector<8x1x128xf32>
    %112 = vector.shape_cast %109 : vector<8x128xf32> to vector<1x8x128xf32>
    %113 = vector.broadcast %111 : vector<8x1x128xf32> to vector<8x8x128xf32>
    %114 = vector.broadcast %112 : vector<1x8x128xf32> to vector<8x8x128xf32>
    %115 = arith.mulf %113, %114 : vector<8x8x128xf32>
    %c2_48 = arith.constant 2 : index
    %c0_49 = arith.constant 0 : index
    %c0_50 = arith.constant 0 : index
    %c0_51 = arith.constant 0 : index
    %116 = vector.load %arg4[%c2_48, %c0_49, %c0_50, %c0_51] : memref<8x8x8x1xf32, #tpu.memory_space<vmem>>, vector<1x8x8x1xf32>
    %117 = vector.shape_cast %116 : vector<1x8x8x1xf32> to vector<8x8x1xf32>
    %118 = vector.shape_cast %109 : vector<8x128xf32> to vector<1x8x128xf32>
    %119 = vector.broadcast %117 : vector<8x8x1xf32> to vector<8x8x128xf32>
    %120 = vector.broadcast %118 : vector<1x8x128xf32> to vector<8x8x128xf32>
    %121 = arith.mulf %119, %120 : vector<8x8x128xf32>
    %c2_52 = arith.constant 2 : index
    %c0_53 = arith.constant 0 : index
    %c0_54 = arith.constant 0 : index
    %c0_55 = arith.constant 0 : index
    %122 = vector.load %arg5[%c2_52, %c0_53, %c0_54, %c0_55] : memref<8x8x8x1xf32, #tpu.memory_space<vmem>>, vector<1x8x8x1xf32>
    %123 = vector.shape_cast %122 : vector<1x8x8x1xf32> to vector<8x8x1xf32>
    %124 = vector.shape_cast %110 : vector<8x128xf32> to vector<8x1x128xf32>
    %125 = vector.broadcast %123 : vector<8x8x1xf32> to vector<8x8x128xf32>
    %126 = vector.broadcast %124 : vector<8x1x128xf32> to vector<8x8x128xf32>
    %127 = arith.mulf %125, %126 : vector<8x8x128xf32>
    %128 = arith.addf %121, %127 : vector<8x8x128xf32>
    %129 = vector.extract_strided_slice %5 {offsets = [72, 0], sizes = [8, 128], strides = [1, 1]} : vector<256x128xf32> to vector<8x128xf32>
    %130 = vector.extract_strided_slice %5 {offsets = [88, 0], sizes = [8, 128], strides = [1, 1]} : vector<256x128xf32> to vector<8x128xf32>
    %131 = vector.shape_cast %130 : vector<8x128xf32> to vector<8x1x128xf32>
    %132 = vector.shape_cast %129 : vector<8x128xf32> to vector<1x8x128xf32>
    %133 = vector.broadcast %131 : vector<8x1x128xf32> to vector<8x8x128xf32>
    %134 = vector.broadcast %132 : vector<1x8x128xf32> to vector<8x8x128xf32>
    %135 = arith.mulf %133, %134 : vector<8x8x128xf32>
    %c3_56 = arith.constant 3 : index
    %c0_57 = arith.constant 0 : index
    %c0_58 = arith.constant 0 : index
    %c0_59 = arith.constant 0 : index
    %136 = vector.load %arg4[%c3_56, %c0_57, %c0_58, %c0_59] : memref<8x8x8x1xf32, #tpu.memory_space<vmem>>, vector<1x8x8x1xf32>
    %137 = vector.shape_cast %136 : vector<1x8x8x1xf32> to vector<8x8x1xf32>
    %138 = vector.shape_cast %129 : vector<8x128xf32> to vector<1x8x128xf32>
    %139 = vector.broadcast %137 : vector<8x8x1xf32> to vector<8x8x128xf32>
    %140 = vector.broadcast %138 : vector<1x8x128xf32> to vector<8x8x128xf32>
    %141 = arith.mulf %139, %140 : vector<8x8x128xf32>
    %c3_60 = arith.constant 3 : index
    %c0_61 = arith.constant 0 : index
    %c0_62 = arith.constant 0 : index
    %c0_63 = arith.constant 0 : index
    %142 = vector.load %arg5[%c3_60, %c0_61, %c0_62, %c0_63] : memref<8x8x8x1xf32, #tpu.memory_space<vmem>>, vector<1x8x8x1xf32>
    %143 = vector.shape_cast %142 : vector<1x8x8x1xf32> to vector<8x8x1xf32>
    %144 = vector.shape_cast %130 : vector<8x128xf32> to vector<8x1x128xf32>
    %145 = vector.broadcast %143 : vector<8x8x1xf32> to vector<8x8x128xf32>
    %146 = vector.broadcast %144 : vector<8x1x128xf32> to vector<8x8x128xf32>
    %147 = arith.mulf %145, %146 : vector<8x8x128xf32>
    %148 = arith.addf %141, %147 : vector<8x8x128xf32>
    %149 = arith.addf %115, %135 : vector<8x8x128xf32>
    %150 = arith.addf %128, %148 : vector<8x8x128xf32>
    %c0_64 = arith.constant 0 : index
    %c1_65 = arith.constant 1 : index
    %151 = memref.load %arg7[%c0_64, %c1_65] : memref<2x4xf32, #tpu.memory_space<smem>>
    %152 = vector.broadcast %151 : f32 to vector<8x8x128xf32>
    %153 = arith.mulf %152, %149 : vector<8x8x128xf32>
    %154 = arith.addf %153, %150 : vector<8x8x128xf32>
    %c1_66 = arith.constant 1 : index
    %c1_67 = arith.constant 1 : index
    %155 = memref.load %arg7[%c1_66, %c1_67] : memref<2x4xf32, #tpu.memory_space<smem>>
    %156 = vector.broadcast %155 : f32 to vector<8x8x128xf32>
    %157 = arith.addf %154, %156 : vector<8x8x128xf32>
    %cst_68 = arith.constant dense<0xFF800000> : vector<8x128xf32>
    %158 = vector.multi_reduction <maximumf>, %157, %cst_68 [0] : vector<8x8x128xf32> to vector<8x128xf32>
    %159 = vector.shape_cast %158 : vector<8x128xf32> to vector<1x8x128xf32>
    %160 = vector.broadcast %159 : vector<1x8x128xf32> to vector<8x8x128xf32>
    %161 = arith.subf %157, %160 : vector<8x8x128xf32>
    %162 = math.exp %161 : vector<8x8x128xf32>
    %cst_69 = arith.constant dense<0.000000e+00> : vector<8x128xf32>
    %163 = vector.multi_reduction <add>, %162, %cst_69 [0] : vector<8x8x128xf32> to vector<8x128xf32>
    %164 = vector.shape_cast %163 : vector<8x128xf32> to vector<1x8x128xf32>
    %165 = tpu.reciprocal %164 {approx = true} : vector<1x8x128xf32> -> vector<1x8x128xf32>
    %166 = vector.broadcast %165 : vector<1x8x128xf32> to vector<8x8x128xf32>
    %167 = arith.mulf %162, %166 : vector<8x8x128xf32>
    %168 = vector.extract_strided_slice %5 {offsets = [96, 0], sizes = [8, 128], strides = [1, 1]} : vector<256x128xf32> to vector<8x128xf32>
    %169 = vector.shape_cast %168 : vector<8x128xf32> to vector<8x1x128xf32>
    %170 = vector.broadcast %169 : vector<8x1x128xf32> to vector<8x8x128xf32>
    %171 = arith.mulf %167, %170 : vector<8x8x128xf32>
    %cst_70 = arith.constant dense<0.000000e+00> : vector<8x128xf32>
    %172 = vector.multi_reduction <add>, %171, %cst_70 [0] : vector<8x8x128xf32> to vector<8x128xf32>
    %c4 = arith.constant 4 : index
    %c0_71 = arith.constant 0 : index
    %c0_72 = arith.constant 0 : index
    %c0_73 = arith.constant 0 : index
    %173 = vector.load %arg6[%c4, %c0_71, %c0_72, %c0_73] : memref<16x8x8x1xf32, #tpu.memory_space<vmem>>, vector<1x8x8x1xf32>
    %174 = vector.shape_cast %173 : vector<1x8x8x1xf32> to vector<8x8x1xf32>
    %175 = vector.broadcast %174 : vector<8x8x1xf32> to vector<8x8x128xf32>
    %176 = arith.mulf %167, %175 : vector<8x8x128xf32>
    %cst_74 = arith.constant dense<0.000000e+00> : vector<8x128xf32>
    %177 = vector.multi_reduction <add>, %176, %cst_74 [0] : vector<8x8x128xf32> to vector<8x128xf32>
    %178 = arith.addf %172, %177 : vector<8x128xf32>
    %179 = vector.extract_strided_slice %5 {offsets = [104, 0], sizes = [8, 128], strides = [1, 1]} : vector<256x128xf32> to vector<8x128xf32>
    %180 = vector.shape_cast %179 : vector<8x128xf32> to vector<8x1x128xf32>
    %181 = vector.broadcast %180 : vector<8x1x128xf32> to vector<8x8x128xf32>
    %182 = arith.mulf %167, %181 : vector<8x8x128xf32>
    %cst_75 = arith.constant dense<0.000000e+00> : vector<8x128xf32>
    %183 = vector.multi_reduction <add>, %182, %cst_75 [0] : vector<8x8x128xf32> to vector<8x128xf32>
    %c5 = arith.constant 5 : index
    %c0_76 = arith.constant 0 : index
    %c0_77 = arith.constant 0 : index
    %c0_78 = arith.constant 0 : index
    %184 = vector.load %arg6[%c5, %c0_76, %c0_77, %c0_78] : memref<16x8x8x1xf32, #tpu.memory_space<vmem>>, vector<1x8x8x1xf32>
    %185 = vector.shape_cast %184 : vector<1x8x8x1xf32> to vector<8x8x1xf32>
    %186 = vector.broadcast %185 : vector<8x8x1xf32> to vector<8x8x128xf32>
    %187 = arith.mulf %167, %186 : vector<8x8x128xf32>
    %cst_79 = arith.constant dense<0.000000e+00> : vector<8x128xf32>
    %188 = vector.multi_reduction <add>, %187, %cst_79 [0] : vector<8x8x128xf32> to vector<8x128xf32>
    %189 = arith.addf %183, %188 : vector<8x128xf32>
    %190 = vector.extract_strided_slice %5 {offsets = [112, 0], sizes = [8, 128], strides = [1, 1]} : vector<256x128xf32> to vector<8x128xf32>
    %191 = vector.shape_cast %190 : vector<8x128xf32> to vector<8x1x128xf32>
    %192 = vector.broadcast %191 : vector<8x1x128xf32> to vector<8x8x128xf32>
    %193 = arith.mulf %167, %192 : vector<8x8x128xf32>
    %cst_80 = arith.constant dense<0.000000e+00> : vector<8x128xf32>
    %194 = vector.multi_reduction <add>, %193, %cst_80 [0] : vector<8x8x128xf32> to vector<8x128xf32>
    %c6 = arith.constant 6 : index
    %c0_81 = arith.constant 0 : index
    %c0_82 = arith.constant 0 : index
    %c0_83 = arith.constant 0 : index
    %195 = vector.load %arg6[%c6, %c0_81, %c0_82, %c0_83] : memref<16x8x8x1xf32, #tpu.memory_space<vmem>>, vector<1x8x8x1xf32>
    %196 = vector.shape_cast %195 : vector<1x8x8x1xf32> to vector<8x8x1xf32>
    %197 = vector.broadcast %196 : vector<8x8x1xf32> to vector<8x8x128xf32>
    %198 = arith.mulf %167, %197 : vector<8x8x128xf32>
    %cst_84 = arith.constant dense<0.000000e+00> : vector<8x128xf32>
    %199 = vector.multi_reduction <add>, %198, %cst_84 [0] : vector<8x8x128xf32> to vector<8x128xf32>
    %200 = arith.addf %194, %199 : vector<8x128xf32>
    %201 = vector.extract_strided_slice %5 {offsets = [120, 0], sizes = [8, 128], strides = [1, 1]} : vector<256x128xf32> to vector<8x128xf32>
    %202 = vector.shape_cast %201 : vector<8x128xf32> to vector<8x1x128xf32>
    %203 = vector.broadcast %202 : vector<8x1x128xf32> to vector<8x8x128xf32>
    %204 = arith.mulf %167, %203 : vector<8x8x128xf32>
    %cst_85 = arith.constant dense<0.000000e+00> : vector<8x128xf32>
    %205 = vector.multi_reduction <add>, %204, %cst_85 [0] : vector<8x8x128xf32> to vector<8x128xf32>
    %c7 = arith.constant 7 : index
    %c0_86 = arith.constant 0 : index
    %c0_87 = arith.constant 0 : index
    %c0_88 = arith.constant 0 : index
    %206 = vector.load %arg6[%c7, %c0_86, %c0_87, %c0_88] : memref<16x8x8x1xf32, #tpu.memory_space<vmem>>, vector<1x8x8x1xf32>
    %207 = vector.shape_cast %206 : vector<1x8x8x1xf32> to vector<8x8x1xf32>
    %208 = vector.broadcast %207 : vector<8x8x1xf32> to vector<8x8x128xf32>
    %209 = arith.mulf %167, %208 : vector<8x8x128xf32>
    %cst_89 = arith.constant dense<0.000000e+00> : vector<8x128xf32>
    %210 = vector.multi_reduction <add>, %209, %cst_89 [0] : vector<8x8x128xf32> to vector<8x128xf32>
    %211 = arith.addf %205, %210 : vector<8x128xf32>
    %212 = vector.extract_strided_slice %5 {offsets = [128, 0], sizes = [8, 128], strides = [1, 1]} : vector<256x128xf32> to vector<8x128xf32>
    %213 = vector.extract_strided_slice %5 {offsets = [144, 0], sizes = [8, 128], strides = [1, 1]} : vector<256x128xf32> to vector<8x128xf32>
    %214 = vector.shape_cast %213 : vector<8x128xf32> to vector<8x1x128xf32>
    %215 = vector.shape_cast %212 : vector<8x128xf32> to vector<1x8x128xf32>
    %216 = vector.broadcast %214 : vector<8x1x128xf32> to vector<8x8x128xf32>
    %217 = vector.broadcast %215 : vector<1x8x128xf32> to vector<8x8x128xf32>
    %218 = arith.mulf %216, %217 : vector<8x8x128xf32>
    %c4_90 = arith.constant 4 : index
    %c0_91 = arith.constant 0 : index
    %c0_92 = arith.constant 0 : index
    %c0_93 = arith.constant 0 : index
    %219 = vector.load %arg4[%c4_90, %c0_91, %c0_92, %c0_93] : memref<8x8x8x1xf32, #tpu.memory_space<vmem>>, vector<1x8x8x1xf32>
    %220 = vector.shape_cast %219 : vector<1x8x8x1xf32> to vector<8x8x1xf32>
    %221 = vector.shape_cast %212 : vector<8x128xf32> to vector<1x8x128xf32>
    %222 = vector.broadcast %220 : vector<8x8x1xf32> to vector<8x8x128xf32>
    %223 = vector.broadcast %221 : vector<1x8x128xf32> to vector<8x8x128xf32>
    %224 = arith.mulf %222, %223 : vector<8x8x128xf32>
    %c4_94 = arith.constant 4 : index
    %c0_95 = arith.constant 0 : index
    %c0_96 = arith.constant 0 : index
    %c0_97 = arith.constant 0 : index
    %225 = vector.load %arg5[%c4_94, %c0_95, %c0_96, %c0_97] : memref<8x8x8x1xf32, #tpu.memory_space<vmem>>, vector<1x8x8x1xf32>
    %226 = vector.shape_cast %225 : vector<1x8x8x1xf32> to vector<8x8x1xf32>
    %227 = vector.shape_cast %213 : vector<8x128xf32> to vector<8x1x128xf32>
    %228 = vector.broadcast %226 : vector<8x8x1xf32> to vector<8x8x128xf32>
    %229 = vector.broadcast %227 : vector<8x1x128xf32> to vector<8x8x128xf32>
    %230 = arith.mulf %228, %229 : vector<8x8x128xf32>
    %231 = arith.addf %224, %230 : vector<8x8x128xf32>
    %232 = vector.extract_strided_slice %5 {offsets = [136, 0], sizes = [8, 128], strides = [1, 1]} : vector<256x128xf32> to vector<8x128xf32>
    %233 = vector.extract_strided_slice %5 {offsets = [152, 0], sizes = [8, 128], strides = [1, 1]} : vector<256x128xf32> to vector<8x128xf32>
    %234 = vector.shape_cast %233 : vector<8x128xf32> to vector<8x1x128xf32>
    %235 = vector.shape_cast %232 : vector<8x128xf32> to vector<1x8x128xf32>
    %236 = vector.broadcast %234 : vector<8x1x128xf32> to vector<8x8x128xf32>
    %237 = vector.broadcast %235 : vector<1x8x128xf32> to vector<8x8x128xf32>
    %238 = arith.mulf %236, %237 : vector<8x8x128xf32>
    %c5_98 = arith.constant 5 : index
    %c0_99 = arith.constant 0 : index
    %c0_100 = arith.constant 0 : index
    %c0_101 = arith.constant 0 : index
    %239 = vector.load %arg4[%c5_98, %c0_99, %c0_100, %c0_101] : memref<8x8x8x1xf32, #tpu.memory_space<vmem>>, vector<1x8x8x1xf32>
    %240 = vector.shape_cast %239 : vector<1x8x8x1xf32> to vector<8x8x1xf32>
    %241 = vector.shape_cast %232 : vector<8x128xf32> to vector<1x8x128xf32>
    %242 = vector.broadcast %240 : vector<8x8x1xf32> to vector<8x8x128xf32>
    %243 = vector.broadcast %241 : vector<1x8x128xf32> to vector<8x8x128xf32>
    %244 = arith.mulf %242, %243 : vector<8x8x128xf32>
    %c5_102 = arith.constant 5 : index
    %c0_103 = arith.constant 0 : index
    %c0_104 = arith.constant 0 : index
    %c0_105 = arith.constant 0 : index
    %245 = vector.load %arg5[%c5_102, %c0_103, %c0_104, %c0_105] : memref<8x8x8x1xf32, #tpu.memory_space<vmem>>, vector<1x8x8x1xf32>
    %246 = vector.shape_cast %245 : vector<1x8x8x1xf32> to vector<8x8x1xf32>
    %247 = vector.shape_cast %233 : vector<8x128xf32> to vector<8x1x128xf32>
    %248 = vector.broadcast %246 : vector<8x8x1xf32> to vector<8x8x128xf32>
    %249 = vector.broadcast %247 : vector<8x1x128xf32> to vector<8x8x128xf32>
    %250 = arith.mulf %248, %249 : vector<8x8x128xf32>
    %251 = arith.addf %244, %250 : vector<8x8x128xf32>
    %252 = arith.addf %218, %238 : vector<8x8x128xf32>
    %253 = arith.addf %231, %251 : vector<8x8x128xf32>
    %c0_106 = arith.constant 0 : index
    %c2_107 = arith.constant 2 : index
    %254 = memref.load %arg7[%c0_106, %c2_107] : memref<2x4xf32, #tpu.memory_space<smem>>
    %255 = vector.broadcast %254 : f32 to vector<8x8x128xf32>
    %256 = arith.mulf %255, %252 : vector<8x8x128xf32>
    %257 = arith.addf %256, %253 : vector<8x8x128xf32>
    %c1_108 = arith.constant 1 : index
    %c2_109 = arith.constant 2 : index
    %258 = memref.load %arg7[%c1_108, %c2_109] : memref<2x4xf32, #tpu.memory_space<smem>>
    %259 = vector.broadcast %258 : f32 to vector<8x8x128xf32>
    %260 = arith.addf %257, %259 : vector<8x8x128xf32>
    %cst_110 = arith.constant dense<0xFF800000> : vector<8x128xf32>
    %261 = vector.multi_reduction <maximumf>, %260, %cst_110 [0] : vector<8x8x128xf32> to vector<8x128xf32>
    %262 = vector.shape_cast %261 : vector<8x128xf32> to vector<1x8x128xf32>
    %263 = vector.broadcast %262 : vector<1x8x128xf32> to vector<8x8x128xf32>
    %264 = arith.subf %260, %263 : vector<8x8x128xf32>
    %265 = math.exp %264 : vector<8x8x128xf32>
    %cst_111 = arith.constant dense<0.000000e+00> : vector<8x128xf32>
    %266 = vector.multi_reduction <add>, %265, %cst_111 [0] : vector<8x8x128xf32> to vector<8x128xf32>
    %267 = vector.shape_cast %266 : vector<8x128xf32> to vector<1x8x128xf32>
    %268 = tpu.reciprocal %267 {approx = true} : vector<1x8x128xf32> -> vector<1x8x128xf32>
    %269 = vector.broadcast %268 : vector<1x8x128xf32> to vector<8x8x128xf32>
    %270 = arith.mulf %265, %269 : vector<8x8x128xf32>
    %271 = vector.extract_strided_slice %5 {offsets = [160, 0], sizes = [8, 128], strides = [1, 1]} : vector<256x128xf32> to vector<8x128xf32>
    %272 = vector.shape_cast %271 : vector<8x128xf32> to vector<8x1x128xf32>
    %273 = vector.broadcast %272 : vector<8x1x128xf32> to vector<8x8x128xf32>
    %274 = arith.mulf %270, %273 : vector<8x8x128xf32>
    %cst_112 = arith.constant dense<0.000000e+00> : vector<8x128xf32>
    %275 = vector.multi_reduction <add>, %274, %cst_112 [0] : vector<8x8x128xf32> to vector<8x128xf32>
    %c8 = arith.constant 8 : index
    %c0_113 = arith.constant 0 : index
    %c0_114 = arith.constant 0 : index
    %c0_115 = arith.constant 0 : index
    %276 = vector.load %arg6[%c8, %c0_113, %c0_114, %c0_115] : memref<16x8x8x1xf32, #tpu.memory_space<vmem>>, vector<1x8x8x1xf32>
    %277 = vector.shape_cast %276 : vector<1x8x8x1xf32> to vector<8x8x1xf32>
    %278 = vector.broadcast %277 : vector<8x8x1xf32> to vector<8x8x128xf32>
    %279 = arith.mulf %270, %278 : vector<8x8x128xf32>
    %cst_116 = arith.constant dense<0.000000e+00> : vector<8x128xf32>
    %280 = vector.multi_reduction <add>, %279, %cst_116 [0] : vector<8x8x128xf32> to vector<8x128xf32>
    %281 = arith.addf %275, %280 : vector<8x128xf32>
    %282 = vector.extract_strided_slice %5 {offsets = [168, 0], sizes = [8, 128], strides = [1, 1]} : vector<256x128xf32> to vector<8x128xf32>
    %283 = vector.shape_cast %282 : vector<8x128xf32> to vector<8x1x128xf32>
    %284 = vector.broadcast %283 : vector<8x1x128xf32> to vector<8x8x128xf32>
    %285 = arith.mulf %270, %284 : vector<8x8x128xf32>
    %cst_117 = arith.constant dense<0.000000e+00> : vector<8x128xf32>
    %286 = vector.multi_reduction <add>, %285, %cst_117 [0] : vector<8x8x128xf32> to vector<8x128xf32>
    %c9 = arith.constant 9 : index
    %c0_118 = arith.constant 0 : index
    %c0_119 = arith.constant 0 : index
    %c0_120 = arith.constant 0 : index
    %287 = vector.load %arg6[%c9, %c0_118, %c0_119, %c0_120] : memref<16x8x8x1xf32, #tpu.memory_space<vmem>>, vector<1x8x8x1xf32>
    %288 = vector.shape_cast %287 : vector<1x8x8x1xf32> to vector<8x8x1xf32>
    %289 = vector.broadcast %288 : vector<8x8x1xf32> to vector<8x8x128xf32>
    %290 = arith.mulf %270, %289 : vector<8x8x128xf32>
    %cst_121 = arith.constant dense<0.000000e+00> : vector<8x128xf32>
    %291 = vector.multi_reduction <add>, %290, %cst_121 [0] : vector<8x8x128xf32> to vector<8x128xf32>
    %292 = arith.addf %286, %291 : vector<8x128xf32>
    %293 = vector.extract_strided_slice %5 {offsets = [176, 0], sizes = [8, 128], strides = [1, 1]} : vector<256x128xf32> to vector<8x128xf32>
    %294 = vector.shape_cast %293 : vector<8x128xf32> to vector<8x1x128xf32>
    %295 = vector.broadcast %294 : vector<8x1x128xf32> to vector<8x8x128xf32>
    %296 = arith.mulf %270, %295 : vector<8x8x128xf32>
    %cst_122 = arith.constant dense<0.000000e+00> : vector<8x128xf32>
    %297 = vector.multi_reduction <add>, %296, %cst_122 [0] : vector<8x8x128xf32> to vector<8x128xf32>
    %c10 = arith.constant 10 : index
    %c0_123 = arith.constant 0 : index
    %c0_124 = arith.constant 0 : index
    %c0_125 = arith.constant 0 : index
    %298 = vector.load %arg6[%c10, %c0_123, %c0_124, %c0_125] : memref<16x8x8x1xf32, #tpu.memory_space<vmem>>, vector<1x8x8x1xf32>
    %299 = vector.shape_cast %298 : vector<1x8x8x1xf32> to vector<8x8x1xf32>
    %300 = vector.broadcast %299 : vector<8x8x1xf32> to vector<8x8x128xf32>
    %301 = arith.mulf %270, %300 : vector<8x8x128xf32>
    %cst_126 = arith.constant dense<0.000000e+00> : vector<8x128xf32>
    %302 = vector.multi_reduction <add>, %301, %cst_126 [0] : vector<8x8x128xf32> to vector<8x128xf32>
    %303 = arith.addf %297, %302 : vector<8x128xf32>
    %304 = vector.extract_strided_slice %5 {offsets = [184, 0], sizes = [8, 128], strides = [1, 1]} : vector<256x128xf32> to vector<8x128xf32>
    %305 = vector.shape_cast %304 : vector<8x128xf32> to vector<8x1x128xf32>
    %306 = vector.broadcast %305 : vector<8x1x128xf32> to vector<8x8x128xf32>
    %307 = arith.mulf %270, %306 : vector<8x8x128xf32>
    %cst_127 = arith.constant dense<0.000000e+00> : vector<8x128xf32>
    %308 = vector.multi_reduction <add>, %307, %cst_127 [0] : vector<8x8x128xf32> to vector<8x128xf32>
    %c11 = arith.constant 11 : index
    %c0_128 = arith.constant 0 : index
    %c0_129 = arith.constant 0 : index
    %c0_130 = arith.constant 0 : index
    %309 = vector.load %arg6[%c11, %c0_128, %c0_129, %c0_130] : memref<16x8x8x1xf32, #tpu.memory_space<vmem>>, vector<1x8x8x1xf32>
    %310 = vector.shape_cast %309 : vector<1x8x8x1xf32> to vector<8x8x1xf32>
    %311 = vector.broadcast %310 : vector<8x8x1xf32> to vector<8x8x128xf32>
    %312 = arith.mulf %270, %311 : vector<8x8x128xf32>
    %cst_131 = arith.constant dense<0.000000e+00> : vector<8x128xf32>
    %313 = vector.multi_reduction <add>, %312, %cst_131 [0] : vector<8x8x128xf32> to vector<8x128xf32>
    %314 = arith.addf %308, %313 : vector<8x128xf32>
    %315 = vector.extract_strided_slice %5 {offsets = [192, 0], sizes = [8, 128], strides = [1, 1]} : vector<256x128xf32> to vector<8x128xf32>
    %316 = vector.extract_strided_slice %5 {offsets = [208, 0], sizes = [8, 128], strides = [1, 1]} : vector<256x128xf32> to vector<8x128xf32>
    %317 = vector.shape_cast %316 : vector<8x128xf32> to vector<8x1x128xf32>
    %318 = vector.shape_cast %315 : vector<8x128xf32> to vector<1x8x128xf32>
    %319 = vector.broadcast %317 : vector<8x1x128xf32> to vector<8x8x128xf32>
    %320 = vector.broadcast %318 : vector<1x8x128xf32> to vector<8x8x128xf32>
    %321 = arith.mulf %319, %320 : vector<8x8x128xf32>
    %c6_132 = arith.constant 6 : index
    %c0_133 = arith.constant 0 : index
    %c0_134 = arith.constant 0 : index
    %c0_135 = arith.constant 0 : index
    %322 = vector.load %arg4[%c6_132, %c0_133, %c0_134, %c0_135] : memref<8x8x8x1xf32, #tpu.memory_space<vmem>>, vector<1x8x8x1xf32>
    %323 = vector.shape_cast %322 : vector<1x8x8x1xf32> to vector<8x8x1xf32>
    %324 = vector.shape_cast %315 : vector<8x128xf32> to vector<1x8x128xf32>
    %325 = vector.broadcast %323 : vector<8x8x1xf32> to vector<8x8x128xf32>
    %326 = vector.broadcast %324 : vector<1x8x128xf32> to vector<8x8x128xf32>
    %327 = arith.mulf %325, %326 : vector<8x8x128xf32>
    %c6_136 = arith.constant 6 : index
    %c0_137 = arith.constant 0 : index
    %c0_138 = arith.constant 0 : index
    %c0_139 = arith.constant 0 : index
    %328 = vector.load %arg5[%c6_136, %c0_137, %c0_138, %c0_139] : memref<8x8x8x1xf32, #tpu.memory_space<vmem>>, vector<1x8x8x1xf32>
    %329 = vector.shape_cast %328 : vector<1x8x8x1xf32> to vector<8x8x1xf32>
    %330 = vector.shape_cast %316 : vector<8x128xf32> to vector<8x1x128xf32>
    %331 = vector.broadcast %329 : vector<8x8x1xf32> to vector<8x8x128xf32>
    %332 = vector.broadcast %330 : vector<8x1x128xf32> to vector<8x8x128xf32>
    %333 = arith.mulf %331, %332 : vector<8x8x128xf32>
    %334 = arith.addf %327, %333 : vector<8x8x128xf32>
    %335 = vector.extract_strided_slice %5 {offsets = [200, 0], sizes = [8, 128], strides = [1, 1]} : vector<256x128xf32> to vector<8x128xf32>
    %336 = vector.extract_strided_slice %5 {offsets = [216, 0], sizes = [8, 128], strides = [1, 1]} : vector<256x128xf32> to vector<8x128xf32>
    %337 = vector.shape_cast %336 : vector<8x128xf32> to vector<8x1x128xf32>
    %338 = vector.shape_cast %335 : vector<8x128xf32> to vector<1x8x128xf32>
    %339 = vector.broadcast %337 : vector<8x1x128xf32> to vector<8x8x128xf32>
    %340 = vector.broadcast %338 : vector<1x8x128xf32> to vector<8x8x128xf32>
    %341 = arith.mulf %339, %340 : vector<8x8x128xf32>
    %c7_140 = arith.constant 7 : index
    %c0_141 = arith.constant 0 : index
    %c0_142 = arith.constant 0 : index
    %c0_143 = arith.constant 0 : index
    %342 = vector.load %arg4[%c7_140, %c0_141, %c0_142, %c0_143] : memref<8x8x8x1xf32, #tpu.memory_space<vmem>>, vector<1x8x8x1xf32>
    %343 = vector.shape_cast %342 : vector<1x8x8x1xf32> to vector<8x8x1xf32>
    %344 = vector.shape_cast %335 : vector<8x128xf32> to vector<1x8x128xf32>
    %345 = vector.broadcast %343 : vector<8x8x1xf32> to vector<8x8x128xf32>
    %346 = vector.broadcast %344 : vector<1x8x128xf32> to vector<8x8x128xf32>
    %347 = arith.mulf %345, %346 : vector<8x8x128xf32>
    %c7_144 = arith.constant 7 : index
    %c0_145 = arith.constant 0 : index
    %c0_146 = arith.constant 0 : index
    %c0_147 = arith.constant 0 : index
    %348 = vector.load %arg5[%c7_144, %c0_145, %c0_146, %c0_147] : memref<8x8x8x1xf32, #tpu.memory_space<vmem>>, vector<1x8x8x1xf32>
    %349 = vector.shape_cast %348 : vector<1x8x8x1xf32> to vector<8x8x1xf32>
    %350 = vector.shape_cast %336 : vector<8x128xf32> to vector<8x1x128xf32>
    %351 = vector.broadcast %349 : vector<8x8x1xf32> to vector<8x8x128xf32>
    %352 = vector.broadcast %350 : vector<8x1x128xf32> to vector<8x8x128xf32>
    %353 = arith.mulf %351, %352 : vector<8x8x128xf32>
    %354 = arith.addf %347, %353 : vector<8x8x128xf32>
    %355 = arith.addf %321, %341 : vector<8x8x128xf32>
    %356 = arith.addf %334, %354 : vector<8x8x128xf32>
    %c0_148 = arith.constant 0 : index
    %c3_149 = arith.constant 3 : index
    %357 = memref.load %arg7[%c0_148, %c3_149] : memref<2x4xf32, #tpu.memory_space<smem>>
    %358 = vector.broadcast %357 : f32 to vector<8x8x128xf32>
    %359 = arith.mulf %358, %355 : vector<8x8x128xf32>
    %360 = arith.addf %359, %356 : vector<8x8x128xf32>
    %c1_150 = arith.constant 1 : index
    %c3_151 = arith.constant 3 : index
    %361 = memref.load %arg7[%c1_150, %c3_151] : memref<2x4xf32, #tpu.memory_space<smem>>
    %362 = vector.broadcast %361 : f32 to vector<8x8x128xf32>
    %363 = arith.addf %360, %362 : vector<8x8x128xf32>
    %cst_152 = arith.constant dense<0xFF800000> : vector<8x128xf32>
    %364 = vector.multi_reduction <maximumf>, %363, %cst_152 [0] : vector<8x8x128xf32> to vector<8x128xf32>
    %365 = vector.shape_cast %364 : vector<8x128xf32> to vector<1x8x128xf32>
    %366 = vector.broadcast %365 : vector<1x8x128xf32> to vector<8x8x128xf32>
    %367 = arith.subf %363, %366 : vector<8x8x128xf32>
    %368 = math.exp %367 : vector<8x8x128xf32>
    %cst_153 = arith.constant dense<0.000000e+00> : vector<8x128xf32>
    %369 = vector.multi_reduction <add>, %368, %cst_153 [0] : vector<8x8x128xf32> to vector<8x128xf32>
    %370 = vector.shape_cast %369 : vector<8x128xf32> to vector<1x8x128xf32>
    %371 = tpu.reciprocal %370 {approx = true} : vector<1x8x128xf32> -> vector<1x8x128xf32>
    %372 = vector.broadcast %371 : vector<1x8x128xf32> to vector<8x8x128xf32>
    %373 = arith.mulf %368, %372 : vector<8x8x128xf32>
    %374 = vector.extract_strided_slice %5 {offsets = [224, 0], sizes = [8, 128], strides = [1, 1]} : vector<256x128xf32> to vector<8x128xf32>
    %375 = vector.shape_cast %374 : vector<8x128xf32> to vector<8x1x128xf32>
    %376 = vector.broadcast %375 : vector<8x1x128xf32> to vector<8x8x128xf32>
    %377 = arith.mulf %373, %376 : vector<8x8x128xf32>
    %cst_154 = arith.constant dense<0.000000e+00> : vector<8x128xf32>
    %378 = vector.multi_reduction <add>, %377, %cst_154 [0] : vector<8x8x128xf32> to vector<8x128xf32>
    %c12 = arith.constant 12 : index
    %c0_155 = arith.constant 0 : index
    %c0_156 = arith.constant 0 : index
    %c0_157 = arith.constant 0 : index
    %379 = vector.load %arg6[%c12, %c0_155, %c0_156, %c0_157] : memref<16x8x8x1xf32, #tpu.memory_space<vmem>>, vector<1x8x8x1xf32>
    %380 = vector.shape_cast %379 : vector<1x8x8x1xf32> to vector<8x8x1xf32>
    %381 = vector.broadcast %380 : vector<8x8x1xf32> to vector<8x8x128xf32>
    %382 = arith.mulf %373, %381 : vector<8x8x128xf32>
    %cst_158 = arith.constant dense<0.000000e+00> : vector<8x128xf32>
    %383 = vector.multi_reduction <add>, %382, %cst_158 [0] : vector<8x8x128xf32> to vector<8x128xf32>
    %384 = arith.addf %378, %383 : vector<8x128xf32>
    %385 = vector.extract_strided_slice %5 {offsets = [232, 0], sizes = [8, 128], strides = [1, 1]} : vector<256x128xf32> to vector<8x128xf32>
    %386 = vector.shape_cast %385 : vector<8x128xf32> to vector<8x1x128xf32>
    %387 = vector.broadcast %386 : vector<8x1x128xf32> to vector<8x8x128xf32>
    %388 = arith.mulf %373, %387 : vector<8x8x128xf32>
    %cst_159 = arith.constant dense<0.000000e+00> : vector<8x128xf32>
    %389 = vector.multi_reduction <add>, %388, %cst_159 [0] : vector<8x8x128xf32> to vector<8x128xf32>
    %c13 = arith.constant 13 : index
    %c0_160 = arith.constant 0 : index
    %c0_161 = arith.constant 0 : index
    %c0_162 = arith.constant 0 : index
    %390 = vector.load %arg6[%c13, %c0_160, %c0_161, %c0_162] : memref<16x8x8x1xf32, #tpu.memory_space<vmem>>, vector<1x8x8x1xf32>
    %391 = vector.shape_cast %390 : vector<1x8x8x1xf32> to vector<8x8x1xf32>
    %392 = vector.broadcast %391 : vector<8x8x1xf32> to vector<8x8x128xf32>
    %393 = arith.mulf %373, %392 : vector<8x8x128xf32>
    %cst_163 = arith.constant dense<0.000000e+00> : vector<8x128xf32>
    %394 = vector.multi_reduction <add>, %393, %cst_163 [0] : vector<8x8x128xf32> to vector<8x128xf32>
    %395 = arith.addf %389, %394 : vector<8x128xf32>
    %396 = vector.extract_strided_slice %5 {offsets = [240, 0], sizes = [8, 128], strides = [1, 1]} : vector<256x128xf32> to vector<8x128xf32>
    %397 = vector.shape_cast %396 : vector<8x128xf32> to vector<8x1x128xf32>
    %398 = vector.broadcast %397 : vector<8x1x128xf32> to vector<8x8x128xf32>
    %399 = arith.mulf %373, %398 : vector<8x8x128xf32>
    %cst_164 = arith.constant dense<0.000000e+00> : vector<8x128xf32>
    %400 = vector.multi_reduction <add>, %399, %cst_164 [0] : vector<8x8x128xf32> to vector<8x128xf32>
    %c14 = arith.constant 14 : index
    %c0_165 = arith.constant 0 : index
    %c0_166 = arith.constant 0 : index
    %c0_167 = arith.constant 0 : index
    %401 = vector.load %arg6[%c14, %c0_165, %c0_166, %c0_167] : memref<16x8x8x1xf32, #tpu.memory_space<vmem>>, vector<1x8x8x1xf32>
    %402 = vector.shape_cast %401 : vector<1x8x8x1xf32> to vector<8x8x1xf32>
    %403 = vector.broadcast %402 : vector<8x8x1xf32> to vector<8x8x128xf32>
    %404 = arith.mulf %373, %403 : vector<8x8x128xf32>
    %cst_168 = arith.constant dense<0.000000e+00> : vector<8x128xf32>
    %405 = vector.multi_reduction <add>, %404, %cst_168 [0] : vector<8x8x128xf32> to vector<8x128xf32>
    %406 = arith.addf %400, %405 : vector<8x128xf32>
    %407 = vector.extract_strided_slice %5 {offsets = [248, 0], sizes = [8, 128], strides = [1, 1]} : vector<256x128xf32> to vector<8x128xf32>
    %408 = vector.shape_cast %407 : vector<8x128xf32> to vector<8x1x128xf32>
    %409 = vector.broadcast %408 : vector<8x1x128xf32> to vector<8x8x128xf32>
    %410 = arith.mulf %373, %409 : vector<8x8x128xf32>
    %cst_169 = arith.constant dense<0.000000e+00> : vector<8x128xf32>
    %411 = vector.multi_reduction <add>, %410, %cst_169 [0] : vector<8x8x128xf32> to vector<8x128xf32>
    %c15 = arith.constant 15 : index
    %c0_170 = arith.constant 0 : index
    %c0_171 = arith.constant 0 : index
    %c0_172 = arith.constant 0 : index
    %412 = vector.load %arg6[%c15, %c0_170, %c0_171, %c0_172] : memref<16x8x8x1xf32, #tpu.memory_space<vmem>>, vector<1x8x8x1xf32>
    %413 = vector.shape_cast %412 : vector<1x8x8x1xf32> to vector<8x8x1xf32>
    %414 = vector.broadcast %413 : vector<8x8x1xf32> to vector<8x8x128xf32>
    %415 = arith.mulf %373, %414 : vector<8x8x128xf32>
    %cst_173 = arith.constant dense<0.000000e+00> : vector<8x128xf32>
    %416 = vector.multi_reduction <add>, %415, %cst_173 [0] : vector<8x8x128xf32> to vector<8x128xf32>
    %417 = arith.addf %411, %416 : vector<8x128xf32>
    %418 = vector.shape_cast %75 : vector<8x128xf32> to vector<1x8x128xf32>
    %419 = vector.shape_cast %86 : vector<8x128xf32> to vector<1x8x128xf32>
    %420 = vector.shape_cast %97 : vector<8x128xf32> to vector<1x8x128xf32>
    %421 = vector.shape_cast %108 : vector<8x128xf32> to vector<1x8x128xf32>
    %422 = vector.shape_cast %178 : vector<8x128xf32> to vector<1x8x128xf32>
    %423 = vector.shape_cast %189 : vector<8x128xf32> to vector<1x8x128xf32>
    %424 = vector.shape_cast %200 : vector<8x128xf32> to vector<1x8x128xf32>
    %425 = vector.shape_cast %211 : vector<8x128xf32> to vector<1x8x128xf32>
    %426 = vector.shape_cast %281 : vector<8x128xf32> to vector<1x8x128xf32>
    %427 = vector.shape_cast %292 : vector<8x128xf32> to vector<1x8x128xf32>
    %428 = vector.shape_cast %303 : vector<8x128xf32> to vector<1x8x128xf32>
    %429 = vector.shape_cast %314 : vector<8x128xf32> to vector<1x8x128xf32>
    %430 = vector.shape_cast %384 : vector<8x128xf32> to vector<1x8x128xf32>
    %431 = vector.shape_cast %395 : vector<8x128xf32> to vector<1x8x128xf32>
    %432 = vector.shape_cast %406 : vector<8x128xf32> to vector<1x8x128xf32>
    %433 = vector.shape_cast %417 : vector<8x128xf32> to vector<1x8x128xf32>
    %434 = tpu.concatenate %418, %419, %420, %421, %422, %423, %424, %425, %426, %427, %428, %429, %430, %431, %432, %433 in 0 : vector<1x8x128xf32>, vector<1x8x128xf32>, vector<1x8x128xf32>, vector<1x8x128xf32>, vector<1x8x128xf32>, vector<1x8x128xf32>, vector<1x8x128xf32>, vector<1x8x128xf32>, vector<1x8x128xf32>, vector<1x8x128xf32>, vector<1x8x128xf32>, vector<1x8x128xf32>, vector<1x8x128xf32>, vector<1x8x128xf32>, vector<1x8x128xf32>, vector<1x8x128xf32> -> vector<16x8x128xf32>
    %c0_174 = arith.constant 0 : index
    %c0_175 = arith.constant 0 : index
    %c0_176 = arith.constant 0 : index
    %435 = vector.load %arg8[%c0_174, %c0_175, %c0_176] : memref<16x1x1xf32, #tpu.memory_space<vmem>>, vector<16x1x1xf32>
    %436 = vector.broadcast %435 : vector<16x1x1xf32> to vector<16x8x128xf32>
    %437 = arith.addf %434, %436 : vector<16x8x128xf32>
    %c0_177 = arith.constant 0 : index
    %c0_178 = arith.constant 0 : index
    %c0_179 = arith.constant 0 : index
    %438 = vector.load %arg9[%c0_177, %c0_178, %c0_179] : memref<16x8x128xf32, #tpu.memory_space<vmem>>, vector<16x8x128xf32>
    tpu.vector_store %arg9[%c0_177, %c0_178, %c0_179], %437 {strides = array<i32>} : memref<16x8x128xf32, #tpu.memory_space<vmem>>, vector<16x8x128xf32>,
    return
  }
  func.func @transform_0(%arg0: i32) -> (i32, i32) {
    %c0_i32 = arith.constant 0 : i32
    %c0_i32_0 = arith.constant 0 : i32
    return %c0_i32, %arg0 : i32, i32
  }
  func.func @transform_1(%arg0: i32) -> (i32, i32) {
    %c0_i32 = arith.constant 0 : i32
    %c0_i32_0 = arith.constant 0 : i32
    %c0_i32_1 = arith.constant 0 : i32
    return %c0_i32, %c0_i32_0 : i32, i32
  }
  func.func @transform_2(%arg0: i32) -> (i32, i32) {
    %c0_i32 = arith.constant 0 : i32
    %c0_i32_0 = arith.constant 0 : i32
    %c0_i32_1 = arith.constant 0 : i32
    return %c0_i32, %c0_i32_0 : i32, i32
  }
  func.func @transform_3(%arg0: i32) -> (i32, i32, i32, i32) {
    %c0_i32 = arith.constant 0 : i32
    %c0_i32_0 = arith.constant 0 : i32
    %c0_i32_1 = arith.constant 0 : i32
    %c0_i32_2 = arith.constant 0 : i32
    %c0_i32_3 = arith.constant 0 : i32
    return %c0_i32, %c0_i32_0, %c0_i32_1, %c0_i32_2 : i32, i32, i32, i32
  }
  func.func @transform_4(%arg0: i32) -> (i32, i32, i32, i32) {
    %c0_i32 = arith.constant 0 : i32
    %c0_i32_0 = arith.constant 0 : i32
    %c0_i32_1 = arith.constant 0 : i32
    %c0_i32_2 = arith.constant 0 : i32
    %c0_i32_3 = arith.constant 0 : i32
    return %c0_i32, %c0_i32_0, %c0_i32_1, %c0_i32_2 : i32, i32, i32, i32
  }
  func.func @transform_5(%arg0: i32) -> (i32, i32, i32, i32) {
    %c0_i32 = arith.constant 0 : i32
    %c0_i32_0 = arith.constant 0 : i32
    %c0_i32_1 = arith.constant 0 : i32
    %c0_i32_2 = arith.constant 0 : i32
    %c0_i32_3 = arith.constant 0 : i32
    return %c0_i32, %c0_i32_0, %c0_i32_1, %c0_i32_2 : i32, i32, i32, i32
  }
  func.func @transform_6(%arg0: i32) -> (i32, i32) {
    %c0_i32 = arith.constant 0 : i32
    %c0_i32_0 = arith.constant 0 : i32
    %c0_i32_1 = arith.constant 0 : i32
    return %c0_i32, %c0_i32_0 : i32, i32
  }
  func.func @transform_7(%arg0: i32) -> (i32, i32, i32) {
    %c0_i32 = arith.constant 0 : i32
    %c0_i32_0 = arith.constant 0 : i32
    %c0_i32_1 = arith.constant 0 : i32
    %c0_i32_2 = arith.constant 0 : i32
    return %c0_i32, %c0_i32_0, %c0_i32_1 : i32, i32, i32
  }
  func.func @transform_8(%arg0: i32) -> (i32, i32, i32) {
    %c0_i32 = arith.constant 0 : i32
    %c0_i32_0 = arith.constant 0 : i32
    %c0_i32_1 = arith.constant 0 : i32
    return %c0_i32, %c0_i32_0, %arg0 : i32, i32, i32
  }
}

</mosaic_0001>

<bundles_post_ra>
// kernel: tpu_custom_call.1
= control target key start
LH: loop header
LB: loop body
LE: loop exit
PB: predicated region body
PF: predicated region fallthrough
CT: control target
= control target key end

     0   :  { %13 = vsyncpa [#allocation5], 0  ;;  %s11348_s0 = inlined_call_operand.vmem [shape: f32[128,256], index: 0, kind: input, shape index: {}]   ;;  %s11349_s1 = inlined_call_operand.vmem [shape: f32[256,128], index: 1, kind: input, shape index: {}]   ;;  %s11350_s2 = inlined_call_operand.vmem [shape: f32[256,1], index: 2, kind: input, shape index: {}]   ;;  %s11351_s3 = inlined_call_operand.vmem [shape: f32[8,8,8,1], index: 3, kind: input, shape index: {}]   ;;  %s11352_s4 = inlined_call_operand.vmem [shape: f32[8,8,8,1], index: 4, kind: input, shape index: {}]   ;;  %s11353_s5 = inlined_call_operand.vmem [shape: f32[16,8,8,1], index: 5, kind: input, shape index: {}]   ;;  %s11354_s6 = inlined_call_operand.vmem [shape: f32[2,4], index: 6, kind: input, shape index: {}]   ;;  %s11355_s7 = inlined_call_operand.vmem [shape: f32[16,1,1], index: 7, kind: input, shape index: {}]   ;;  %s11356_s8 = inlined_call_operand.hbm [shape: f32[16,8,256], index: 8, kind: output, shape index: {}]  }
   0x1   :  { %14 = vsyncpa [#allocation4], 0 }
   0x2   :  { %16 = vsyncpa [#allocation4 + $0x1], 0  ;;  %s6712_s27 = smov 0   ;;  %s6714_s28 = smov 0  }
   0x3   :  { %s6716_s29 = smov 0   ;;  %s6718_s30 = smov 0  }
   0x4 LB: > { %s6733_s9 = sadd.s32 4294967295, %s6658_s30   ;;  %s6003_s10 = sadd.s32 4294967294, %s6658_s30   ;;  %s6658_s30 = sphi %s6718_s30, %s12212_s30   ;;  %s6654_s29 = sphi %s6716_s29, %s12211_s29   ;;  %s6650_s28 = sphi %s6714_s28, %s12210_s28   ;;  %s6646_s27 = sphi %s6712_s27, %s12209_s27  }
   0x5   : > { %s6737_s11 = sadd.s32 1, %s6658_s30   ;;  %s29_s12 = sadd.s32 1, %s6654_s29 }
   0x6   : > { %s26_s13 = ssub.s32 %s6658_s30, %s6737_s11  ;;  %p36_p0 = scmp.ne.s32.totalorder %s6654_s29, %s6650_s28 }
   0x7   : > { %p27_p1 = scmp.eq.s32.totalorder %s26_s13, 0  ;;  %p37_p2 = scmp.eq.s32.totalorder %s6658_s30, 0 }
   0x8   : > { %p213_p3 = scmp.eq.s32.totalorder %s6733_s9, 1  ;;  %p218_p4 = scmp.ne.s32.totalorder %s6650_s28, %s6646_s27 }
   0x9   : > { %s6749_s14 = scalar_select %p27_p1, %s6654_s29, %s29_s12  }
   0xa   : > { %p6751_p5 = por %p37_p2, %p36_p0  ;;  %p6755_p6 = por %p213_p3, %p36_p0 }
   0xb   : > { %p219_p7 = scmp.eq.s32.totalorder %s6003_s10, 1  ;;  %p6004_p8 = scmp.ge.s32.totalorder %s6658_s30, 1 }
   0xc   : > { %s11489_s16 = scalar_select %p6755_p6, 1, 0 }
   0xd   : > { %p226_p9 = scmp.lt.s32.totalorder %s6658_s30, 3  ;;  %p6761_p10 = por %p219_p7, %p218_p4 }
   0xe   : > { %p6462_p11 = scmp.eq.s32.totalorder %s6733_s9, 0  ;;  %s254_s21 = sshll.u32 %s11354_s6, 4  ;;  %s255_s21 = int_to_ptr.vmem [resolvable:$true] %s254_s21 }
   0xf   : > { %s11490_s17 = scalar_select %p6761_p10, 1, 0 }
  0x10   : > { %p6766_p12 = pnand %p6004_p8, %p226_p9  ;;  %s6577_s22 = scalar_lea.vmem %s255_s21, 32 }
  0x11   : > { %p6578_p1 = scmp.ne.s32.totalorder %s255_s21, %s6577_s22  ;;  %p6585_p7 = scmp.lt.s32.totalorder %s255_s21, %s255_s21 }
  0x12   : > { %p6454_p13 = pneg %p6766_p12  ;;  %p6586_p8 = scmp.lt.s32.totalorder %s6577_s22, %s6577_s22 }
  0x14   : > { %p6455_p0 = pnand %p6462_p11, %p6454_p13  ;;  %p6587_p9 = por %p6586_p8, %p6585_p7 }
  0x16   : > { %p6579_p2 = pneg %p6455_p0 }
  0x18   : > { %p6580_p3 = pnand %p6579_p2, %p6578_p1 }
  0x1a   : > { %p6581_p4 = pneg %p6580_p3 }
  0x1c   : > { %p6588_p10 = pnand %p6587_p9, %p6581_p4 }
  0x1e   : > { %6591 = shalt.err (!%p6588_p10)
}
  0x1f   : > { %s6660_s23 = smov [#allocation3]   ;;  %p6006_p6 = scmp.ge.s32.totalorder %s6658_s30, 2 }
  0x20   : > { %6457 = dma.vmem_to_smem (!%p6455_p0), %s255_s21, 32, %s6660_s23, [#allocation5]  }
  0x21   : > { %264 = sbr.rel (%p6006_p6) target bundleno = 52 (0x34), region = 44 }
  0x28   : > { %267 = sbr.rel (!%p6751_p5) target bundleno = 52 (0x34), region = 48  ;;  %s269_s24 = sand.u32 (%p6751_p5), 1, %s6654_s29  }
  0x29   : > { %s6008_s25 = sshll.u32 (%p6751_p5), %s6658_s30, 3  ;;  %s6007_s26 = sshll.u32 (%p6751_p5), %s269_s24, 7 }
  0x2a   : > { %s6787_s13 = scalar_lea.vmem (%p6751_p5), %s11348_s0, %s6008_s25  ;;  %s271_s15 = scalar_lea.vmem (%p6751_p5), [#allocation2], %s6007_s26 }
  0x2b   : > { %v331_v0 = vld [vmem:[%s6787_s13] sm:$0xff] (%p6751_p5)  ;;  %v333_v1 = vld [vmem:[%s6787_s13 + $0x10] sm:$0xff] (%p6751_p5) }
  0x2c   : > { %v335_v2 = vld [vmem:[%s6787_s13 + $0x20] sm:$0xff] (%p6751_p5)  ;;  %332 = vst [vmem:[%s271_s15] sm:$0xff] (%p6751_p5), %v331_v0  ;;  %334 = vst [vmem:[%s271_s15 + $0x8] sm:$0xff] (%p6751_p5), %v333_v1  ;;  %v337_v3 = vld [vmem:[%s6787_s13 + $0x30] sm:$0xff] (%p6751_p5) }
  0x2d   : > { %336 = vst [vmem:[%s271_s15 + $0x10] sm:$0xff] (%p6751_p5), %v335_v2  ;;  %v339_v4 = vld [vmem:[%s6787_s13 + $0x40] sm:$0xff] (%p6751_p5)  ;;  %v341_v5 = vld [vmem:[%s6787_s13 + $0x50] sm:$0xff] (%p6751_p5)  ;;  %338 = vst [vmem:[%s271_s15 + $0x18] sm:$0xff] (%p6751_p5), %v337_v3 }
  0x2e   : > { %340 = vst [vmem:[%s271_s15 + $0x20] sm:$0xff] (%p6751_p5), %v339_v4  ;;  %342 = vst [vmem:[%s271_s15 + $0x28] sm:$0xff] (%p6751_p5), %v341_v5  ;;  %v343_v6 = vld [vmem:[%s6787_s13 + $0x60] sm:$0xff] (%p6751_p5)  ;;  %v345_v7 = vld [vmem:[%s6787_s13 + $0x70] sm:$0xff] (%p6751_p5) }
  0x2f   : > { %v347_v8 = vld [vmem:[%s6787_s13 + $0x80] sm:$0xff]  ;;  %344 = vst [vmem:[%s271_s15 + $0x30] sm:$0xff] %v343_v6  ;;  %346 = vst [vmem:[%s271_s15 + $0x38] sm:$0xff] %v345_v7  ;;  %v349_v9 = vld [vmem:[%s6787_s13 + $0x90] sm:$0xff] }
  0x30   : > { %348 = vst [vmem:[%s271_s15 + $0x40] sm:$0xff] %v347_v8  ;;  %v351_v10 = vld [vmem:[%s6787_s13 + $0xa0] sm:$0xff]  ;;  %v353_v11 = vld [vmem:[%s6787_s13 + $0xb0] sm:$0xff]  ;;  %350 = vst [vmem:[%s271_s15 + $0x48] sm:$0xff] %v349_v9 }
  0x31   : > { %352 = vst [vmem:[%s271_s15 + $0x50] sm:$0xff] %v351_v10  ;;  %354 = vst [vmem:[%s271_s15 + $0x58] sm:$0xff] %v353_v11  ;;  %v355_v12 = vld [vmem:[%s6787_s13 + $0xc0] sm:$0xff]  ;;  %v357_v13 = vld [vmem:[%s6787_s13 + $0xd0] sm:$0xff] }
  0x32   : > { %v359_v14 = vld [vmem:[%s6787_s13 + $0xe0] sm:$0xff]  ;;  %356 = vst [vmem:[%s271_s15 + $0x60] sm:$0xff] %v355_v12  ;;  %358 = vst [vmem:[%s271_s15 + $0x68] sm:$0xff] %v357_v13  ;;  %v361_v15 = vld [vmem:[%s6787_s13 + $0xf0] sm:$0xff] }
  0x33   : > { %360 = vst [vmem:[%s271_s15 + $0x70] sm:$0xff] %v359_v14  ;;  %362 = vst [vmem:[%s271_s15 + $0x78] sm:$0xff] %v361_v15 }
  0x34 PF: > { %371 = sbr.rel (%p6766_p12) target bundleno = 851 (0x353), region = 86 }
  0x3b   : > { %s374_s19 = sand.u32 1, %s6650_s28  }
  0x3c   : > { %s6810_s20 = sshll.u32 %s374_s19, 7 }
  0x3d   : > { %s6813_s21 = scalar_lea.vmem [#allocation2], %s6810_s20 }
  0x3e   : > { %6637 = dma.done.wait (%p6462_p11), [#allocation5], 32  }
  0x3f   : > { %6639 = vsyncadd (%p6462_p11), [#allocation5], 4294967264 }
  0x40   : > { %384 = sfence }
  0x41   : > { %v462_v16 = vld [vmem:[%s11350_s2 + $0x10] sm:$0xff]  ;;  %v460_v17 = vld [vmem:[%s11350_s2] sm:$0xff]  ;;  %v6661_v19 = vmov 0   ;;  %v445_v20 = vld [vmem:[%s6813_s21 + $0x8] sm:$0xff]  ;;  %s1331_s10 = sld [smem:[#allocation3]]  ;;  %s8688_s22 = sld [smem:[#allocation3 + $0x81]] }
  0x42   : > { %v444_v18 = vld [vmem:[%s6813_s21] sm:$0xff]  ;;  %6504 = vset.pattern.permute.xlu1 %v6661_v19  ;;  %6503 = vset.pattern.permute.xlu0 %v6661_v19  ;;  %v446_v22 = vld [vmem:[%s6813_s21 + $0x10] sm:$0xff]  ;;  %v447_v23 = vld [vmem:[%s6813_s21 + $0x18] sm:$0xff]  ;;  %s7627_s12 = sld [smem:[#allocation3 + $0x80]]  ;;  %s9297_s15 = sld [smem:[#allocation3 + $0x2]] }
  0x43   : > { %504 = vperm.xlu1 %6504, %v462_v16   ;;  %494 = vperm.xlu0 %6503, %v460_v17   ;;  %v6400_v21 = vpack.c.bf16 %v445_v20, %v444_v18  ;;  %v463_v24 = vld [vmem:[%s11350_s2 + $0x18] sm:$0xff]  ;;  %v461_v25 = vld [vmem:[%s11350_s2 + $0x8] sm:$0xff]  ;;  %v6404_v26 = vpack.c.bf16 %v447_v23, %v446_v22  ;;  %v448_v27 = vld [vmem:[%s6813_s21 + $0x20] sm:$0xff]  ;;  %s9326_s18 = sld [smem:[#allocation3 + $0x82]]  ;;  %s11166_s23 = scalar_lea.vmem [#allocation6], %s6810_s20 }
  0x44   : > { %v449_v28 = vld [vmem:[%s6813_s21 + $0x28] sm:$0xff]  ;;  %v464_v30 = vld [vmem:[%s11350_s2 + $0x20] sm:$0xff]  ;;  %v450_v32 = vld [vmem:[%s6813_s21 + $0x30] sm:$0xff]  ;;  %s6269_s20 = sshll.u32 %s6733_s9, 7  ;;  %p12207_p10 = scmp.ne.s32.totalorder %s11489_s16, 0 }
  0x45   : > { %6401 = vmatprep.subr.bf16.mxu0 %v6400_v21  ;;  %6432 = vmatprep.subr.bf16.mxu1 %v6400_v21  ;;  %v465_v29 = vld [vmem:[%s11350_s2 + $0x28] sm:$0xff]  ;;  %v6408_v31 = vpack.c.bf16 %v449_v28, %v448_v27  ;;  %v451_v33 = vld [vmem:[%s6813_s21 + $0x38] sm:$0xff]  ;;  %v466_v35 = vld [vmem:[%s11350_s2 + $0x30] sm:$0xff]  ;;  %s11299_s26 = scalar_lea.hbm %s11356_s8, %s6269_s20 }
  0x46   : > { %6403 = vmatpush3.bf16.msra.mxu0 %v6400_v21  ;;  %6440 = vmatpush3.bf16.msra.mxu1 %v6400_v21  ;;  %v467_v34 = vld [vmem:[%s11350_s2 + $0x38] sm:$0xff]  ;;  %v6412_v36 = vpack.c.bf16 %v451_v33, %v450_v32  ;;  %v412_v37 = vld [vmem:[%s11349_s1] sm:$0xff]  ;;  %v453_v40 = vld [vmem:[%s6813_s21 + $0x48] sm:$0xff] }
  0x47   : > { %509 = vperm.xlu1 %6504, %v463_v24   ;;  %499 = vperm.xlu0 %6503, %v461_v25   ;;  %v428_v38 = vld [vmem:[%s11349_s1 + $0x80] sm:$0xff]  ;;  %v469_v41 = vld [vmem:[%s11350_s2 + $0x48] sm:$0xff]  ;;  %v454_v44 = vld [vmem:[%s6813_s21 + $0x50] sm:$0xff] }
  0x48   : > { %6405 = vmatprep.subr.bf16.mxu0 %v6404_v26  ;;  %6433 = vmatprep.subr.bf16.mxu1 %v6404_v26  ;;  %v452_v39 = vld [vmem:[%s6813_s21 + $0x40] sm:$0xff]  ;;  %v455_v45 = vld [vmem:[%s6813_s21 + $0x58] sm:$0xff]  ;;  %v470_v47 = vld [vmem:[%s11350_s2 + $0x50] sm:$0xff] }
  0x49   : > { %6352 = vmatprep.mubr.f32.mxu0 %v412_v37  ;;  %6376 = vmatprep.mubr.f32.mxu1 %v428_v38  ;;  %v468_v42 = vld [vmem:[%s11350_s2 + $0x40] sm:$0xff]  ;;  %v6416_v43 = vpack.c.bf16 %v453_v40, %v452_v39  ;;  %v471_v46 = vld [vmem:[%s11350_s2 + $0x58] sm:$0xff]  ;;  %v6420_v48 = vpack.c.bf16 %v455_v45, %v454_v44  ;;  %v457_v50 = vld [vmem:[%s6813_s21 + $0x68] sm:$0xff] }
  0x4a   : > { %6407 = vmatpush3.bf16.msra.mxu0 %v6404_v26  ;;  %6441 = vmatpush3.bf16.msra.mxu1 %v6404_v26  ;;  %v456_v49 = vld [vmem:[%s6813_s21 + $0x60] sm:$0xff]  ;;  %v473_v51 = vld [vmem:[%s11350_s2 + $0x68] sm:$0xff]  ;;  %v458_v54 = vld [vmem:[%s6813_s21 + $0x70] sm:$0xff] }
  0x4b   : > { %519 = vperm.xlu1 %6504, %v465_v29   ;;  %514 = vperm.xlu0 %6503, %v464_v30   ;;  %v472_v52 = vld [vmem:[%s11350_s2 + $0x60] sm:$0xff]  ;;  %v6424_v53 = vpack.c.bf16 %v457_v50, %v456_v49  ;;  %v459_v55 = vld [vmem:[%s6813_s21 + $0x78] sm:$0xff]  ;;  %v474_v57 = vld [vmem:[%s11350_s2 + $0x70] sm:$0xff]  ;;  %s11306_s21 = scalar_lea.sflag [#allocation4], %s374_s19 }
  0x4c   : > { %6409 = vmatprep.subr.bf16.mxu0 %v6408_v31  ;;  %6434 = vmatprep.subr.bf16.mxu1 %v6408_v31  ;;  %v475_v56 = vld [vmem:[%s11350_s2 + $0x78] sm:$0xff]  ;;  %v6428_v58 = vpack.c.bf16 %v459_v55, %v458_v54  ;;  %v477_v59 = vld [vmem:[%s11350_s2 + $0x88] sm:$0xff]  ;;  %v476_v60 = vld [vmem:[%s11350_s2 + $0x80] sm:$0xff] }
  0x4d   : > { %v413_v61 = vld [vmem:[%s11349_s1 + $0x8] sm:$0xff]  ;;  %v414_v63 = vld [vmem:[%s11349_s1 + $0x10] sm:$0xff]  ;;  %v479_v1 = vld [vmem:[%s11350_s2 + $0x98] sm:$0xff] }
  0x4e   : > { %6411 = vmatpush3.bf16.msra.mxu0 %v6408_v31  ;;  %6442 = vmatpush3.bf16.msra.mxu1 %v6408_v31  ;;  %v429_v62 = vld [vmem:[%s11349_s1 + $0x88] sm:$0xff]  ;;  %v430_v0 = vld [vmem:[%s11349_s1 + $0x90] sm:$0xff]  ;;  %v415_v3 = vld [vmem:[%s11349_s1 + $0x18] sm:$0xff] }
  0x4f   : > { %529 = vperm.xlu1 %6504, %v467_v34   ;;  %524 = vperm.xlu0 %6503, %v466_v35   ;;  %v478_v2 = vld [vmem:[%s11350_s2 + $0x90] sm:$0xff]  ;;  %v431_v4 = vld [vmem:[%s11349_s1 + $0x98] sm:$0xff]  ;;  %v416_v5 = vld [vmem:[%s11349_s1 + $0x20] sm:$0xff] }
  0x50   : > { %6413 = vmatprep.subr.bf16.mxu0 %v6412_v36  ;;  %6435 = vmatprep.subr.bf16.mxu1 %v6412_v36  ;;  %v432_v6 = vld [vmem:[%s11349_s1 + $0xa0] sm:$0xff]  ;;  %v481_v7 = vld [vmem:[%s11350_s2 + $0xa8] sm:$0xff]  ;;  %v418_v11 = vld [vmem:[%s11349_s1 + $0x30] sm:$0xff] }
  0x51   : > { %v480_v8 = vld [vmem:[%s11350_s2 + $0xa0] sm:$0xff]  ;;  %v417_v9 = vld [vmem:[%s11349_s1 + $0x28] sm:$0xff]  ;;  %v434_v12 = vld [vmem:[%s11349_s1 + $0xb0] sm:$0xff] }
  0x52   : > { %6415 = vmatpush3.bf16.msra.mxu0 %v6412_v36  ;;  %6443 = vmatpush3.bf16.msra.mxu1 %v6412_v36  ;;  %v433_v10 = vld [vmem:[%s11349_s1 + $0xa8] sm:$0xff]  ;;  %v483_v13 = vld [vmem:[%s11350_s2 + $0xb8] sm:$0xff]  ;;  %v482_v14 = vld [vmem:[%s11350_s2 + $0xb0] sm:$0xff] }
  0x53   : > { %539 = vperm.xlu1 %6504, %v469_v41   ;;  %534 = vperm.xlu0 %6503, %v468_v42   ;;  %v419_v15 = vld [vmem:[%s11349_s1 + $0x38] sm:$0xff]  ;;  %v420_v17 = vld [vmem:[%s11349_s1 + $0x40] sm:$0xff]  ;;  %v485_v19 = vld [vmem:[%s11350_s2 + $0xc8] sm:$0xff] }
  0x54   : > { %6417 = vmatprep.subr.bf16.mxu0 %v6416_v43  ;;  %6436 = vmatprep.subr.bf16.mxu1 %v6416_v43  ;;  %v435_v16 = vld [vmem:[%s11349_s1 + $0xb8] sm:$0xff]  ;;  %v436_v18 = vld [vmem:[%s11349_s1 + $0xc0] sm:$0xff]  ;;  %v421_v21 = vld [vmem:[%s11349_s1 + $0x48] sm:$0xff] }
  0x55   : > { %v484_v20 = vld [vmem:[%s11350_s2 + $0xc0] sm:$0xff]  ;;  %v437_v22 = vld [vmem:[%s11349_s1 + $0xc8] sm:$0xff]  ;;  %v422_v23 = vld [vmem:[%s11349_s1 + $0x50] sm:$0xff] }
  0x56   : > { %6419 = vmatpush3.bf16.msra.mxu0 %v6416_v43  ;;  %6444 = vmatpush3.bf16.msra.mxu1 %v6416_v43  ;;  %v438_v24 = vld [vmem:[%s11349_s1 + $0xd0] sm:$0xff]  ;;  %v487_v25 = vld [vmem:[%s11350_s2 + $0xd8] sm:$0xff]  ;;  %v424_v29 = vld [vmem:[%s11349_s1 + $0x60] sm:$0xff] }
  0x57   : > { %549 = vperm.xlu1 %6504, %v471_v46   ;;  %544 = vperm.xlu0 %6503, %v470_v47   ;;  %v486_v26 = vld [vmem:[%s11350_s2 + $0xd0] sm:$0xff]  ;;  %v423_v27 = vld [vmem:[%s11349_s1 + $0x58] sm:$0xff]  ;;  %v440_v30 = vld [vmem:[%s11349_s1 + $0xe0] sm:$0xff] }
  0x58   : > { %6421 = vmatprep.subr.bf16.mxu0 %v6420_v48  ;;  %6437 = vmatprep.subr.bf16.mxu1 %v6420_v48  ;;  %v439_v28 = vld [vmem:[%s11349_s1 + $0xd8] sm:$0xff]  ;;  %v489_v31 = vld [vmem:[%s11350_s2 + $0xe8] sm:$0xff]  ;;  %v488_v32 = vld [vmem:[%s11350_s2 + $0xe0] sm:$0xff] }
  0x59   : > { %v425_v33 = vld [vmem:[%s11349_s1 + $0x68] sm:$0xff]  ;;  %v426_v35 = vld [vmem:[%s11349_s1 + $0x70] sm:$0xff]  ;;  %v491_v37 = vld [vmem:[%s11350_s2 + $0xf8] sm:$0xff] }
  0x5a   : > { %6423 = vmatpush3.bf16.msra.mxu0 %v6420_v48  ;;  %6445 = vmatpush3.bf16.msra.mxu1 %v6420_v48  ;;  %v441_v34 = vld [vmem:[%s11349_s1 + $0xe8] sm:$0xff]  ;;  %v442_v36 = vld [vmem:[%s11349_s1 + $0xf0] sm:$0xff]  ;;  %v427_v39 = vld [vmem:[%s11349_s1 + $0x78] sm:$0xff] }
  0x5b   : > { %559 = vperm.xlu1 %6504, %v473_v51   ;;  %554 = vperm.xlu0 %6503, %v472_v52   ;;  %v490_v38 = vld [vmem:[%s11350_s2 + $0xf0] sm:$0xff]  ;;  %v443_v40 = vld [vmem:[%s11349_s1 + $0xf8] sm:$0xff]  ;;  %v976_v41 = vld [vmem:[%s11351_s3 + $0x8] sm:$0xff] }
  0x5c   : > { %6425 = vmatprep.subr.bf16.mxu0 %v6424_v53  ;;  %6438 = vmatprep.subr.bf16.mxu1 %v6424_v53  ;;  %v975_v42 = vld [vmem:[%s11351_s3] sm:$0xff]  ;;  %v978_v43 = vld [vmem:[%s11351_s3 + $0x18] sm:$0xff]  ;;  %v977_v44 = vld [vmem:[%s11351_s3 + $0x10] sm:$0xff] }
  0x5d   : > { %v980_v45 = vld [vmem:[%s11351_s3 + $0x28] sm:$0xff]  ;;  %v979_v46 = vld [vmem:[%s11351_s3 + $0x20] sm:$0xff]  ;;  %v982_v47 = vld [vmem:[%s11351_s3 + $0x38] sm:$0xff] }
  0x5e   : > { %6427 = vmatpush3.bf16.msra.mxu0 %v6424_v53  ;;  %6446 = vmatpush3.bf16.msra.mxu1 %v6424_v53  ;;  %v981_v48 = vld [vmem:[%s11351_s3 + $0x30] sm:$0xff]  ;;  %v1032_v49 = vld [vmem:[%s11352_s4 + $0x8] sm:$0xff]  ;;  %v1031_v50 = vld [vmem:[%s11352_s4] sm:$0xff] }
  0x5f   : > { %569 = vperm.xlu1 %6504, %v475_v56   ;;  %564 = vperm.xlu0 %6503, %v474_v57   ;;  %v1034_v51 = vld [vmem:[%s11352_s4 + $0x18] sm:$0xff]  ;;  %v1033_v52 = vld [vmem:[%s11352_s4 + $0x10] sm:$0xff]  ;;  %v1036_v53 = vld [vmem:[%s11352_s4 + $0x28] sm:$0xff] }
  0x60   : > { %6429 = vmatprep.subr.bf16.mxu0 %v6428_v58  ;;  %6439 = vmatprep.subr.bf16.mxu1 %v6428_v58  ;;  %v1035_v54 = vld [vmem:[%s11352_s4 + $0x20] sm:$0xff]  ;;  %v1038_v55 = vld [vmem:[%s11352_s4 + $0x38] sm:$0xff]  ;;  %v1037_v56 = vld [vmem:[%s11352_s4 + $0x30] sm:$0xff] }
  0x61   : > { %v6014_v57 = vld [vmem:[%s11351_s3 + $0x48] sm:$0xff] }
  0x62   : > { %6431 = vmatpush3.bf16.msra.mxu0 %v6428_v58  ;;  %6447 = vmatpush3.bf16.msra.mxu1 %v6428_v58  ;;  %v6013_v58 = vld [vmem:[%s11351_s3 + $0x40] sm:$0xff] }
  0x63   : > { %579 = vperm.xlu1 %6504, %v477_v59   ;;  %574 = vperm.xlu0 %6503, %v476_v60   ;;  %v6016_v59 = vld [vmem:[%s11351_s3 + $0x58] sm:$0xff]  ;;  %v6015_v60 = vld [vmem:[%s11351_s3 + $0x50] sm:$0xff] }
  0x65   : > { %6353 = vmatmul.mubr.f32.vlgmr.msra.gmra.mrb[0].mxu0 %v413_v61  ;;  %6377 = vmatmul.mubr.f32.vlgmr.msra.gmra.mrb[0].mxu1 %v429_v62  ;;  %v6018_v61 = vld [vmem:[%s11351_s3 + $0x68] sm:$0xff]  ;;  %v6017_v62 = vld [vmem:[%s11351_s3 + $0x60] sm:$0xff] }
  0x66   : > { %6355 = vmatprep.mubr.f32.mxu0 %v414_v63  ;;  %6379 = vmatprep.mubr.f32.mxu1 %v430_v0  ;;  %v6020_v63 = vld [vmem:[%s11351_s3 + $0x78] sm:$0xff]  ;;  %v6019_v0 = vld [vmem:[%s11351_s3 + $0x70] sm:$0xff] }
  0x67   : > { %589 = vperm.xlu1 %6504, %v479_v1   ;;  %584 = vperm.xlu0 %6503, %v478_v2   ;;  %v6022_v1 = vld [vmem:[%s11352_s4 + $0x48] sm:$0xff]  ;;  %v6021_v2 = vld [vmem:[%s11352_s4 + $0x40] sm:$0xff] }
  0x69   : > { %6356 = vmatmul.mubr.f32.gmra.mrb[2].mxu0 %v415_v3  ;;  %6380 = vmatmul.mubr.f32.gmra.mrb[2].mxu1 %v431_v4  ;;  %v6024_v3 = vld [vmem:[%s11352_s4 + $0x58] sm:$0xff]  ;;  %v6023_v4 = vld [vmem:[%s11352_s4 + $0x50] sm:$0xff] }
  0x6a   : > { %6358 = vmatprep.mubr.f32.mxu0 %v416_v5  ;;  %6382 = vmatprep.mubr.f32.mxu1 %v432_v6  ;;  %v6026_v5 = vld [vmem:[%s11352_s4 + $0x68] sm:$0xff]  ;;  %v6025_v6 = vld [vmem:[%s11352_s4 + $0x60] sm:$0xff] }
  0x6b   : > { %599 = vperm.xlu1 %6504, %v481_v7   ;;  %594 = vperm.xlu0 %6503, %v480_v8   ;;  %v6028_v7 = vld [vmem:[%s11352_s4 + $0x78] sm:$0xff]  ;;  %v6027_v8 = vld [vmem:[%s11352_s4 + $0x70] sm:$0xff] }
  0x6d   : > { %6359 = vmatmul.mubr.f32.gmra.mrb[4].mxu0 %v417_v9  ;;  %6383 = vmatmul.mubr.f32.gmra.mrb[4].mxu1 %v433_v10  ;;  %v1512_v9 = vld [vmem:[%s11353_s5 + $0x8] sm:$0xff]  ;;  %v1511_v10 = vld [vmem:[%s11353_s5] sm:$0xff] }
  0x6e   : > { %6361 = vmatprep.mubr.f32.mxu0 %v418_v11  ;;  %6385 = vmatprep.mubr.f32.mxu1 %v434_v12 }
  0x6f   : > { %609 = vperm.xlu1 %6504, %v483_v13   ;;  %604 = vperm.xlu0 %6503, %v482_v14   ;;  %v1514_v13 = vld [vmem:[%s11353_s5 + $0x18] sm:$0xff]  ;;  %v1513_v14 = vld [vmem:[%s11353_s5 + $0x10] sm:$0xff] }
  0x71   : > { %6362 = vmatmul.mubr.f32.gmra.mrb[6].mxu0 %v419_v15  ;;  %6386 = vmatmul.mubr.f32.gmra.mrb[6].mxu1 %v435_v16 }
  0x72   : > { %6364 = vmatprep.mubr.f32.mxu0 %v420_v17  ;;  %6388 = vmatprep.mubr.f32.mxu1 %v436_v18  ;;  %v1516_v17 = vld [vmem:[%s11353_s5 + $0x28] sm:$0xff]  ;;  %v1515_v18 = vld [vmem:[%s11353_s5 + $0x20] sm:$0xff] }
  0x73   : > { %619 = vperm.xlu1 %6504, %v485_v19   ;;  %614 = vperm.xlu0 %6503, %v484_v20  }
  0x75   : > { %6365 = vmatmul.mubr.f32.gmra.mrb[8].mxu0 %v421_v21  ;;  %6389 = vmatmul.mubr.f32.gmra.mrb[8].mxu1 %v437_v22  ;;  %v1518_v21 = vld [vmem:[%s11353_s5 + $0x38] sm:$0xff]  ;;  %v1517_v22 = vld [vmem:[%s11353_s5 + $0x30] sm:$0xff] }
  0x76   : > { %6367 = vmatprep.mubr.f32.mxu0 %v422_v23  ;;  %6391 = vmatprep.mubr.f32.mxu1 %v438_v24 }
  0x77   : > { %629 = vperm.xlu1 %6504, %v487_v25   ;;  %624 = vperm.xlu0 %6503, %v486_v26   ;;  %v6031_v25 = vld [vmem:[%s11353_s5 + $0x48] sm:$0xff]  ;;  %v6030_v26 = vld [vmem:[%s11353_s5 + $0x40] sm:$0xff] }
  0x79   : > { %6368 = vmatmul.mubr.f32.gmra.mrb[10].mxu0 %v423_v27  ;;  %6392 = vmatmul.mubr.f32.gmra.mrb[10].mxu1 %v439_v28 }
  0x7a   : > { %6370 = vmatprep.mubr.f32.mxu0 %v424_v29  ;;  %6394 = vmatprep.mubr.f32.mxu1 %v440_v30  ;;  %v6033_v29 = vld [vmem:[%s11353_s5 + $0x58] sm:$0xff]  ;;  %v6032_v30 = vld [vmem:[%s11353_s5 + $0x50] sm:$0xff] }
  0x7b   : > { %639 = vperm.xlu1 %6504, %v489_v31   ;;  %634 = vperm.xlu0 %6503, %v488_v32  }
  0x7d   : > { %6371 = vmatmul.mubr.f32.gmra.mrb[12].mxu0 %v425_v33  ;;  %6395 = vmatmul.mubr.f32.gmra.mrb[12].mxu1 %v441_v34  ;;  %v6035_v33 = vld [vmem:[%s11353_s5 + $0x68] sm:$0xff]  ;;  %v6034_v34 = vld [vmem:[%s11353_s5 + $0x60] sm:$0xff] }
  0x7e   : > { %6373 = vmatprep.mubr.f32.mxu0 %v426_v35  ;;  %6397 = vmatprep.mubr.f32.mxu1 %v442_v36 }
  0x7f   : > { %649 = vperm.xlu1 %6504, %v491_v37   ;;  %644 = vperm.xlu0 %6503, %v490_v38   ;;  %v6037_v37 = vld [vmem:[%s11353_s5 + $0x78] sm:$0xff]  ;;  %v6036_v38 = vld [vmem:[%s11353_s5 + $0x70] sm:$0xff] }
  0x81   : > { %6374 = vmatmul.mubr.f32.gmra.mrb[14].mxu0 %v427_v39  ;;  %6398 = vmatmul.mubr.f32.gmra.mrb[14].mxu1 %v443_v40 }
  0x83   : > { %990 = vperm.xlu1 %6504, %v976_v41   ;;  %985 = vperm.xlu0 %6503, %v975_v42   ;;  %v6039_v41 = vld [vmem:[%s11353_s5 + $0x88] sm:$0xff]  ;;  %v6038_v42 = vld [vmem:[%s11353_s5 + $0x80] sm:$0xff] }
  0x87   : > { %1000 = vperm.xlu1 %6504, %v978_v43   ;;  %995 = vperm.xlu0 %6503, %v977_v44  }
  0x8b   : > { %1010 = vperm.xlu1 %6504, %v980_v45   ;;  %1005 = vperm.xlu0 %6503, %v979_v46   ;;  %v6041_v45 = vld [vmem:[%s11353_s5 + $0x98] sm:$0xff]  ;;  %v6040_v46 = vld [vmem:[%s11353_s5 + $0x90] sm:$0xff] }
  0x8f   : > { %1020 = vperm.xlu1 %6504, %v982_v47   ;;  %1015 = vperm.xlu0 %6503, %v981_v48  }
  0x93   : > { %1046 = vperm.xlu1 %6504, %v1032_v49   ;;  %1041 = vperm.xlu0 %6503, %v1031_v50   ;;  %v6043_v49 = vld [vmem:[%s11353_s5 + $0xa8] sm:$0xff]  ;;  %v6042_v50 = vld [vmem:[%s11353_s5 + $0xa0] sm:$0xff] }
  0x97   : > { %1056 = vperm.xlu1 %6504, %v1034_v51   ;;  %1051 = vperm.xlu0 %6503, %v1033_v52  }
  0x9b   : > { %1066 = vperm.xlu1 %6504, %v1036_v53   ;;  %1061 = vperm.xlu0 %6503, %v1035_v54   ;;  %v6045_v53 = vld [vmem:[%s11353_s5 + $0xb8] sm:$0xff]  ;;  %v6044_v54 = vld [vmem:[%s11353_s5 + $0xb0] sm:$0xff] }
  0x9f   : > { %1076 = vperm.xlu1 %6504, %v1038_v55   ;;  %1071 = vperm.xlu0 %6503, %v1037_v56  }
  0xa3   : > { %1209 = vperm.xlu1 %6504, %v6014_v57   ;;  %1204 = vperm.xlu0 %6503, %v6013_v58   ;;  %v6047_v57 = vld [vmem:[%s11353_s5 + $0xc8] sm:$0xff]  ;;  %v6046_v58 = vld [vmem:[%s11353_s5 + $0xc0] sm:$0xff] }
  0xa7   : > { %1219 = vperm.xlu1 %6504, %v6016_v59   ;;  %1214 = vperm.xlu0 %6503, %v6015_v60  }
  0xab   : > { %1229 = vperm.xlu1 %6504, %v6018_v61   ;;  %1224 = vperm.xlu0 %6503, %v6017_v62   ;;  %v6049_v61 = vld [vmem:[%s11353_s5 + $0xd8] sm:$0xff]  ;;  %v6048_v62 = vld [vmem:[%s11353_s5 + $0xd0] sm:$0xff] }
  0xaf   : > { %1239 = vperm.xlu1 %6504, %v6020_v63   ;;  %1234 = vperm.xlu0 %6503, %v6019_v0  }
  0xb3   : > { %1266 = vperm.xlu1 %6504, %v6022_v1   ;;  %1261 = vperm.xlu0 %6503, %v6021_v2   ;;  %v6051_v1 = vld [vmem:[%s11353_s5 + $0xe8] sm:$0xff]  ;;  %v6050_v2 = vld [vmem:[%s11353_s5 + $0xe0] sm:$0xff] }
  0xb7   : > { %1276 = vperm.xlu1 %6504, %v6024_v3   ;;  %1271 = vperm.xlu0 %6503, %v6023_v4  }
  0xbb   : > { %1286 = vperm.xlu1 %6504, %v6026_v5   ;;  %1281 = vperm.xlu0 %6503, %v6025_v6   ;;  %v6053_v5 = vld [vmem:[%s11353_s5 + $0xf8] sm:$0xff]  ;;  %v6052_v6 = vld [vmem:[%s11353_s5 + $0xf0] sm:$0xff] }
  0xbf   : > { %1296 = vperm.xlu1 %6504, %v6028_v7   ;;  %1291 = vperm.xlu0 %6503, %v6027_v8  }
  0xc2   : > { %v7129_v11 = vpop.permute.xlu1 %504  ;;  %v7131_v12 = vpop.permute.xlu0 %494 }
  0xc3   : > { %1526 = vperm.xlu1 %6504, %v1512_v9   ;;  %1521 = vperm.xlu0 %6503, %v1511_v10   ;;  %v6055_v9 = vld [vmem:[%s11351_s3 + $0x88] sm:$0xff]  ;;  %v6054_v10 = vld [vmem:[%s11351_s3 + $0x80] sm:$0xff] }
  0xc6   : > { %v7139_v15 = vpop.permute.xlu1 %509  ;;  %v7141_v16 = vpop.permute.xlu0 %499 }
  0xc7   : > { %1536 = vperm.xlu1 %6504, %v1514_v13   ;;  %1531 = vperm.xlu0 %6503, %v1513_v14  }
  0xca   : > { %v7149_v19 = vpop.permute.xlu1 %519  ;;  %v7151_v20 = vpop.permute.xlu0 %514 }
  0xcb   : > { %11492 = vst [vmem:[#allocation9_spill] sm:$0xff] %v7151_v20  ;;  %1546 = vperm.xlu1 %6504, %v1516_v17   ;;  %1541 = vperm.xlu0 %6503, %v1515_v18   ;;  %v6057_v17 = vld [vmem:[%s11351_s3 + $0x98] sm:$0xff]  ;;  %v6056_v18 = vld [vmem:[%s11351_s3 + $0x90] sm:$0xff] }
  0xce   : > { %v7159_v23 = vpop.permute.xlu1 %529  ;;  %v7161_v24 = vpop.permute.xlu0 %524 }
  0xcf   : > { %11493 = vst [vmem:[#allocation10_spill] sm:$0xff] %v7159_v23  ;;  %11494 = vst [vmem:[#allocation11_spill] sm:$0xff] %v7161_v24  ;;  %1556 = vperm.xlu1 %6504, %v1518_v21   ;;  %1551 = vperm.xlu0 %6503, %v1517_v22  }
  0xd2   : > { %v7169_v27 = vpop.permute.xlu1 %539  ;;  %v7171_v28 = vpop.permute.xlu0 %534 }
  0xd3   : > { %11495 = vst [vmem:[#allocation12_spill] sm:$0xff] %v7169_v27  ;;  %11496 = vst [vmem:[#allocation13_spill] sm:$0xff] %v7171_v28  ;;  %1696 = vperm.xlu1 %6504, %v6031_v25   ;;  %1691 = vperm.xlu0 %6503, %v6030_v26   ;;  %v6059_v25 = vld [vmem:[%s11351_s3 + $0xa8] sm:$0xff]  ;;  %v6058_v26 = vld [vmem:[%s11351_s3 + $0xa0] sm:$0xff] }
  0xd6   : > { %v7179_v31 = vpop.permute.xlu1 %549  ;;  %v7181_v32 = vpop.permute.xlu0 %544 }
  0xd7   : > { %11497 = vst [vmem:[#allocation14_spill] sm:$0xff] %v7179_v31  ;;  %11498 = vst [vmem:[#allocation15_spill] sm:$0xff] %v7181_v32  ;;  %1706 = vperm.xlu1 %6504, %v6033_v29   ;;  %1701 = vperm.xlu0 %6503, %v6032_v30  }
  0xda   : > { %v7189_v35 = vpop.permute.xlu1 %559  ;;  %v7191_v36 = vpop.permute.xlu0 %554 }
  0xdb   : > { %11499 = vst [vmem:[#allocation16_spill] sm:$0xff] %v7189_v35  ;;  %11500 = vst [vmem:[#allocation17_spill] sm:$0xff] %v7191_v36  ;;  %1716 = vperm.xlu1 %6504, %v6035_v33   ;;  %1711 = vperm.xlu0 %6503, %v6034_v34   ;;  %v6061_v33 = vld [vmem:[%s11351_s3 + $0xb8] sm:$0xff]  ;;  %v6060_v34 = vld [vmem:[%s11351_s3 + $0xb0] sm:$0xff] }
  0xde   : > { %v7199_v39 = vpop.permute.xlu1 %569  ;;  %v7201_v40 = vpop.permute.xlu0 %564 }
  0xdf   : > { %11501 = vst [vmem:[#allocation18_spill] sm:$0xff] %v7199_v39  ;;  %11502 = vst [vmem:[#allocation19_spill] sm:$0xff] %v7201_v40  ;;  %1726 = vperm.xlu1 %6504, %v6037_v37   ;;  %1721 = vperm.xlu0 %6503, %v6036_v38   ;;  %v6083_v40 = vld [vmem:[%s11352_s4 + $0xe8] sm:$0xff]  ;;  %v6082_v39 = vld [vmem:[%s11352_s4 + $0xe0] sm:$0xff] }
  0xe2   : > { %v7209_v43 = vpop.permute.xlu1 %579  ;;  %v7211_v44 = vpop.permute.xlu0 %574 }
  0xe3   : > { %11503 = vst [vmem:[#allocation20_spill] sm:$0xff] %v7209_v43  ;;  %11504 = vst [vmem:[#allocation21_spill] sm:$0xff] %v7211_v44  ;;  %1866 = vperm.xlu1 %6504, %v6039_v41   ;;  %1861 = vperm.xlu0 %6503, %v6038_v42   ;;  %v6063_v41 = vld [vmem:[%s11352_s4 + $0x88] sm:$0xff]  ;;  %v6062_v42 = vld [vmem:[%s11352_s4 + $0x80] sm:$0xff] }
  0xe6   : > { %v7219_v47 = vpop.permute.xlu1 %589  ;;  %v7221_v48 = vpop.permute.xlu0 %584 }
  0xe7   : > { %11505 = vst [vmem:[#allocation22_spill] sm:$0xff] %v7219_v47  ;;  %11506 = vst [vmem:[#allocation23_spill] sm:$0xff] %v7221_v48  ;;  %1876 = vperm.xlu1 %6504, %v6041_v45   ;;  %1871 = vperm.xlu0 %6503, %v6040_v46  }
  0xea   : > { %v7229_v51 = vpop.permute.xlu1 %599  ;;  %v7231_v52 = vpop.permute.xlu0 %594 }
  0xeb   : > { %11507 = vst [vmem:[#allocation24_spill] sm:$0xff] %v7229_v51  ;;  %11508 = vst [vmem:[#allocation25_spill] sm:$0xff] %v7231_v52  ;;  %1886 = vperm.xlu1 %6504, %v6043_v49   ;;  %1881 = vperm.xlu0 %6503, %v6042_v50   ;;  %v6065_v49 = vld [vmem:[%s11352_s4 + $0x98] sm:$0xff]  ;;  %v6064_v50 = vld [vmem:[%s11352_s4 + $0x90] sm:$0xff] }
  0xee   : > { %v7239_v55 = vpop.permute.xlu1 %609  ;;  %v7241_v56 = vpop.permute.xlu0 %604 }
  0xef   : > { %11509 = vst [vmem:[#allocation26_spill] sm:$0xff] %v7239_v55  ;;  %11510 = vst [vmem:[#allocation27_spill] sm:$0xff] %v7241_v56  ;;  %1896 = vperm.xlu1 %6504, %v6045_v53   ;;  %1891 = vperm.xlu0 %6503, %v6044_v54  }
  0xf2   : > { %v7249_v59 = vpop.permute.xlu1 %619  ;;  %v7251_v60 = vpop.permute.xlu0 %614 }
  0xf3   : > { %11511 = vst [vmem:[#allocation28_spill] sm:$0xff] %v7249_v59  ;;  %11512 = vst [vmem:[#allocation29_spill] sm:$0xff] %v7251_v60  ;;  %2036 = vperm.xlu1 %6504, %v6047_v57   ;;  %2031 = vperm.xlu0 %6503, %v6046_v58   ;;  %v6067_v57 = vld [vmem:[%s11352_s4 + $0xa8] sm:$0xff]  ;;  %v6066_v58 = vld [vmem:[%s11352_s4 + $0xa0] sm:$0xff] }
  0xf6   : > { %v7259_v63 = vpop.permute.xlu1 %629  ;;  %v7261_v0 = vpop.permute.xlu0 %624 }
  0xf7   : > { %11513 = vst [vmem:[#allocation30_spill] sm:$0xff] %v7259_v63  ;;  %11514 = vst [vmem:[#allocation31_spill] sm:$0xff] %v7261_v0  ;;  %2046 = vperm.xlu1 %6504, %v6049_v61   ;;  %2041 = vperm.xlu0 %6503, %v6048_v62   ;;  %v6085_v63 = vld [vmem:[%s11352_s4 + $0xf8] sm:$0xff] }
  0xfa   : > { %v7269_v3 = vpop.permute.xlu1 %639  ;;  %v7271_v4 = vpop.permute.xlu0 %634 }
  0xfb   : > { %11515 = vst [vmem:[#allocation32_spill] sm:$0xff] %v7269_v3  ;;  %11516 = vst [vmem:[#allocation33_spill] sm:$0xff] %v7271_v4  ;;  %2056 = vperm.xlu1 %6504, %v6051_v1   ;;  %2051 = vperm.xlu0 %6503, %v6050_v2   ;;  %v6069_v1 = vld [vmem:[%s11352_s4 + $0xb8] sm:$0xff]  ;;  %v6068_v2 = vld [vmem:[%s11352_s4 + $0xb0] sm:$0xff] }
  0xfe   : > { %v7279_v7 = vpop.permute.xlu1 %649  ;;  %v7281_v8 = vpop.permute.xlu0 %644 }
  0xff   : > { %11517 = vst [vmem:[#allocation34_spill] sm:$0xff] %v7279_v7  ;;  %11518 = vst [vmem:[#allocation35_spill] sm:$0xff] %v7281_v8  ;;  %2066 = vperm.xlu1 %6504, %v6053_v5   ;;  %2061 = vperm.xlu0 %6503, %v6052_v6   ;;  %v882_v8 = vlaneseq }
 0x102   : > { %v7289_v13 = vpop.permute.xlu1 %990  ;;  %v7291_v14 = vpop.permute.xlu0 %985 }
 0x103   : > { %2199 = vperm.xlu1 %6504, %v6055_v9   ;;  %2194 = vperm.xlu0 %6503, %v6054_v10   ;;  %v6071_v9 = vld [vmem:[%s11351_s3 + $0xc8] sm:$0xff]  ;;  %v6070_v10 = vld [vmem:[%s11351_s3 + $0xc0] sm:$0xff] }
 0x106   : > { %v7299_v21 = vpop.permute.xlu1 %1000  ;;  %v7301_v22 = vpop.permute.xlu0 %995 }
 0x107   : > { %2209 = vperm.xlu1 %6504, %v6057_v17   ;;  %2204 = vperm.xlu0 %6503, %v6056_v18  }
 0x10a   : > { %v7309_v29 = vpop.permute.xlu1 %1010  ;;  %v7311_v30 = vpop.permute.xlu0 %1005 }
 0x10b   : > { %2219 = vperm.xlu1 %6504, %v6059_v25   ;;  %2214 = vperm.xlu0 %6503, %v6058_v26   ;;  %v6073_v25 = vld [vmem:[%s11351_s3 + $0xd8] sm:$0xff]  ;;  %v6072_v26 = vld [vmem:[%s11351_s3 + $0xd0] sm:$0xff] }
 0x10e   : > { %v7319_v37 = vpop.permute.xlu1 %1020  ;;  %v7321_v38 = vpop.permute.xlu0 %1015 }
 0x10f   : > { %2229 = vperm.xlu1 %6504, %v6061_v33   ;;  %2224 = vperm.xlu0 %6503, %v6060_v34  }
 0x112   : > { %v7329_v45 = vpop.permute.xlu1 %1046  ;;  %v7331_v46 = vpop.permute.xlu0 %1041 }
 0x113   : > { %2256 = vperm.xlu1 %6504, %v6063_v41   ;;  %2251 = vperm.xlu0 %6503, %v6062_v42   ;;  %v6075_v41 = vld [vmem:[%s11351_s3 + $0xe8] sm:$0xff]  ;;  %v6074_v42 = vld [vmem:[%s11351_s3 + $0xe0] sm:$0xff] }
 0x116   : > { %v7339_v53 = vpop.permute.xlu1 %1056  ;;  %v7341_v54 = vpop.permute.xlu0 %1051 }
 0x117   : > { %2266 = vperm.xlu1 %6504, %v6065_v49   ;;  %2261 = vperm.xlu0 %6503, %v6064_v50  }
 0x11a   : > { %v7349_v61 = vpop.permute.xlu1 %1066  ;;  %v7351_v62 = vpop.permute.xlu0 %1061 }
 0x11b   : > { %2276 = vperm.xlu1 %6504, %v6067_v57   ;;  %2271 = vperm.xlu0 %6503, %v6066_v58   ;;  %v6077_v57 = vld [vmem:[%s11351_s3 + $0xf8] sm:$0xff]  ;;  %v6076_v58 = vld [vmem:[%s11351_s3 + $0xf0] sm:$0xff] }
 0x11e   : > { %v7359_v5 = vpop.permute.xlu1 %1076  ;;  %v7361_v6 = vpop.permute.xlu0 %1071 }
 0x11f   : > { %2286 = vperm.xlu1 %6504, %v6069_v1   ;;  %2281 = vperm.xlu0 %6503, %v6068_v2  }
 0x122   : > { %v1210_v17 = vpop.permute.xlu1 %1209  ;;  %v1205_v18 = vpop.permute.xlu0 %1204 }
 0x123   : > { %2419 = vperm.xlu1 %6504, %v6071_v9   ;;  %2414 = vperm.xlu0 %6503, %v6070_v10   ;;  %v6079_v9 = vld [vmem:[%s11352_s4 + $0xc8] sm:$0xff]  ;;  %v6078_v10 = vld [vmem:[%s11352_s4 + $0xc0] sm:$0xff] }
 0x126   : > { %v7375_v33 = vpop.permute.xlu1 %1219  ;;  %v1215_v34 = vpop.permute.xlu0 %1214 }
 0x127   : > { %2429 = vperm.xlu1 %6504, %v6073_v25   ;;  %2424 = vperm.xlu0 %6503, %v6072_v26  }
 0x12a   : > { %v7383_v49 = vpop.permute.xlu1 %1229  ;;  %v1225_v50 = vpop.permute.xlu0 %1224 }
 0x12b   : > { %2439 = vperm.xlu1 %6504, %v6075_v41   ;;  %2434 = vperm.xlu0 %6503, %v6074_v42   ;;  %v6662_v41 = vmov 1966171168  }
 0x12c   : > { %v880_v42 = vunpack.c.l.s4 %v6662_v41 }
 0x12e   : > { %v7391_v1 = vpop.permute.xlu1 %1239  ;;  %v7393_v2 = vpop.permute.xlu0 %1234 }
 0x12f   : > { %2449 = vperm.xlu1 %6504, %v6077_v57   ;;  %2444 = vperm.xlu0 %6503, %v6076_v58   ;;  %v6081_v57 = vld [vmem:[%s11352_s4 + $0xd8] sm:$0xff]  ;;  %v6080_v58 = vld [vmem:[%s11352_s4 + $0xd0] sm:$0xff] }
 0x132   : > { %v7401_v25 = vpop.permute.xlu1 %1266  ;;  %v7403_v26 = vpop.permute.xlu0 %1261 }
 0x133   : > { %2476 = vperm.xlu1 %6504, %v6079_v9   ;;  %2471 = vperm.xlu0 %6503, %v6078_v10   ;;  %v881_v9 = vunpack.c.0.s8 %v880_v42  ;;  %v883_v10 = vshrl.u32 %v882_v8, 7 }
 0x135   : > { %v7432_v42 = vsub.s32 %v881_v9, %v883_v10  ;;  %v7457_v9 = vstv %s1331_s10  ;;  %s6663_s10 = smov [#allocation6]  }
 0x136   : > { %v7411_v7 = vpop.permute.xlu1 %1276  ;;  %v7413_v4 = vpop.permute.xlu0 %1271  ;;  %s6596_s13 = sshll.u32 %s6663_s10, 4  ;;  %s6597_s13 = int_to_ptr.vmem [resolvable:$false] %s6596_s13 }
 0x137   : > { %2486 = vperm.xlu1 %6504, %v6081_v57   ;;  %2481 = vperm.xlu0 %6503, %v6080_v58   ;;  %11521 = vst [vmem:[#allocation38_spill] sm:$0xff] %v7432_v42 }
 0x138   : > { %v6354_v3 = vpop.f32.mrb[0].mxu0  ;;  %v7415_v41 = vpop.f32.mrb[0].mxu1 }
 0x139   : > { %11519 = vst [vmem:[#allocation36_spill] sm:$0xff] %v7415_v41  ;;  %v718_v36 = vpop.f32.mrb[1].mxu0  ;;  %v7423_v35 = vpop.f32.mrb[1].mxu1  ;;  %v7426_v60 = vadd.f32 %v6354_v3, %v7141_v16  ;;  %v7443_v3 = vsub.s32 0, %v883_v10 }
 0x13a   : > { %11520 = vst [vmem:[#allocation37_spill] sm:$0xff] %v7423_v35  ;;  %v7428_v57 = vpop.permute.xlu1 %1286  ;;  %v7430_v8 = vpop.permute.xlu0 %1281  ;;  %v7435_v58 = vadd.f32 %v718_v36, %v7131_v12  ;;  %v6088_v35 = vld [vmem:[%s11353_s5 + $0x100] sm:$0xff] }
 0x13b   : > { %2496 = vperm.xlu1 %6504, %v6083_v40   ;;  %2491 = vperm.xlu0 %6503, %v6082_v39   ;;  %11523 = vst [vmem:[#allocation40_spill] sm:$0xff] %v7443_v3  ;;  %v6084_v39 = vld [vmem:[%s11352_s4 + $0xf0] sm:$0xff]  ;;  %v7451_v12 = vmul.f32 %v1205_v18, %v7426_v60  ;;  %v7454_v36 = vmul.f32 %v1210_v17, %v7426_v60 }
 0x13c   : > { %v6357_v0 = vpop.f32.mrb[2].mxu0  ;;  %v7437_v28 = vpop.f32.mrb[2].mxu1  ;;  %v7465_v31 = vmul.f32 %v1215_v34, %v7426_v60  ;;  %v7469_v18 = vmul.f32 %v7375_v33, %v7426_v60  ;;  %v7472_v17 = vmul.f32 %v1225_v50, %v7426_v60  ;;  %v7477_v56 = vmul.f32 %v7291_v14, %v7435_v58  ;;  %v6089_v33 = vld [vmem:[%s11353_s5 + $0x108] sm:$0xff] }
 0x13d   : > { %11522 = vst [vmem:[#allocation39_spill] sm:$0xff] %v7437_v28  ;;  %v734_v16 = vadd.f32 %v6357_v0, %v7139_v15  ;;  %v728_v59 = vpop.f32.mrb[3].mxu0  ;;  %v7445_v27 = vpop.f32.mrb[3].mxu1  ;;  %v7527_v28 = vmul.f32 %v7309_v29, %v7435_v58 }
 0x13e   : > { %11524 = vst [vmem:[#allocation41_spill] sm:$0xff] %v7445_v27  ;;  %v729_v40 = vadd.f32 %v728_v59, %v7129_v11  ;;  %v7459_v15 = vpop.permute.xlu1 %1296  ;;  %v7461_v0 = vpop.permute.xlu0 %1291  ;;  %v7521_v27 = vmul.f32 %v7311_v30, %v7435_v58  ;;  %v6091_v30 = vld [vmem:[%s11353_s5 + $0x118] sm:$0xff] }
 0x13f   : > { %v1096_v10 = vcombine.high %v734_v16, %v734_v16  ;;  %v1103_v32 = vrot.slane %v734_v16, %v7432_v42  ;;  %2506 = vperm.xlu1 %6504, %v6085_v63   ;;  %2501 = vperm.xlu0 %6503, %v6084_v39  }
 0x140   : > { %v878_v11 = vcombine.high %v729_v40, %v729_v40  ;;  %v885_v59 = vrot.slane %v729_v40, %v7432_v42  ;;  %v7479_v16 = vpop.f32.mrb[4].mxu0  ;;  %v7481_v34 = vpop.f32.mrb[4].mxu1  ;;  %v7492_v40 = vmul.f32 %v7289_v13, %v7435_v58 }
 0x141   : > { %11525 = vst [vmem:[#allocation42_spill] sm:$0xff] %v7479_v16  ;;  %11526 = vst [vmem:[#allocation43_spill] sm:$0xff] %v7481_v34  ;;  %v7487_v63 = vrot.slane %v1096_v10, %v7432_v42  ;;  %v1111_v50 = vcombine.high %v1103_v32, %v1103_v32  ;;  %v1119_v55 = vrot.slane %v1103_v32, %v7432_v42  ;;  %v7494_v14 = vpop.f32.mrb[5].mxu0  ;;  %v7496_v39 = vpop.f32.mrb[5].mxu1 }
 0x142   : > { %11527 = vst [vmem:[#allocation44_spill] sm:$0xff] %v7494_v14  ;;  %11528 = vst [vmem:[#allocation45_spill] sm:$0xff] %v7496_v39  ;;  %v892_v44 = vrot.slane %v878_v11, %v7432_v42  ;;  %v893_v41 = vcombine.high %v885_v59, %v885_v59  ;;  %v7504_v10 = vmul.f32 %v7301_v22, %v7435_v58  ;;  %v7510_v13 = vpop.permute.xlu1 %1526  ;;  %v7512_v43 = vpop.permute.xlu0 %1521 }
 0x143   : > { %v7508_v32 = vmul.f32 %v7299_v21, %v7435_v58  ;;  %11529 = vst [vmem:[#allocation46_spill] sm:$0xff] %v7510_v13  ;;  %11530 = vst [vmem:[#allocation47_spill] sm:$0xff] %v7512_v43  ;;  %v7516_v39 = vrot.slane %v7487_v63, %v7432_v42  ;;  %v1133_v52 = vrot.slane %v1111_v50, %v7432_v42  ;;  %2737 = vperm.xlu1 %6504, %v6089_v33  }
 0x144   : > { %v1141_v11 = vcombine.high %v1119_v55, %v1119_v55  ;;  %v1148_v22 = vrot.slane %v1119_v55, %v7443_v3  ;;  %v894_v21 = vcombine.high %v892_v44, %v892_v44  ;;  %v901_v48 = vrot.slane %v885_v59, %v7432_v42  ;;  %2732 = vperm.xlu0 %6503, %v6088_v35   ;;  %v7529_v47 = vpop.f32.mrb[6].mxu0  ;;  %v7531_v34 = vpop.f32.mrb[6].mxu1  ;;  %v6090_v35 = vld [vmem:[%s11353_s5 + $0x110] sm:$0xff] }
 0x145   : > { %11531 = vst [vmem:[#allocation48_spill] sm:$0xff] %v7529_v47  ;;  %11532 = vst [vmem:[#allocation49_spill] sm:$0xff] %v7531_v34  ;;  %v1143_v50 = vcombine.high %v1133_v52, %v1133_v52  ;;  %v1152_v33 = vrot.slane %v1133_v52, %v7443_v3  ;;  %v1164_v59 = vrot.slane %v7516_v39, %v7443_v3  ;;  %v7540_v51 = vpop.f32.mrb[7].mxu0  ;;  %v7542_v29 = vpop.f32.mrb[7].mxu1 }
 0x146   : > { %v1156_v55 = vrot.slane %v1141_v11, %v7443_v3  ;;  %11533 = vst [vmem:[#allocation50_spill] sm:$0xff] %v7540_v51  ;;  %11534 = vst [vmem:[#allocation51_spill] sm:$0xff] %v7542_v29  ;;  %v7548_v34 = vmul.f32 %v1148_v22, %v7426_v60  ;;  %v1299_v43 = vmul.f32 %v7403_v26, %v1148_v22  ;;  %v7555_v13 = vpop.permute.xlu1 %1536  ;;  %v7557_v24 = vpop.permute.xlu0 %1531 }
 0x147   : > { %v7552_v52 = vrot.slane %v892_v44, %v7432_v42  ;;  %v915_v11 = vrot.slane %v893_v41, %v7432_v42  ;;  %11535 = vst [vmem:[#allocation52_spill] sm:$0xff] %v7555_v13  ;;  %11536 = vst [vmem:[#allocation53_spill] sm:$0xff] %v7557_v24  ;;  %v1160_v29 = vrot.slane %v1143_v50, %v7443_v3  ;;  %2747 = vperm.xlu1 %6504, %v6091_v30   ;;  %v6093_v24 = vld [vmem:[%s11353_s5 + $0x128] sm:$0xff] }
 0x148   : > { %v7561_v51 = vmul.f32 %v1152_v33, %v7426_v60  ;;  %v7564_v47 = vmul.f32 %v1156_v55, %v7426_v60  ;;  %v7567_v23 = vmul.f32 %v1164_v59, %v7426_v60  ;;  %v1300_v44 = vmul.f32 %v7401_v25, %v1152_v33  ;;  %2742 = vperm.xlu0 %6503, %v6090_v35   ;;  %v7575_v50 = vpop.f32.mrb[8].mxu0  ;;  %v7577_v13 = vpop.f32.mrb[8].mxu1  ;;  %v6092_v33 = vld [vmem:[%s11353_s5 + $0x120] sm:$0xff] }
 0x149   : > { %v1301_v26 = vmul.f32 %v7413_v4, %v1156_v55  ;;  %v1303_v41 = vmul.f32 %v7430_v8, %v1164_v59  ;;  %v7573_v22 = vadd.f32 %v1299_v43, %v7451_v12  ;;  %11537 = vst [vmem:[#allocation54_spill] sm:$0xff] %v7575_v50  ;;  %11538 = vst [vmem:[#allocation55_spill] sm:$0xff] %v7577_v13  ;;  %v7589_v43 = vpop.f32.mrb[9].mxu0  ;;  %v7591_v12 = vpop.f32.mrb[9].mxu1 }
 0x14a   : > { %v7583_v30 = vmul.f32 %v1160_v29, %v7426_v60  ;;  %v1302_v25 = vmul.f32 %v7411_v7, %v1160_v29  ;;  %v7587_v4 = vrot.slane %v894_v21, %v7432_v42  ;;  %v923_v8 = vcombine.high %v901_v48, %v901_v48  ;;  %11539 = vst [vmem:[#allocation56_spill] sm:$0xff] %v7589_v43  ;;  %v7601_v21 = vpop.permute.xlu1 %1546  ;;  %v7603_v29 = vpop.permute.xlu0 %1541 }
 0x14b   : > { %11540 = vst [vmem:[#allocation57_spill] sm:$0xff] %v7591_v12  ;;  %v1308_v59 = vadd.f32 %v1300_v44, %v7454_v36  ;;  %v1309_v35 = vadd.f32 %v1301_v26, %v7465_v31  ;;  %v1311_v7 = vadd.f32 %v1303_v41, %v7472_v17  ;;  %11541 = vst [vmem:[#allocation58_spill] sm:$0xff] %v7601_v21  ;;  %2757 = vperm.xlu1 %6504, %v6093_v24  }
 0x14c   : > { %11542 = vst [vmem:[#allocation59_spill] sm:$0xff] %v7603_v29  ;;  %v1310_v43 = vadd.f32 %v1302_v25, %v7469_v18  ;;  %v925_v13 = vcombine.high %v915_v11, %v915_v11  ;;  %v930_v50 = vrot.slane %v901_v48, %v7443_v3  ;;  %v934_v55 = vrot.slane %v915_v11, %v7443_v3  ;;  %v7615_v44 = vpop.f32.mrb[10].mxu0  ;;  %v7617_v18 = vpop.f32.mrb[10].mxu1  ;;  %v6095_v48 = vld [vmem:[%s11353_s5 + $0x138] sm:$0xff] }
 0x14d   : > { %v938_v36 = vrot.slane %v923_v8, %v7443_v3  ;;  %v946_v31 = vrot.slane %v7552_v52, %v7443_v3  ;;  %v950_v17 = vrot.slane %v7587_v4, %v7443_v3  ;;  %2752 = vperm.xlu0 %6503, %v6092_v33   ;;  %11543 = vst [vmem:[#allocation60_spill] sm:$0xff] %v7615_v44  ;;  %11544 = vst [vmem:[#allocation61_spill] sm:$0xff] %v7617_v18  ;;  %v7629_v25 = vpop.f32.mrb[11].mxu0  ;;  %v7631_v8 = vpop.f32.mrb[11].mxu1  ;;  %v6094_v33 = vld [vmem:[%s11353_s5 + $0x130] sm:$0xff] }
 0x14e   : > { %v942_v11 = vrot.slane %v925_v13, %v7443_v3  ;;  %v967_v26 = vmul.f32 %v930_v50, %v7435_v58  ;;  %v1079_v41 = vmul.f32 %v7331_v46, %v930_v50  ;;  %11545 = vst [vmem:[#allocation62_spill] sm:$0xff] %v7629_v25  ;;  %11546 = vst [vmem:[#allocation63_spill] sm:$0xff] %v7631_v8  ;;  %v7642_v46 = vpop.permute.xlu1 %1556  ;;  %v7644_v50 = vpop.permute.xlu0 %1551 }
 0x14f   : > { %v968_v12 = vmul.f32 %v934_v55, %v7435_v58  ;;  %v969_v24 = vmul.f32 %v938_v36, %v7435_v58  ;;  %v971_v13 = vmul.f32 %v946_v31, %v7435_v58  ;;  %v7640_v18 = vmul.f32 %v950_v17, %v7435_v58  ;;  %11547 = vst [vmem:[#allocation64_spill] sm:$0xff] %v7642_v46 }
 0x150   : > { %11548 = vst [vmem:[#allocation65_spill] sm:$0xff] %v7644_v50  ;;  %v970_v25 = vmul.f32 %v942_v11, %v7435_v58  ;;  %v1080_v8 = vmul.f32 %v7329_v45, %v934_v55  ;;  %v1081_v44 = vmul.f32 %v7341_v54, %v938_v36  ;;  %v1082_v21 = vmul.f32 %v7339_v53, %v942_v11  ;;  %v7654_v46 = vpop.f32.mrb[12].mxu0  ;;  %v7656_v50 = vpop.f32.mrb[12].mxu1  ;;  %v6097_v45 = vld [vmem:[%s11353_s5 + $0x148] sm:$0xff]  ;;  %v6096_v55 = vld [vmem:[%s11353_s5 + $0x140] sm:$0xff] }
 0x151   : > { %2767 = vperm.xlu1 %6504, %v6095_v48   ;;  %v1083_v29 = vmul.f32 %v7351_v62, %v946_v31  ;;  %v1084_v14 = vmul.f32 %v7349_v61, %v950_v17  ;;  %v1087_v20 = vadd.f32 %v1079_v41, %v7477_v56  ;;  %v1315_v16 = vadd.f32 %v7548_v34, %v967_v26  ;;  %v7665_v56 = vpop.f32.mrb[13].mxu0  ;;  %v7667_v34 = vpop.f32.mrb[13].mxu1 }
 0x152   : > { %2762 = vperm.xlu0 %6503, %v6094_v33   ;;  %11549 = vst [vmem:[#allocation66_spill] sm:$0xff] %v7654_v46  ;;  %11550 = vst [vmem:[#allocation67_spill] sm:$0xff] %v7656_v50  ;;  %v1088_v53 = vadd.f32 %v1080_v8, %v7492_v40  ;;  %v1089_v54 = vadd.f32 %v1081_v44, %v7504_v10  ;;  %v1090_v62 = vadd.f32 %v1082_v21, %v7508_v32  ;;  %v7678_v32 = vpop.permute.xlu1 %1696 }
 0x153   : > { %v1316_v61 = vadd.f32 %v7561_v51, %v968_v12  ;;  %11551 = vst [vmem:[#allocation68_spill] sm:$0xff] %v7665_v56  ;;  %11552 = vst [vmem:[#allocation69_spill] sm:$0xff] %v7667_v34  ;;  %v1091_v36 = vadd.f32 %v1083_v29, %v7521_v27  ;;  %v7674_v31 = vadd.f32 %v1084_v14, %v7527_v28  ;;  %v7680_v51 = vpop.permute.xlu0 %1691 }
 0x154   : > { %v1317_v40 = vadd.f32 %v7564_v47, %v969_v24  ;;  %v1318_v10 = vadd.f32 %v7583_v30, %v970_v25  ;;  %v1319_v12 = vadd.f32 %v7567_v23, %v971_v13  ;;  %v1323_v21 = vadd.f32 %v7573_v22, %v1087_v20  ;;  %v7686_v14 = vpop.f32.mrb[14].mxu0  ;;  %v7688_v30 = vpop.f32.mrb[14].mxu1  ;;  %v6099_v23 = vld [vmem:[%s11353_s5 + $0x158] sm:$0xff] }
 0x155   : > { %v1324_v17 = vadd.f32 %v1308_v59, %v1088_v53  ;;  %v1325_v44 = vadd.f32 %v1309_v35, %v1089_v54  ;;  %2907 = vperm.xlu1 %6504, %v6097_v45   ;;  %v1326_v27 = vadd.f32 %v1310_v43, %v1090_v62  ;;  %v1327_v29 = vadd.f32 %v1311_v7, %v1091_v36  ;;  %v7697_v59 = vpop.f32.mrb[15].mxu0  ;;  %v7699_v43 = vpop.f32.mrb[15].mxu1  ;;  %v6101_v54 = vld [vmem:[%s11353_s5 + $0x168] sm:$0xff] }
 0x156   : > { %v1333_v28 = vmul.f32 %v7457_v9, %v1315_v16  ;;  %v1334_v47 = vmul.f32 %v7457_v9, %v1316_v61  ;;  %2902 = vperm.xlu0 %6503, %v6096_v55   ;;  %11553 = vst [vmem:[#allocation70_spill] sm:$0xff] %v7686_v14  ;;  %11554 = vst [vmem:[#allocation71_spill] sm:$0xff] %v7688_v30  ;;  %v1337_v20 = vmul.f32 %v7457_v9, %v1319_v12  ;;  %v6098_v16 = vld [vmem:[%s11353_s5 + $0x150] sm:$0xff]  ;;  %v7711_v26 = vpop.permute.xlu1 %1706  ;;  %v6127_v30 = vld [vmem:[%s11351_s3 + $0x138] sm:$0xff] }
 0x157   : > { %v7695_v22 = vstv %s7627_s12  ;;  %11555 = vst [vmem:[#allocation72_spill] sm:$0xff] %v7697_v59  ;;  %11556 = vst [vmem:[#allocation73_spill] sm:$0xff] %v7699_v43  ;;  %v11557_v35 = vcombine.high %v7552_v52, %v7552_v52  ;;  %v1336_v48 = vmul.f32 %v7457_v9, %v1318_v10  ;;  %v7713_v41 = vpop.permute.xlu0 %1701  ;;  %v11558_v8 = vcombine.high %v7587_v4, %v7587_v4  ;;  %s8674_s12 = sld [smem:[#allocation3 + $0x1]] }
 0x158   : > { %v1341_v24 = vadd.f32 %v1333_v28, %v1323_v21  ;;  %v7709_v11 = vadd.f32 %v1334_v47, %v1324_v17  ;;  %v1345_v25 = vadd.f32 %v1337_v20, %v1327_v29  ;;  %v1335_v13 = vmul.f32 %v7457_v9, %v1317_v40 }
 0x159   : > { %v954_v7 = vrot.slane %v11557_v35, %v7443_v3  ;;  %v958_v33 = vrot.slane %v11558_v8, %v7443_v3  ;;  %2917 = vperm.xlu1 %6504, %v6099_v23   ;;  %v1030_v52 = vmul.f32 %v7319_v37, %v7435_v58  ;;  %v11559_v45 = vcombine.high %v7487_v63, %v7487_v63  ;;  %v6100_v63 = vld [vmem:[%s11353_s5 + $0x160] sm:$0xff] }
 0x15a   : > { %2912 = vperm.xlu0 %6503, %v6098_v16   ;;  %v7730_v62 = vadd.f32 %v7695_v22, %v1341_v24  ;;  %v7733_v4 = vadd.f32 %v7695_v22, %v1345_v25  ;;  %v1344_v40 = vadd.f32 %v1336_v48, %v1326_v27  ;;  %v7742_v12 = vpop.permute.xlu1 %1716  ;;  %v1247_v23 = vmul.f32 %v7383_v49, %v7426_v60  ;;  %v6103_v16 = vld [vmem:[%s11353_s5 + $0x178] sm:$0xff] }
 0x15b   : > { %v1140_v53 = vrot.slane %v11559_v45, %v7432_v42  ;;  %v974_v61 = vmul.f32 %v958_v33, %v7435_v58  ;;  %v1086_v37 = vmul.f32 %v7359_v5, %v958_v33  ;;  %v973_v10 = vmul.f32 %v954_v7, %v7435_v58  ;;  %v7744_v21 = vpop.permute.xlu0 %1711 }
 0x15c   : > { %v1359_v17 = vmax.f32 %v7730_v62, %v7733_v4  ;;  %v1029_v5 = vmul.f32 %v7321_v38, %v7435_v58  ;;  %v1085_v28 = vmul.f32 %v7361_v6, %v954_v7  ;;  %v1249_v38 = vmul.f32 %v7391_v1, %v7426_v60  ;;  %v6102_v7 = vld [vmem:[%s11353_s5 + $0x170] sm:$0xff] }
 0x15d   : > { %v1144_v55 = vcombine.high %v1140_v53, %v1140_v53  ;;  %v1168_v36 = vrot.slane %v1140_v53, %v7443_v3  ;;  %v1094_v29 = vadd.f32 %v1086_v37, %v1030_v52  ;;  %2927 = vperm.xlu1 %6504, %v6101_v54   ;;  %v1142_v6 = vcombine.high %v7516_v39, %v7516_v39  ;;  %v6104_v53 = vld [vmem:[%s11353_s5 + $0x180] sm:$0xff] }
 0x15e   : > { %2922 = vperm.xlu0 %6503, %v6100_v63   ;;  %v1093_v58 = vadd.f32 %v1085_v28, %v1029_v5  ;;  %v1343_v35 = vadd.f32 %v1335_v13, %v1325_v44  ;;  %v7769_v25 = vpop.permute.xlu1 %1726  ;;  %v1248_v52 = vmul.f32 %v7393_v2, %v7426_v60 }
 0x15f   : > { %v1176_v47 = vrot.slane %v1144_v55, %v7443_v3  ;;  %v1190_v27 = vmul.f32 %v1168_v36, %v7426_v60  ;;  %v1304_v20 = vmul.f32 %v7428_v57, %v1168_v36  ;;  %11560 = vst [vmem:[#allocation74_spill] sm:$0xff] %v7769_v25  ;;  %v7771_v8 = vpop.permute.xlu0 %1721  ;;  %v1172_v1 = vrot.slane %v1142_v6, %v7443_v3 }
 0x161   : > { %v1192_v49 = vmul.f32 %v1176_v47, %v7426_v60  ;;  %v1306_v57 = vmul.f32 %v7459_v15, %v1176_v47  ;;  %v1312_v48 = vadd.f32 %v1304_v20, %v1247_v23  ;;  %v1320_v24 = vadd.f32 %v1190_v27, %v7640_v18  ;;  %2937 = vperm.xlu1 %6504, %v6103_v16   ;;  %v6105_v15 = vld [vmem:[%s11353_s5 + $0x188] sm:$0xff] }
 0x162   : > { %2932 = vperm.xlu0 %6503, %v6102_v7   ;;  %v1191_v18 = vmul.f32 %v1172_v1, %v7426_v60  ;;  %v1305_v45 = vmul.f32 %v7461_v0, %v1172_v1  ;;  %v7787_v37 = vpop.permute.xlu1 %1866  ;;  %v1352_v60 = vadd.f32 %v7695_v22, %v7709_v11  ;;  %v1354_v47 = vadd.f32 %v7695_v22, %v1344_v40  ;;  %v6108_v7 = vld [vmem:[%s11353_s5 + $0x1a0] sm:$0xff] }
 0x163   : > { %v1314_v39 = vadd.f32 %v1306_v57, %v1249_v38  ;;  %v1322_v44 = vadd.f32 %v1192_v49, %v974_v61  ;;  %v1328_v33 = vadd.f32 %v1312_v48, %v7674_v31  ;;  %v1338_v13 = vmul.f32 %v7457_v9, %v1320_v24  ;;  %v7789_v63 = vpop.permute.xlu0 %1861 }
 0x164   : > { %v1313_v55 = vadd.f32 %v1305_v45, %v1248_v52  ;;  %v1321_v36 = vadd.f32 %v1191_v18, %v973_v10  ;;  %v6106_v10 = vld [vmem:[%s11353_s5 + $0x190] sm:$0xff]  ;;  %v1353_v40 = vadd.f32 %v7695_v22, %v1343_v35  ;;  %v6112_v52 = vld [vmem:[%s11353_s5 + $0x1c0] sm:$0xff] }
 0x165   : > { %v1330_v54 = vadd.f32 %v1314_v39, %v1094_v29  ;;  %v1340_v31 = vmul.f32 %v7457_v9, %v1322_v44  ;;  %v1346_v61 = vadd.f32 %v1338_v13, %v1328_v33  ;;  %3077 = vperm.xlu1 %6504, %v6105_v15   ;;  %v6107_v29 = vld [vmem:[%s11353_s5 + $0x198] sm:$0xff]  ;;  %v6113_v44 = vld [vmem:[%s11353_s5 + $0x1c8] sm:$0xff] }
 0x166   : > { %3072 = vperm.xlu0 %6503, %v6104_v53   ;;  %v1329_v5 = vadd.f32 %v1313_v55, %v1093_v58  ;;  %v1339_v28 = vmul.f32 %v7457_v9, %v1321_v36  ;;  %v7808_v23 = vpop.permute.xlu1 %1876  ;;  %v6109_v58 = vld [vmem:[%s11353_s5 + $0x1a8] sm:$0xff] }
 0x167   : > { %v1348_v2 = vadd.f32 %v1340_v31, %v1330_v54  ;;  %v7794_v0 = vadd.f32 %v7695_v22, %v1346_v61  ;;  %v7810_v20 = vpop.permute.xlu0 %1871 }
 0x168   : > { %v1347_v16 = vadd.f32 %v1339_v28, %v1329_v5 }
 0x169   : > { %v7805_v11 = vadd.f32 %v7695_v22, %v1348_v2  ;;  %v1360_v27 = vmax.f32 %v1352_v60, %v7794_v0  ;;  %3087 = vperm.xlu1 %6504, %v6107_v29   ;;  %v6115_v2 = vld [vmem:[%s11353_s5 + $0x1d8] sm:$0xff] }
 0x16a   : > { %3082 = vperm.xlu0 %6503, %v6106_v10   ;;  %v1357_v6 = vadd.f32 %v7695_v22, %v1347_v16  ;;  %v7821_v49 = vpop.permute.xlu1 %1886  ;;  %v6110_v22 = vld [vmem:[%s11353_s5 + $0x1b0] sm:$0xff]  ;;  %v6117_v10 = vld [vmem:[%s11353_s5 + $0x1e8] sm:$0xff] }
 0x16b   : > { %v1362_v38 = vmax.f32 %v1354_v47, %v7805_v11  ;;  %v1363_v9 = vmax.f32 %v1359_v17, %v1360_v27  ;;  %v7823_v57 = vpop.permute.xlu0 %1881  ;;  %v6111_v17 = vld [vmem:[%s11353_s5 + $0x1b8] sm:$0xff] }
 0x16c   : > { %11561 = vst [vmem:[#allocation75_spill] sm:$0xff] %v7823_v57  ;;  %v1361_v48 = vmax.f32 %v1353_v40, %v1357_v6 }
 0x16d   : > { %3097 = vperm.xlu1 %6504, %v6109_v58   ;;  %v6118_v58 = vld [vmem:[%s11353_s5 + $0x1f0] sm:$0xff] }
 0x16e   : > { %3092 = vperm.xlu0 %6503, %v6108_v7   ;;  %v1364_v24 = vmax.f32 %v1361_v48, %v1362_v38  ;;  %v7831_v35 = vpop.permute.xlu1 %1896 }
 0x16f   : > { %11562 = vst [vmem:[#allocation76_spill] sm:$0xff] %v7831_v35  ;;  %v7833_v1 = vpop.permute.xlu0 %1891 }
 0x170   : > { %11563 = vst [vmem:[#allocation77_spill] sm:$0xff] %v7833_v1  ;;  %v1365_v39 = vmax.f32 %v1363_v9, %v1364_v24  ;;  %v6119_v9 = vld [vmem:[%s11353_s5 + $0x1f8] sm:$0xff]  ;;  %v6121_v24 = vld [vmem:[%s11351_s3 + $0x108] sm:$0xff] }
 0x171   : > { %3107 = vperm.xlu1 %6504, %v6111_v17  }
 0x172   : > { %3102 = vperm.xlu0 %6503, %v6110_v22   ;;  %v1366_v33 = vsub.f32 %v7730_v62, %v1365_v39  ;;  %v1367_v13 = vsub.f32 %v1352_v60, %v1365_v39  ;;  %v1368_v15 = vsub.f32 %v1353_v40, %v1365_v39  ;;  %v1369_v18 = vsub.f32 %v1354_v47, %v1365_v39  ;;  %v7845_v61 = vpop.permute.xlu1 %2036  ;;  %v6116_v47 = vld [vmem:[%s11353_s5 + $0x1e0] sm:$0xff] }
 0x173   : > { %v1370_v45 = vsub.f32 %v7733_v4, %v1365_v39  ;;  %v1371_v53 = vsub.f32 %v7794_v0, %v1365_v39  ;;  %v1372_v54 = vsub.f32 %v1357_v6, %v1365_v39  ;;  %v1373_v31 = vsub.f32 %v7805_v11, %v1365_v39  ;;  %v7847_v55 = vpop.permute.xlu0 %2031  ;;  %v6114_v4 = vld [vmem:[%s11353_s5 + $0x1d0] sm:$0xff]  ;;  %v6120_v39 = vld [vmem:[%s11351_s3 + $0x100] sm:$0xff] }
 0x174   : > { %v1374_v36 = vmul.f32 1.442695, %v1366_v33  ;;  %v1376_v62 = vmul.f32 1.442695, %v1367_v13  ;;  %v1378_v60 = vmul.f32 1.442695, %v1368_v15 }
 0x175   : > { %3247 = vperm.xlu1 %6504, %v6113_v44   ;;  %v1380_v0 = vmul.f32 1.442695, %v1369_v18  ;;  %v1382_v28 = vmul.f32 1.442695, %v1370_v45  ;;  %v1384_v11 = vmul.f32 1.442695, %v1371_v53 }
 0x176   : > { %3242 = vperm.xlu0 %6503, %v6112_v52   ;;  %6505 = vpow2.f32 %v1374_v36  ;;  %v7855_v29 = vpop.permute.xlu1 %2046  ;;  %v1386_v38 = vmul.f32 1.442695, %v1372_v54  ;;  %v1388_v40 = vmul.f32 1.442695, %v1373_v31  ;;  %v11570_v33 = vld [vmem:[#allocation42_spill] sm:$0xff]  ;;  %v11573_v45 = vld [vmem:[#allocation9_spill] sm:$0xff] }
 0x177   : > { %6507 = vpow2.f32 %v1376_v62  ;;  %11564 = vst [vmem:[#allocation78_spill] sm:$0xff] %v7855_v29  ;;  %v7857_v5 = vpop.permute.xlu0 %2041  ;;  %v744_v13 = vadd.f32 %v11570_v33, %v7149_v19  ;;  %v11574_v53 = vld [vmem:[#allocation44_spill] sm:$0xff]  ;;  %v11575_v36 = vld [vmem:[#allocation10_spill] sm:$0xff] }
 0x178   : > { %11565 = vst [vmem:[#allocation79_spill] sm:$0xff] %v7857_v5  ;;  %6509 = vpow2.f32 %v1378_v60  ;;  %v739_v54 = vadd.f32 %v11574_v53, %v11573_v45  ;;  %v11576_v62 = vld [vmem:[#allocation48_spill] sm:$0xff]  ;;  %v6124_v45 = vld [vmem:[%s11351_s3 + $0x120] sm:$0xff] }
 0x179   : > { %3257 = vperm.xlu1 %6504, %v6115_v2   ;;  %6511 = vpow2.f32 %v1380_v0  ;;  %v754_v60 = vadd.f32 %v11576_v62, %v11575_v36  ;;  %v6123_v19 = vld [vmem:[%s11351_s3 + $0x118] sm:$0xff] }
 0x17a   : > { %3252 = vperm.xlu0 %6503, %v6114_v4   ;;  %v7865_v27 = vpop.permute.xlu1 %2056  ;;  %6513 = vpow2.f32 %v1382_v28  ;;  %v6122_v4 = vld [vmem:[%s11351_s3 + $0x110] sm:$0xff]  ;;  %v1583_v28 = vrot.slane %v744_v13, %v7432_v42 }
 0x17b   : > { %11566 = vst [vmem:[#allocation80_spill] sm:$0xff] %v7865_v27  ;;  %v7867_v16 = vpop.permute.xlu0 %2051  ;;  %6515 = vpow2.f32 %v1384_v11 }
 0x17c   : > { %11567 = vst [vmem:[#allocation81_spill] sm:$0xff] %v7867_v16  ;;  %6517 = vpow2.f32 %v1386_v38  ;;  %v1414_v38 = vrot.slane %v739_v54, %v7432_v42  ;;  %v1591_v36 = vcombine.high %v1583_v28, %v1583_v28 }
 0x17d   : > { %3267 = vperm.xlu1 %6504, %v6117_v10   ;;  %6519 = vpow2.f32 %v1388_v40 }
 0x17e   : > { %3262 = vperm.xlu0 %6503, %v6116_v47   ;;  %v7875_v6 = vpop.permute.xlu1 %2066 }
 0x17f   : > { %11568 = vst [vmem:[#allocation82_spill] sm:$0xff] %v7875_v6  ;;  %v7877_v7 = vpop.permute.xlu0 %2061 }
 0x180   : > { %11569 = vst [vmem:[#allocation83_spill] sm:$0xff] %v7877_v7  ;;  %v7879_v48 = vpop.eup %6505 }
 0x181   : > { %3277 = vperm.xlu1 %6504, %v6119_v9   ;;  %v7881_v17 = vpop.eup %6507  ;;  %v11579_v9 = vld [vmem:[#allocation11_spill] sm:$0xff] }
 0x182   : > { %3272 = vperm.xlu0 %6503, %v6118_v58   ;;  %v1390_v22 = vadd.f32 %v7881_v17, %v7879_v48  ;;  %v7891_v44 = vpop.eup %6509  ;;  %v7895_v15 = vpop.permute.xlu1 %2199  ;;  %v11580_v58 = vld [vmem:[#allocation50_spill] sm:$0xff] }
 0x183   : > { %11571 = vst [vmem:[#allocation42_spill] sm:$0xff] %v7895_v15  ;;  %v7897_v18 = vpop.permute.xlu0 %2194  ;;  %v7902_v31 = vpop.eup %6511  ;;  %v749_v40 = vadd.f32 %v11580_v58, %v11579_v9  ;;  %v1422_v9 = vcombine.high %v1414_v38, %v1414_v38 }
 0x184   : > { %11572 = vst [vmem:[#allocation84_spill] sm:$0xff] %v7897_v18  ;;  %v1391_v52 = vadd.f32 %v7891_v44, %v1390_v22  ;;  %v7913_v0 = vpop.eup %6513  ;;  %v1923_v22 = vrot.slane %v754_v60, %v7432_v42 }
 0x185   : > { %3410 = vperm.xlu1 %6504, %v6121_v24   ;;  %v7924_v24 = vpop.eup %6515  ;;  %v1753_v58 = vrot.slane %v749_v40, %v7432_v42 }
 0x186   : > { %3405 = vperm.xlu0 %6503, %v6120_v39   ;;  %v1392_v2 = vadd.f32 %v7902_v31, %v1391_v52  ;;  %v7916_v10 = vpop.permute.xlu1 %2209  ;;  %v6125_v39 = vld [vmem:[%s11351_s3 + $0x128] sm:$0xff]  ;;  %v1576_v52 = vcombine.high %v744_v13, %v744_v13  ;;  %v7934_v53 = vpop.eup %6517  ;;  %v1916_v13 = vcombine.high %v754_v60, %v754_v60  ;;  %v1931_v43 = vcombine.high %v1923_v22, %v1923_v22 }
 0x187   : > { %11577 = vst [vmem:[#allocation9_spill] sm:$0xff] %v7916_v10  ;;  %v7918_v47 = vpop.permute.xlu0 %2204  ;;  %v7958_v60 = vrot.slane %v1591_v36, %v7432_v42  ;;  %v7977_v36 = vrot.slane %v1923_v22, %v7432_v42  ;;  %v7995_v22 = vrot.slane %v1753_v58, %v7432_v42 }
 0x188   : > { %11578 = vst [vmem:[#allocation44_spill] sm:$0xff] %v7918_v47  ;;  %v1393_v11 = vadd.f32 %v7913_v0, %v1392_v2  ;;  %v7949_v50 = vrot.slane %v1576_v52, %v7432_v42  ;;  %v7974_v14 = vrot.slane %v1916_v13, %v7432_v42 }
 0x189   : > { %3420 = vperm.xlu1 %6504, %v6123_v19   ;;  %v1623_v13 = vcombine.high %v7958_v60, %v7958_v60  ;;  %v1632_v46 = vrot.slane %v7958_v60, %v7443_v3 }
 0x18a   : > { %3415 = vperm.xlu0 %6503, %v6122_v4   ;;  %v1394_v33 = vadd.f32 %v7924_v24, %v1393_v11  ;;  %v7936_v62 = vpop.permute.xlu1 %2219  ;;  %v1407_v4 = vcombine.high %v739_v54, %v739_v54  ;;  %v7942_v11 = vpop.eup %6519  ;;  %v7952_v54 = vrot.slane %v1583_v28, %v7432_v42  ;;  %v7971_v28 = vrot.slane %v1422_v9, %v7432_v42 }
 0x18b   : > { %11581 = vst [vmem:[#allocation10_spill] sm:$0xff] %v7936_v62  ;;  %v7938_v19 = vpop.permute.xlu0 %2214 }
 0x18c   : > { %11582 = vst [vmem:[#allocation48_spill] sm:$0xff] %v7938_v19  ;;  %v1395_v2 = vadd.f32 %v7934_v53, %v1394_v33  ;;  %v1746_v33 = vcombine.high %v749_v40, %v749_v40  ;;  %v7968_v52 = vrot.slane %v1407_v4, %v7432_v42  ;;  %v1761_v40 = vcombine.high %v1753_v58, %v1753_v58 }
 0x18d   : > { %3430 = vperm.xlu1 %6504, %v6125_v39   ;;  %v6126_v39 = vld [vmem:[%s11351_s3 + $0x130] sm:$0xff]  ;;  %v7987_v4 = vrot.slane %v7949_v50, %v7432_v42  ;;  %v1454_v35 = vcombine.high %v7971_v28, %v7971_v28  ;;  %v1640_v19 = vrot.slane %v1623_v13, %v7443_v3  ;;  %v1968_v13 = vrot.slane %v7977_v36, %v7443_v3 }
 0x18e   : > { %3425 = vperm.xlu0 %6503, %v6124_v45   ;;  %v1396_v34 = vadd.f32 %v7942_v11, %v1395_v2  ;;  %v7961_v45 = vrot.slane %v1414_v38, %v7432_v42  ;;  %v7963_v59 = vpop.permute.xlu1 %2229  ;;  %v7980_v38 = vrot.slane %v1931_v43, %v7432_v42  ;;  %v7992_v9 = vrot.slane %v1746_v33, %v7432_v42  ;;  %v6128_v43 = vld [vmem:[%s11352_s4 + $0x100] sm:$0xff] }
 0x18f   : > { %11583 = vst [vmem:[#allocation11_spill] sm:$0xff] %v7963_v59  ;;  %v7965_v2 = vpop.permute.xlu0 %2224  ;;  %11585 = vst [vmem:[#allocation85_spill] sm:$0xff] %v7987_v4  ;;  %v1628_v33 = vrot.slane %v7952_v54, %v7443_v3  ;;  %v8012_v58 = vrot.slane %v7968_v52, %v7432_v42  ;;  %v8017_v25 = vrot.slane %v1761_v40, %v7432_v42  ;;  %v6131_v40 = vld [vmem:[%s11352_s4 + $0x118] sm:$0xff] }
 0x190   : > { %11584 = vst [vmem:[#allocation50_spill] sm:$0xff] %v7965_v2  ;;  %6521 = vrcp.f32 %v1396_v34  ;;  %v6129_v34 = vld [vmem:[%s11352_s4 + $0x108] sm:$0xff]  ;;  %v8023_v2 = vrot.slane %v7974_v14, %v7432_v42  ;;  %v1644_v60 = vrot.slane %v7987_v4, %v7443_v3  ;;  %v1791_v59 = vcombine.high %v7995_v22, %v7995_v22 }
 0x191   : > { %3440 = vperm.xlu1 %6504, %v6127_v30   ;;  %v1621_v30 = vcombine.high %v7952_v54, %v7952_v54  ;;  %11588 = vst [vmem:[#allocation88_spill] sm:$0xff] %v8012_v58  ;;  %v1961_v54 = vcombine.high %v7977_v36, %v7977_v36  ;;  %v1459_v62 = vrot.slane %v7961_v45, %v7443_v3 }
 0x192   : > { %3435 = vperm.xlu0 %6503, %v6126_v39   ;;  %v1452_v39 = vcombine.high %v7961_v45, %v7961_v45  ;;  %v8004_v56 = vpop.permute.xlu1 %2256  ;;  %11589 = vst [vmem:[#allocation89_spill] sm:$0xff] %v8023_v2  ;;  %v1471_v15 = vrot.slane %v1454_v35, %v7443_v3  ;;  %v1475_v7 = vrot.slane %v8012_v58, %v7443_v3 }
 0x193   : > { %11586 = vst [vmem:[#allocation86_spill] sm:$0xff] %v8004_v56  ;;  %v8006_v6 = vpop.permute.xlu0 %2251  ;;  %v1963_v56 = vcombine.high %v7980_v38, %v7980_v38  ;;  %v1793_v45 = vcombine.high %v8017_v25, %v8017_v25  ;;  %v1984_v35 = vrot.slane %v8023_v2, %v7443_v3  ;;  %v1932_v4 = vcombine.high %v7974_v14, %v7974_v14 }
 0x194   : > { %11587 = vst [vmem:[#allocation87_spill] sm:$0xff] %v8006_v6  ;;  %v8037_v6 = vrot.slane %v7992_v9, %v7432_v42  ;;  %v1467_v47 = vrot.slane %v1452_v39, %v7443_v3  ;;  %v1976_v39 = vrot.slane %v1961_v54, %v7443_v3  ;;  %v1806_v54 = vrot.slane %v1791_v59, %v7443_v3 }
 0x195   : > { %3467 = vperm.xlu1 %6504, %v6129_v34   ;;  %v1636_v34 = vrot.slane %v1621_v30, %v7443_v3  ;;  %v1463_v30 = vrot.slane %v7971_v28, %v7443_v3  ;;  %v1972_v28 = vrot.slane %v7980_v38, %v7443_v3  ;;  %v1802_v38 = vrot.slane %v8017_v25, %v7443_v3 }
 0x196   : > { %3462 = vperm.xlu0 %6503, %v6128_v43   ;;  %11590 = vst [vmem:[#allocation90_spill] sm:$0xff] %v8037_v6  ;;  %v6130_v43 = vld [vmem:[%s11352_s4 + $0x110] sm:$0xff]  ;;  %v8050_v10 = vpop.permute.xlu1 %2266  ;;  %v1810_v29 = vrot.slane %v1793_v45, %v7443_v3 }
 0x197   : > { %11591 = vst [vmem:[#allocation91_spill] sm:$0xff] %v8050_v10  ;;  %v8052_v18 = vpop.permute.xlu0 %2261  ;;  %v1980_v10 = vrot.slane %v1963_v56, %v7443_v3  ;;  %v1814_v56 = vrot.slane %v8037_v6, %v7443_v3 }
 0x198   : > { %11592 = vst [vmem:[#allocation92_spill] sm:$0xff] %v8052_v18  ;;  %v6133_v18 = vld [vmem:[%s11352_s4 + $0x128] sm:$0xff] }
 0x199   : > { %3477 = vperm.xlu1 %6504, %v6131_v40   ;;  %v1798_v40 = vrot.slane %v7995_v22, %v7443_v3 }
 0x19a   : > { %3472 = vperm.xlu0 %6503, %v6130_v43   ;;  %v8070_v36 = vpop.eup %6521  ;;  %v6132_v43 = vld [vmem:[%s11352_s4 + $0x120] sm:$0xff]  ;;  %v8098_v22 = vpop.permute.xlu1 %2276 }
 0x19b   : > { %v8084_v16 = vmul.f32 %v8070_v36, %v7891_v44  ;;  %v8088_v27 = vmul.f32 %v8070_v36, %v7934_v53  ;;  %v8092_v25 = vmul.f32 %v8070_v36, %v7879_v48  ;;  %v8096_v59 = vmul.f32 %v8070_v36, %v7881_v17  ;;  %11594 = vst [vmem:[#allocation94_spill] sm:$0xff] %v8098_v22  ;;  %v8100_v5 = vpop.permute.xlu0 %2271 }
 0x19c   : > { %11595 = vst [vmem:[#allocation95_spill] sm:$0xff] %v8100_v5  ;;  %v8104_v44 = vmul.f32 %v8070_v36, %v7902_v31  ;;  %v8108_v53 = vmul.f32 %v8070_v36, %v7913_v0  ;;  %v8113_v48 = vmul.f32 %v8070_v36, %v7924_v24  ;;  %v6135_v0 = vld [vmem:[%s11352_s4 + $0x138] sm:$0xff] }
 0x19d   : > { %11593 = vst [vmem:[#allocation93_spill] sm:$0xff] %v8088_v27  ;;  %3487 = vperm.xlu1 %6504, %v6133_v18   ;;  %v1665_v17 = vmul.f32 %v1628_v33, %v8092_v25  ;;  %v1666_v22 = vmul.f32 %v1632_v46, %v8096_v59  ;;  %v1667_v5 = vmul.f32 %v1636_v34, %v8084_v16  ;;  %v6134_v46 = vld [vmem:[%s11352_s4 + $0x130] sm:$0xff] }
 0x19e   : > { %11596 = vst [vmem:[#allocation96_spill] sm:$0xff] %v8113_v48  ;;  %v1496_v31 = vmul.f32 %v1459_v62, %v8092_v25  ;;  %3482 = vperm.xlu0 %6503, %v6132_v43   ;;  %v8123_v45 = vmul.f32 %v1640_v19, %v8104_v44  ;;  %v8126_v24 = vmul.f32 %v1644_v60, %v8108_v53  ;;  %v11601_v19 = vld [vmem:[#allocation46_spill] sm:$0xff]  ;;  %v8141_v60 = vpop.permute.xlu1 %2286 }
 0x19f   : > { %v1497_v18 = vmul.f32 %v1463_v30, %v8096_v59  ;;  %v1498_v33 = vmul.f32 %v1467_v47, %v8084_v16  ;;  %v1673_v62 = vadd.f32 %v1666_v22, %v1665_v17  ;;  %v8134_v34 = vmul.f32 %v1471_v15, %v8104_v44  ;;  %v11602_v47 = vld [vmem:[#allocation47_spill] sm:$0xff] }
 0x1a0   : > { %11597 = vst [vmem:[#allocation97_spill] sm:$0xff] %v8123_v45  ;;  %11598 = vst [vmem:[#allocation98_spill] sm:$0xff] %v8126_v24  ;;  %v8137_v43 = vmul.f32 %v1475_v7, %v8108_v53  ;;  %v1560_v45 = vmul.f32 %v11601_v19, %v8096_v59  ;;  %v8143_v24 = vpop.permute.xlu0 %2281  ;;  %v1559_v1 = vmul.f32 %v11602_v47, %v8092_v25 }
 0x1a1   : > { %11599 = vst [vmem:[#allocation99_spill] sm:$0xff] %v8134_v34  ;;  %v1504_v30 = vadd.f32 %v1497_v18, %v1496_v31  ;;  %v2005_v57 = vmul.f32 %v1968_v13, %v8092_v25  ;;  %v2006_v22 = vmul.f32 %v1972_v28, %v8096_v59  ;;  %3497 = vperm.xlu1 %6504, %v6135_v0   ;;  %v6137_v31 = vld [vmem:[%s11351_s3 + $0x148] sm:$0xff] }
 0x1a2   : > { %11600 = vst [vmem:[#allocation100_spill] sm:$0xff] %v8137_v43  ;;  %v8149_v15 = vadd.f32 %v1673_v62, %v1667_v5  ;;  %v2007_v7 = vmul.f32 %v1976_v39, %v8084_v16  ;;  %v8153_v17 = vmul.f32 %v1980_v10, %v8104_v44  ;;  %v8156_v19 = vmul.f32 %v1984_v35, %v8108_v53  ;;  %v6136_v39 = vld [vmem:[%s11351_s3 + $0x140] sm:$0xff]  ;;  %v11628_v43 = vld [vmem:[#allocation20_spill] sm:$0xff] }
 0x1a3   : > { %3492 = vperm.xlu0 %6503, %v6134_v46   ;;  %v8161_v18 = vadd.f32 %v1504_v30, %v1498_v33  ;;  %v1567_v13 = vadd.f32 %v1560_v45, %v1559_v1  ;;  %v2013_v28 = vadd.f32 %v2006_v22, %v2005_v57  ;;  %v1835_v5 = vmul.f32 %v1798_v40, %v8092_v25  ;;  %v8175_v33 = vpop.permute.xlu1 %2419  ;;  %v11610_v40 = vld [vmem:[#allocation53_spill] sm:$0xff]  ;;  %v6138_v30 = vld [vmem:[%s11351_s3 + $0x150] sm:$0xff] }
 0x1a4   : > { %11603 = vst [vmem:[#allocation46_spill] sm:$0xff] %v8149_v15  ;;  %11604 = vst [vmem:[#allocation47_spill] sm:$0xff] %v8153_v17  ;;  %v1836_v10 = vmul.f32 %v1802_v38, %v8096_v59  ;;  %v1837_v35 = vmul.f32 %v1806_v54, %v8084_v16  ;;  %v8170_v0 = vmul.f32 %v1810_v29, %v8104_v44  ;;  %v8177_v1 = vpop.permute.xlu0 %2414  ;;  %v6139_v29 = vld [vmem:[%s11351_s3 + $0x158] sm:$0xff] }
 0x1a5   : > { %11605 = vst [vmem:[#allocation101_spill] sm:$0xff] %v8156_v19  ;;  %11606 = vst [vmem:[#allocation102_spill] sm:$0xff] %v8161_v18  ;;  %v8173_v46 = vmul.f32 %v1814_v56, %v8108_v53  ;;  %v8179_v57 = vadd.f32 %v2013_v28, %v2007_v7  ;;  %v1561_v45 = vmul.f32 %v11610_v40, %v8084_v16  ;;  %3630 = vperm.xlu1 %6504, %v6137_v31   ;;  %v11611_v38 = vld [vmem:[#allocation52_spill] sm:$0xff]  ;;  %v11614_v28 = vld [vmem:[#allocation59_spill] sm:$0xff] }
 0x1a6   : > { %11607 = vst [vmem:[#allocation103_spill] sm:$0xff] %v8170_v0  ;;  %v1843_v62 = vadd.f32 %v1836_v10, %v1835_v5  ;;  %v1562_v54 = vmul.f32 %v11611_v38, %v8104_v44  ;;  %v8195_v22 = vmul.f32 %v8070_v36, %v7942_v11  ;;  %v1563_v5 = vmul.f32 %v11614_v28, %v8108_v53  ;;  %v11615_v10 = vld [vmem:[#allocation58_spill] sm:$0xff]  ;;  %v6140_v11 = vld [vmem:[%s11351_s3 + $0x160] sm:$0xff]  ;;  %v11617_v38 = vld [vmem:[#allocation43_spill] sm:$0xff] }
 0x1a7   : > { %11608 = vst [vmem:[#allocation104_spill] sm:$0xff] %v8173_v46  ;;  %11609 = vst [vmem:[#allocation105_spill] sm:$0xff] %v8179_v57  ;;  %3625 = vperm.xlu0 %6503, %v6136_v39   ;;  %v1568_v56 = vadd.f32 %v1567_v13, %v1561_v45  ;;  %v8197_v7 = vpop.permute.xlu1 %2429  ;;  %v6141_v13 = vld [vmem:[%s11351_s3 + $0x168] sm:$0xff]  ;;  %v6143_v28 = vld [vmem:[%s11351_s3 + $0x178] sm:$0xff]  ;;  %v1592_v17 = vcombine.high %v7949_v50, %v7949_v50 }
 0x1a8   : > { %v8191_v47 = vadd.f32 %v1843_v62, %v1837_v35  ;;  %11613 = vst [vmem:[#allocation52_spill] sm:$0xff] %v8195_v22  ;;  %v8199_v31 = vpop.permute.xlu0 %2424  ;;  %v1564_v35 = vmul.f32 %v11615_v10, %v8113_v48  ;;  %v11616_v62 = vld [vmem:[#allocation24_spill] sm:$0xff]  ;;  %v6146_v50 = vld [vmem:[%s11352_s4 + $0x150] sm:$0xff] }
 0x1a9   : > { %v1569_v39 = vadd.f32 %v1568_v56, %v1562_v54  ;;  %3640 = vperm.xlu1 %6504, %v6139_v29   ;;  %v824_v29 = vadd.f32 %v11617_v38, %v11616_v62  ;;  %v11618_v54 = vld [vmem:[#allocation65_spill] sm:$0xff]  ;;  %v11622_v62 = vld [vmem:[#allocation23_spill] sm:$0xff] }
 0x1aa   : > { %11612 = vst [vmem:[#allocation53_spill] sm:$0xff] %v8191_v47  ;;  %v1565_v56 = vmul.f32 %v11618_v54, %v8088_v27  ;;  %v6142_v47 = vld [vmem:[%s11351_s3 + $0x170] sm:$0xff]  ;;  %v11623_v38 = vld [vmem:[#allocation41_spill] sm:$0xff] }
 0x1ab   : > { %3635 = vperm.xlu0 %6503, %v6138_v30   ;;  %v1570_v40 = vadd.f32 %v1569_v39, %v1563_v5  ;;  %v8211_v36 = vpop.permute.xlu1 %2439  ;;  %v11619_v5 = vld [vmem:[#allocation22_spill] sm:$0xff]  ;;  %v11620_v39 = vld [vmem:[#allocation39_spill] sm:$0xff]  ;;  %v809_v0 = vadd.f32 %v11623_v38, %v11622_v62  ;;  %v6144_v62 = vld [vmem:[%s11352_s4 + $0x140] sm:$0xff] }
 0x1ac   : > { %v8213_v45 = vpop.permute.xlu0 %2434  ;;  %v814_v10 = vadd.f32 %v11620_v39, %v11619_v5  ;;  %v11626_v5 = vld [vmem:[#allocation45_spill] sm:$0xff] }
 0x1ad   : > { %v1571_v30 = vadd.f32 %v1570_v40, %v1564_v35  ;;  %3650 = vperm.xlu1 %6504, %v6141_v13   ;;  %v3998_v35 = vcombine.high %v824_v29, %v824_v29  ;;  %v4005_v40 = vrot.slane %v824_v29, %v7432_v42  ;;  %v3297_v38 = vcombine.high %v809_v0, %v809_v0 }
 0x1ae   : > { %v8249_v29 = vrot.slane %v814_v10, %v7432_v42  ;;  %v8275_v15 = vrot.slane %v809_v0, %v7432_v42 }
 0x1af   : > { %3645 = vperm.xlu0 %6503, %v6140_v11   ;;  %v8224_v46 = vadd.f32 %v1571_v30, %v1565_v56  ;;  %v8231_v54 = vpop.permute.xlu1 %2449  ;;  %v6145_v11 = vld [vmem:[%s11352_s4 + $0x148] sm:$0xff]  ;;  %v3517_v56 = vcombine.high %v814_v10, %v814_v10  ;;  %v11625_v30 = vld [vmem:[#allocation25_spill] sm:$0xff] }
 0x1b0   : > { %v8233_v13 = vpop.permute.xlu0 %2444  ;;  %v819_v39 = vadd.f32 %v11626_v5, %v11625_v30  ;;  %11627 = vst [vmem:[#allocation24_spill] sm:$0xff] %v8249_v29  ;;  %v1730_v30 = vmul.f32 %v7678_v32, %v8096_v59  ;;  %v6147_v5 = vld [vmem:[%s11352_s4 + $0x158] sm:$0xff]  ;;  %v11632_v32 = vld [vmem:[#allocation21_spill] sm:$0xff] }
 0x1b1   : > { %11621 = vst [vmem:[#allocation59_spill] sm:$0xff] %v8224_v46  ;;  %11624 = vst [vmem:[#allocation58_spill] sm:$0xff] %v8233_v13  ;;  %3660 = vperm.xlu1 %6504, %v6143_v28   ;;  %v4013_v28 = vcombine.high %v4005_v40, %v4005_v40  ;;  %v11629_v46 = vld [vmem:[#allocation36_spill] sm:$0xff]  ;;  %v8264_v10 = vrot.slane %v3517_v56, %v7432_v42 }
 0x1b2   : > { %v8261_v18 = vadd.f32 %v11629_v46, %v11628_v43  ;;  %v8278_v43 = vrot.slane %v3297_v38, %v7432_v42  ;;  %v1729_v46 = vmul.f32 %v7680_v51, %v8092_v25  ;;  %v8295_v38 = vrot.slane %v1592_v17, %v7432_v42 }
 0x1b3   : > { %3655 = vperm.xlu0 %6503, %v6142_v47   ;;  %v8244_v19 = vpop.permute.xlu1 %2476  ;;  %v4012_v47 = vrot.slane %v3998_v35, %v7432_v42  ;;  %11631 = vst [vmem:[#allocation65_spill] sm:$0xff] %v8264_v10  ;;  %v3828_v35 = vcombine.high %v819_v39, %v819_v39  ;;  %v8292_v0 = vrot.slane %v4013_v28, %v7432_v42 }
 0x1b4   : > { %v8246_v57 = vpop.permute.xlu0 %2471  ;;  %11630 = vst [vmem:[#allocation43_spill] sm:$0xff] %v8261_v18  ;;  %11635 = vst [vmem:[#allocation39_spill] sm:$0xff] %v8278_v43  ;;  %v1423_v51 = vcombine.high %v7968_v52, %v7968_v52  ;;  %v8310_v17 = vrot.slane %v8249_v29, %v7432_v42 }
 0x1b5   : > { %3687 = vperm.xlu1 %6504, %v6145_v11   ;;  %v3835_v11 = vrot.slane %v819_v39, %v7432_v42  ;;  %v4014_v18 = vcombine.high %v4012_v47, %v4012_v47  ;;  %11638 = vst [vmem:[#allocation25_spill] sm:$0xff] %v8292_v0  ;;  %11639 = vst [vmem:[#allocation45_spill] sm:$0xff] %v8295_v38 }
 0x1b6   : > { %11642 = vst [vmem:[#allocation20_spill] sm:$0xff] %v8310_v17  ;;  %v8343_v17 = vrot.slane %v1423_v51, %v7432_v42  ;;  %v6155_v51 = vld [vmem:[%s11353_s5 + $0x208] sm:$0xff] }
 0x1b7   : > { %3682 = vperm.xlu0 %6503, %v6144_v62   ;;  %v11633_v62 = vld [vmem:[#allocation37_spill] sm:$0xff]  ;;  %v8282_v56 = vpop.permute.xlu1 %2486  ;;  %v3843_v52 = vcombine.high %v3835_v11, %v3835_v11  ;;  %v8334_v10 = vrot.slane %v4014_v18, %v7432_v42  ;;  %v8346_v29 = vrot.slane %v3835_v11, %v7432_v42  ;;  %v6151_v18 = vld [vmem:[%s11352_s4 + $0x178] sm:$0xff]  ;;  %v6150_v11 = vld [vmem:[%s11352_s4 + $0x170] sm:$0xff] }
 0x1b8   : > { %v8272_v34 = vadd.f32 %v11633_v62, %v11632_v32  ;;  %11636 = vst [vmem:[#allocation23_spill] sm:$0xff] %v8282_v56  ;;  %v8284_v39 = vpop.permute.xlu0 %2481  ;;  %v8289_v32 = vrot.slane %v4005_v40, %v7432_v42  ;;  %v11640_v62 = vld [vmem:[#allocation26_spill] sm:$0xff]  ;;  %v8301_v56 = vadd.f32 %v1730_v30, %v1729_v46  ;;  %v8322_v46 = vrot.slane %v8275_v15, %v7432_v42 }
 0x1b9   : > { %3697 = vperm.xlu1 %6504, %v6147_v5   ;;  %v6149_v40 = vld [vmem:[%s11352_s4 + $0x168] sm:$0xff]  ;;  %v3842_v5 = vrot.slane %v3828_v35, %v7432_v42  ;;  %11645 = vst [vmem:[#allocation37_spill] sm:$0xff] %v8334_v10  ;;  %v4045_v30 = vcombine.high %v8292_v0, %v8292_v0  ;;  %11646 = vst [vmem:[#allocation26_spill] sm:$0xff] %v8343_v17  ;;  %v8410_v10 = vrot.slane %v1932_v4, %v7432_v42 }
 0x1ba   : > { %11634 = vst [vmem:[#allocation22_spill] sm:$0xff] %v8272_v34  ;;  %11637 = vst [vmem:[#allocation41_spill] sm:$0xff] %v8289_v32  ;;  %v11641_v34 = vld [vmem:[#allocation49_spill] sm:$0xff]  ;;  %v11659_v17 = vld [vmem:[#allocation14_spill] sm:$0xff] }
 0x1bb   : > { %v834_v13 = vadd.f32 %v11641_v34, %v11640_v62  ;;  %3692 = vperm.xlu0 %6503, %v6146_v50   ;;  %v6148_v34 = vld [vmem:[%s11352_s4 + $0x160] sm:$0xff]  ;;  %11643 = vst [vmem:[#allocation36_spill] sm:$0xff] %v8322_v46  ;;  %v8325_v62 = vrot.slane %v4012_v47, %v7432_v42  ;;  %v8327_v28 = vpop.permute.xlu1 %2496  ;;  %v4043_v50 = vcombine.high %v8289_v32, %v8289_v32  ;;  %11647 = vst [vmem:[#allocation49_spill] sm:$0xff] %v8346_v29  ;;  %v11661_v46 = vld [vmem:[#allocation15_spill] sm:$0xff] }
 0x1bc   : > { %v8329_v35 = vpop.permute.xlu0 %2491  ;;  %v3844_v43 = vcombine.high %v3842_v5, %v3842_v5  ;;  %v8365_v38 = vrot.slane %v3842_v5, %v7432_v42  ;;  %v8375_v32 = vrot.slane %v4045_v30, %v7443_v3 }
 0x1bd   : > { %11644 = vst [vmem:[#allocation21_spill] sm:$0xff] %v8325_v62  ;;  %3707 = vperm.xlu1 %6504, %v6149_v40   ;;  %v4338_v22 = vcombine.high %v834_v13, %v834_v13  ;;  %v8354_v40 = vrot.slane %v3843_v52, %v7432_v42  ;;  %v4345_v47 = vrot.slane %v834_v13, %v7432_v42  ;;  %v6154_v62 = vld [vmem:[%s11353_s5 + $0x200] sm:$0xff] }
 0x1be   : > { %11649 = vst [vmem:[#allocation107_spill] sm:$0xff] %v8365_v38  ;;  %v8372_v13 = vrot.slane %v4043_v50, %v7443_v3  ;;  %11652 = vst [vmem:[#allocation110_spill] sm:$0xff] %v8375_v32  ;;  %v3873_v50 = vcombine.high %v8346_v29, %v8346_v29  ;;  %v11655_v32 = vld [vmem:[#allocation27_spill] sm:$0xff] }
 0x1bf   : > { %3702 = vperm.xlu0 %6503, %v6148_v34   ;;  %11648 = vst [vmem:[#allocation106_spill] sm:$0xff] %v8354_v40  ;;  %v8369_v52 = vpop.permute.xlu1 %2506  ;;  %v4352_v30 = vrot.slane %v4338_v22, %v7432_v42  ;;  %v8394_v34 = vrot.slane %v3844_v43, %v7432_v42  ;;  %v4353_v14 = vcombine.high %v4345_v47, %v4345_v47  ;;  %11657 = vst [vmem:[#allocation27_spill] sm:$0xff] %v8410_v10  ;;  %v11690_v10 = vld [vmem:[#allocation78_spill] sm:$0xff] }
 0x1c0   : > { %11650 = vst [vmem:[#allocation108_spill] sm:$0xff] %v8369_v52  ;;  %11651 = vst [vmem:[#allocation109_spill] sm:$0xff] %v8372_v13  ;;  %v8381_v0 = vpop.permute.xlu0 %2501  ;;  %v11656_v13 = vld [vmem:[#allocation51_spill] sm:$0xff]  ;;  %v11662_v52 = vld [vmem:[#allocation62_spill] sm:$0xff]  ;;  %v8426_v4 = vrot.slane %v3873_v50, %v7443_v3 }
 0x1c1   : > { %11653 = vst [vmem:[#allocation111_spill] sm:$0xff] %v8381_v0  ;;  %3717 = vperm.xlu1 %6504, %v6151_v18   ;;  %11654 = vst [vmem:[#allocation112_spill] sm:$0xff] %v8394_v34  ;;  %v3875_v18 = vcombine.high %v8354_v40, %v8354_v40  ;;  %v829_v5 = vadd.f32 %v11656_v13, %v11655_v32  ;;  %v8415_v32 = vrot.slane %v4345_v47, %v7432_v42  ;;  %v11660_v0 = vld [vmem:[#allocation60_spill] sm:$0xff]  ;;  %v11679_v50 = vld [vmem:[#allocation61_spill] sm:$0xff] }
 0x1c2   : > { %v1762_v13 = vcombine.high %v7992_v9, %v7992_v9  ;;  %v774_v22 = vadd.f32 %v11660_v0, %v11659_v17  ;;  %11664 = vst [vmem:[#allocation60_spill] sm:$0xff] %v8426_v4  ;;  %v4354_v47 = vcombine.high %v4352_v30, %v4352_v30  ;;  %v8431_v40 = vrot.slane %v4352_v30, %v7432_v42  ;;  %v6157_v9 = vld [vmem:[%s11353_s5 + $0x218] sm:$0xff]  ;;  %v11671_v17 = vld [vmem:[#allocation55_spill] sm:$0xff] }
 0x1c3   : > { %3712 = vperm.xlu0 %6503, %v6150_v11   ;;  %v8412_v58 = vpop.permute.xlu1 %2737  ;;  %11658 = vst [vmem:[#allocation51_spill] sm:$0xff] %v8415_v32  ;;  %v769_v11 = vadd.f32 %v11662_v52, %v11661_v46  ;;  %v8437_v0 = vrot.slane %v3875_v18, %v7443_v3  ;;  %v8442_v46 = vrot.slane %v4353_v14, %v7432_v42  ;;  %v6156_v52 = vld [vmem:[%s11353_s5 + $0x210] sm:$0xff]  ;;  %v11668_v30 = vld [vmem:[#allocation12_spill] sm:$0xff]  ;;  %v11669_v18 = vld [vmem:[#allocation54_spill] sm:$0xff] }
 0x1c4   : > { %v8423_v29 = vpop.permute.xlu0 %2732  ;;  %11665 = vst [vmem:[#allocation15_spill] sm:$0xff] %v8431_v40  ;;  %v8453_v43 = vadd.f32 %v11669_v18, %v11668_v30  ;;  %v8464_v34 = vrot.slane %v1762_v13, %v7432_v42  ;;  %v8469_v30 = vrot.slane %v4354_v47, %v7432_v42  ;;  %v8476_v18 = vrot.slane %v829_v5, %v7432_v42  ;;  %v6159_v13 = vld [vmem:[%s11353_s5 + $0x228] sm:$0xff] }
 0x1c5   : > { %11663 = vst [vmem:[#allocation14_spill] sm:$0xff] %v8423_v29  ;;  %3948 = vperm.xlu1 %6504, %v6155_v51   ;;  %11666 = vst [vmem:[#allocation62_spill] sm:$0xff] %v8437_v0  ;;  %v4168_v51 = vcombine.high %v829_v5, %v829_v5  ;;  %v11670_v0 = vld [vmem:[#allocation28_spill] sm:$0xff]  ;;  %v2086_v2 = vcombine.high %v769_v11, %v769_v11  ;;  %v6158_v5 = vld [vmem:[%s11353_s5 + $0x220] sm:$0xff]  ;;  %v8512_v40 = vrot.slane %v769_v11, %v7432_v42 }
 0x1c6   : > { %11667 = vst [vmem:[#allocation113_spill] sm:$0xff] %v8442_v46  ;;  %v8457_v4 = vadd.f32 %v11671_v17, %v11670_v0  ;;  %11673 = vst [vmem:[#allocation54_spill] sm:$0xff] %v8464_v34  ;;  %v11678_v0 = vld [vmem:[#allocation30_spill] sm:$0xff]  ;;  %v11684_v46 = vld [vmem:[#allocation56_spill] sm:$0xff] }
 0x1c7   : > { %3943 = vperm.xlu0 %6503, %v6154_v62   ;;  %v8459_v14 = vpop.permute.xlu1 %2747  ;;  %v2306_v62 = vcombine.high %v774_v22, %v774_v22  ;;  %11675 = vst [vmem:[#allocation55_spill] sm:$0xff] %v8469_v30  ;;  %11676 = vst [vmem:[#allocation114_spill] sm:$0xff] %v8476_v18  ;;  %v8486_v38 = vrot.slane %v4168_v51, %v7432_v42  ;;  %v8490_v17 = vadd.f32 %v11679_v50, %v11678_v0  ;;  %v11689_v34 = vld [vmem:[#allocation77_spill] sm:$0xff] }
 0x1c8   : > { %11672 = vst [vmem:[#allocation12_spill] sm:$0xff] %v8457_v4  ;;  %v8466_v29 = vpop.permute.xlu0 %2742  ;;  %v8500_v30 = vrot.slane %v774_v22, %v7432_v42  ;;  %v1731_v51 = vmul.f32 %v7713_v41, %v8084_v16  ;;  %v8523_v22 = vrot.slane %v8476_v18, %v7432_v42  ;;  %v2101_v18 = vcombine.high %v8512_v40, %v8512_v40 }
 0x1c9   : > { %11674 = vst [vmem:[#allocation28_spill] sm:$0xff] %v8466_v29  ;;  %3958 = vperm.xlu1 %6504, %v6157_v9   ;;  %11677 = vst [vmem:[#allocation115_spill] sm:$0xff] %v8486_v38  ;;  %v8509_v0 = vrot.slane %v2306_v62, %v7432_v42  ;;  %v1732_v62 = vmul.f32 %v7711_v26, %v8104_v44  ;;  %v8541_v26 = vrot.slane %v8490_v17, %v7432_v42 }
 0x1ca   : > { %11682 = vst [vmem:[#allocation116_spill] sm:$0xff] %v8523_v22  ;;  %v1738_v50 = vadd.f32 %v8301_v56, %v1731_v51  ;;  %v6160_v56 = vld [vmem:[%s11353_s5 + $0x230] sm:$0xff]  ;;  %v8550_v51 = vrot.slane %v8500_v30, %v7432_v42  ;;  %v1899_v22 = vmul.f32 %v7789_v63, %v8092_v25  ;;  %v6162_v63 = vld [vmem:[%s11353_s5 + $0x240] sm:$0xff] }
 0x1cb   : > { %3953 = vperm.xlu0 %6503, %v6156_v52   ;;  %v8504_v47 = vpop.permute.xlu1 %2757  ;;  %v8515_v52 = vrot.slane %v2086_v2, %v7432_v42  ;;  %v6161_v2 = vld [vmem:[%s11353_s5 + $0x238] sm:$0xff] }
 0x1cc   : > { %11680 = vst [vmem:[#allocation30_spill] sm:$0xff] %v8504_v47  ;;  %v8517_v9 = vpop.permute.xlu0 %2752  ;;  %v11703_v47 = vld [vmem:[#allocation11_spill] sm:$0xff] }
 0x1cd   : > { %11681 = vst [vmem:[#allocation61_spill] sm:$0xff] %v8517_v9  ;;  %3968 = vperm.xlu1 %6504, %v6159_v13   ;;  %v11683_v13 = vld [vmem:[#allocation13_spill] sm:$0xff]  ;;  %v2102_v38 = vcombine.high %v8515_v52, %v8515_v52  ;;  %v11702_v9 = vld [vmem:[#allocation48_spill] sm:$0xff] }
 0x1ce   : > { %v8535_v41 = vadd.f32 %v11684_v46, %v11683_v13  ;;  %v1733_v46 = vmul.f32 %v7744_v21, %v8108_v53  ;;  %v1739_v13 = vadd.f32 %v1738_v50, %v1732_v62  ;;  %v8568_v21 = vrot.slane %v8512_v40, %v7432_v42 }
 0x1cf   : > { %3963 = vperm.xlu0 %6503, %v6158_v5   ;;  %v1900_v5 = vmul.f32 %v7787_v37, %v8096_v59  ;;  %v1734_v50 = vmul.f32 %v7742_v12, %v8113_v48  ;;  %v1735_v37 = vmul.f32 %v7771_v8, %v8088_v27  ;;  %v1901_v40 = vmul.f32 %v7810_v20, %v8084_v16 }
 0x1d0   : > { %v8554_v11 = vpop.permute.xlu1 %2767  ;;  %v1740_v62 = vadd.f32 %v1739_v13, %v1733_v46  ;;  %v1904_v12 = vmul.f32 %v7821_v49, %v8113_v48  ;;  %v2070_v13 = vmul.f32 %v7845_v61, %v8096_v59  ;;  %v2069_v8 = vmul.f32 %v7847_v55, %v8092_v25  ;;  %v11693_v59 = vld [vmem:[#allocation80_spill] sm:$0xff] }
 0x1d1   : > { %11685 = vst [vmem:[#allocation13_spill] sm:$0xff] %v8554_v11  ;;  %v8564_v32 = vpop.permute.xlu0 %2762  ;;  %3978 = vperm.xlu1 %6504, %v6161_v2   ;;  %v6163_v11 = vld [vmem:[%s11353_s5 + $0x248] sm:$0xff]  ;;  %v1902_v2 = vmul.f32 %v7808_v23, %v8104_v44  ;;  %v1907_v46 = vadd.f32 %v1900_v5, %v1899_v22  ;;  %v11688_v23 = vld [vmem:[#allocation75_spill] sm:$0xff]  ;;  %v1905_v49 = vmul.f32 %v11689_v34, %v8088_v27  ;;  %v6165_v34 = vld [vmem:[%s11353_s5 + $0x258] sm:$0xff] }
 0x1d2   : > { %11686 = vst [vmem:[#allocation56_spill] sm:$0xff] %v8564_v32  ;;  %v1903_v20 = vmul.f32 %v11688_v23, %v8108_v53  ;;  %v2072_v32 = vmul.f32 %v11690_v10, %v8104_v44  ;;  %v2077_v25 = vadd.f32 %v2070_v13, %v2069_v8  ;;  %v11694_v44 = vld [vmem:[#allocation81_spill] sm:$0xff] }
 0x1d3   : > { %3973 = vperm.xlu0 %6503, %v6160_v56   ;;  %v1741_v56 = vadd.f32 %v1740_v62, %v1734_v50  ;;  %v11691_v50 = vld [vmem:[#allocation79_spill] sm:$0xff]  ;;  %v1908_v55 = vadd.f32 %v1907_v46, %v1901_v40  ;;  %v2074_v62 = vmul.f32 %v11693_v59, %v8113_v48  ;;  %v2073_v10 = vmul.f32 %v11694_v44, %v8108_v53  ;;  %v11697_v40 = vld [vmem:[#allocation84_spill] sm:$0xff]  ;;  %v11698_v8 = vld [vmem:[#allocation9_spill] sm:$0xff] }
 0x1d4   : > { %v8592_v6 = vpop.permute.xlu1 %2907  ;;  %v2071_v22 = vmul.f32 %v11691_v50, %v8084_v16  ;;  %v11695_v16 = vld [vmem:[#allocation83_spill] sm:$0xff]  ;;  %v2235_v50 = vmul.f32 %v11698_v8, %v8535_v41  ;;  %v11699_v53 = vld [vmem:[#allocation44_spill] sm:$0xff]  ;;  %v2138_v8 = vrot.slane %v8568_v21, %v7443_v3 }
 0x1d5   : > { %11687 = vst [vmem:[#allocation117_spill] sm:$0xff] %v8592_v6  ;;  %v8602_v5 = vpop.permute.xlu0 %2902  ;;  %4118 = vperm.xlu1 %6504, %v6163_v11   ;;  %v8604_v61 = vadd.f32 %v1741_v56, %v1735_v37  ;;  %v2075_v23 = vmul.f32 %v11695_v16, %v8088_v27  ;;  %v11696_v11 = vld [vmem:[#allocation42_spill] sm:$0xff]  ;;  %v2232_v56 = vmul.f32 %v11697_v40, %v8535_v41 }
 0x1d6   : > { %11692 = vst [vmem:[#allocation75_spill] sm:$0xff] %v8602_v5  ;;  %v2233_v37 = vmul.f32 %v11696_v11, %v8535_v41  ;;  %v1909_v46 = vadd.f32 %v1908_v55, %v1902_v2  ;;  %v2078_v13 = vadd.f32 %v2077_v25, %v2071_v22  ;;  %v2234_v59 = vmul.f32 %v11699_v53, %v8535_v41  ;;  %v11701_v16 = vld [vmem:[#allocation10_spill] sm:$0xff] }
 0x1d7   : > { %4113 = vperm.xlu0 %6503, %v6162_v63   ;;  %v6164_v63 = vld [vmem:[%s11353_s5 + $0x250] sm:$0xff]  ;;  %v2237_v11 = vmul.f32 %v11701_v16, %v8535_v41  ;;  %v8632_v40 = vmul.f32 %v11702_v9, %v8535_v41  ;;  %v8636_v5 = vmul.f32 %v11703_v47, %v8535_v41  ;;  %v2123_v2 = vrot.slane %v2101_v18, %v7432_v42  ;;  %v6167_v9 = vld [vmem:[%s11353_s5 + $0x268] sm:$0xff] }
 0x1d8   : > { %v8626_v44 = vpop.permute.xlu1 %2917  ;;  %v1910_v55 = vadd.f32 %v1909_v46, %v1903_v20  ;;  %v2079_v25 = vadd.f32 %v2078_v13, %v2072_v32  ;;  %v2131_v53 = vcombine.high %v8568_v21, %v8568_v21  ;;  %v2130_v18 = vrot.slane %v2102_v38, %v7432_v42  ;;  %v6166_v32 = vld [vmem:[%s11353_s5 + $0x260] sm:$0xff]  ;;  %v11707_v38 = vld [vmem:[#allocation86_spill] sm:$0xff] }
 0x1d9   : > { %11700 = vst [vmem:[#allocation77_spill] sm:$0xff] %v8626_v44  ;;  %v8639_v22 = vpop.permute.xlu0 %2912  ;;  %4128 = vperm.xlu1 %6504, %v6165_v34   ;;  %v2142_v47 = vrot.slane %v2123_v2, %v7443_v3  ;;  %v2133_v16 = vcombine.high %v2123_v2, %v2123_v2  ;;  %v2116_v20 = vrot.slane %v8515_v52, %v7432_v42 }
 0x1da   : > { %11704 = vst [vmem:[#allocation78_spill] sm:$0xff] %v8639_v22  ;;  %v1911_v34 = vadd.f32 %v1910_v55, %v1904_v12  ;;  %v2080_v46 = vadd.f32 %v2079_v25, %v2073_v10  ;;  %v8656_v21 = vmul.f32 %v2138_v8, %v8535_v41  ;;  %v2146_v6 = vrot.slane %v2131_v53, %v7443_v3 }
 0x1db   : > { %4123 = vperm.xlu0 %6503, %v6164_v63   ;;  %v11705_v63 = vld [vmem:[#allocation87_spill] sm:$0xff]  ;;  %v8662_v2 = vmul.f32 %v2142_v47, %v8535_v41  ;;  %v2290_v44 = vmul.f32 %v11707_v38, %v2142_v47  ;;  %v2150_v52 = vrot.slane %v2133_v16, %v7443_v3  ;;  %v2158_v25 = vrot.slane %v2130_v18, %v7443_v3 }
 0x1dc   : > { %v2289_v13 = vmul.f32 %v11705_v63, %v2138_v8  ;;  %v8659_v22 = vpop.permute.xlu1 %2927  ;;  %v8669_v12 = vadd.f32 %v1911_v34, %v1905_v49  ;;  %v2081_v10 = vadd.f32 %v2080_v46, %v2074_v62  ;;  %v6169_v8 = vld [vmem:[%s11353_s5 + $0x278] sm:$0xff]  ;;  %v8686_v62 = vmul.f32 %v2146_v6, %v8535_v41 }
 0x1dd   : > { %11706 = vst [vmem:[#allocation79_spill] sm:$0xff] %v8659_v22  ;;  %v8667_v29 = vpop.permute.xlu0 %2922  ;;  %4138 = vperm.xlu1 %6504, %v6167_v9   ;;  %v8679_v47 = vadd.f32 %v2290_v44, %v2233_v37  ;;  %v8682_v53 = vmul.f32 %v2150_v52, %v8535_v41  ;;  %v11710_v9 = vld [vmem:[#allocation91_spill] sm:$0xff]  ;;  %v8697_v37 = vmul.f32 %v2158_v25, %v8535_v41  ;;  %v11713_v44 = vld [vmem:[#allocation94_spill] sm:$0xff] }
 0x1de   : > { %11708 = vst [vmem:[#allocation80_spill] sm:$0xff] %v8667_v29  ;;  %11709 = vst [vmem:[#allocation81_spill] sm:$0xff] %v8669_v12  ;;  %v8671_v55 = vadd.f32 %v2289_v13, %v2232_v56  ;;  %v2292_v49 = vmul.f32 %v11710_v9, %v2150_v52  ;;  %v6168_v56 = vld [vmem:[%s11353_s5 + $0x270] sm:$0xff]  ;;  %v8693_v16 = vadd.f32 %v2081_v10, %v2075_v23  ;;  %v11716_v23 = vld [vmem:[#allocation50_spill] sm:$0xff] }
 0x1df   : > { %4133 = vperm.xlu0 %6503, %v6166_v32   ;;  %v11712_v32 = vld [vmem:[#allocation92_spill] sm:$0xff]  ;;  %v2294_v46 = vmul.f32 %v11713_v44, %v2158_v25  ;;  %v2154_v38 = vrot.slane %v2116_v20, %v7443_v3  ;;  %v2134_v52 = vcombine.high %v2130_v18, %v2130_v18  ;;  %v2132_v9 = vcombine.high %v2116_v20, %v2116_v20  ;;  %v11717_v20 = vld [vmem:[#allocation95_spill] sm:$0xff] }
 0x1e0   : > { %11711 = vst [vmem:[#allocation83_spill] sm:$0xff] %v8693_v16  ;;  %v2291_v34 = vmul.f32 %v11712_v32, %v2146_v6  ;;  %v8700_v63 = vpop.permute.xlu1 %2937  ;;  %v8702_v13 = vadd.f32 %v2292_v49, %v2235_v50  ;;  %v2238_v10 = vmul.f32 %v11716_v23, %v8535_v41  ;;  %v2453_v25 = vmul.f32 %v8175_v33, %v8453_v43  ;;  %v6171_v50 = vld [vmem:[%s11353_s5 + $0x288] sm:$0xff] }
 0x1e1   : > { %11714 = vst [vmem:[#allocation42_spill] sm:$0xff] %v8700_v63  ;;  %v8705_v12 = vpop.permute.xlu0 %2932  ;;  %4148 = vperm.xlu1 %6504, %v6169_v8   ;;  %v8711_v32 = vadd.f32 %v2294_v46, %v2237_v11  ;;  %v8719_v18 = vmul.f32 %v2154_v38, %v8535_v41  ;;  %v2293_v8 = vmul.f32 %v11717_v20, %v2154_v38  ;;  %v6170_v11 = vld [vmem:[%s11353_s5 + $0x280] sm:$0xff]  ;;  %v8763_v23 = vstv %s8674_s12  ;;  %v6172_v20 = vld [vmem:[%s11353_s5 + $0x290] sm:$0xff]  ;;  %s6598_s12 = scalar_lea.vmem %s6597_s13, 4096 }
 0x1e2   : > { %11715 = vst [vmem:[#allocation84_spill] sm:$0xff] %v8705_v12  ;;  %v8709_v6 = vadd.f32 %v2291_v34, %v2234_v59  ;;  %v2166_v49 = vrot.slane %v2134_v52, %v7443_v3  ;;  %v2162_v59 = vrot.slane %v2132_v9, %v7443_v3  ;;  %v2452_v33 = vmul.f32 %v8177_v1, %v8453_v43 }
 0x1e3   : > { %4143 = vperm.xlu0 %6503, %v6168_v56   ;;  %v8731_v56 = vmul.f32 %v8197_v7, %v8453_v43  ;;  %v2454_v34 = vmul.f32 %v8199_v31, %v8453_v43  ;;  %v8737_v44 = vmul.f32 %v8211_v36, %v8453_v43  ;;  %v8742_v38 = vadd.f32 %v2293_v8, %v8632_v40 }
 0x1e4   : > { %v8739_v46 = vpop.permute.xlu1 %3077  ;;  %v8745_v52 = vmul.f32 %v2166_v49, %v8535_v41  ;;  %v2296_v1 = vmul.f32 %v8141_v60, %v2166_v49  ;;  %v8749_v7 = vmul.f32 %v2162_v59, %v8535_v41  ;;  %v2295_v31 = vmul.f32 %v8143_v24, %v2162_v59  ;;  %v6173_v60 = vld [vmem:[%s11353_s5 + $0x298] sm:$0xff] }
 0x1e5   : > { %v8751_v9 = vpop.permute.xlu0 %3072  ;;  %4288 = vperm.xlu1 %6504, %v6171_v50   ;;  %v8756_v36 = vmul.f32 %v8213_v45, %v8453_v43  ;;  %v8760_v40 = vmul.f32 %v8231_v54, %v8453_v43  ;;  %v8772_v50 = vstv %s8688_s22  ;;  %v11719_v24 = vcombine.high %v8500_v30, %v8500_v30  ;;  %s6218_s22 = sld [smem:[#allocation3 + $0x3]] }
 0x1e6   : > { %11718 = vst [vmem:[#allocation9_spill] sm:$0xff] %v8751_v9  ;;  %v8769_v41 = vadd.f32 %v2296_v1, %v8636_v5  ;;  %v2358_v54 = vrot.slane %v8550_v51, %v7443_v3  ;;  %v8783_v8 = vadd.f32 %v2295_v31, %v2238_v10  ;;  %v2351_v5 = vcombine.high %v8550_v51, %v8550_v51 }
 0x1e7   : > { %4283 = vperm.xlu0 %6503, %v6170_v11   ;;  %v2343_v45 = vrot.slane %v11719_v24, %v7432_v42  ;;  %v11720_v49 = vcombine.high %v8509_v0, %v8509_v0  ;;  %v8795_v30 = vrot.slane %v8509_v0, %v7432_v42 }
 0x1e8   : > { %v8797_v11 = vpop.permute.xlu1 %3087  ;;  %v2395_v10 = vmul.f32 %v2358_v54, %v8453_v43  ;;  %v2509_v31 = vmul.f32 %v8246_v57, %v2358_v54  ;;  %v2366_v63 = vrot.slane %v2351_v5, %v7443_v3  ;;  %v6175_v57 = vld [vmem:[%s11353_s5 + $0x2a8] sm:$0xff] }
 0x1e9   : > { %v8791_v59 = vrot.slane %v11720_v49, %v7432_v42  ;;  %11721 = vst [vmem:[#allocation44_spill] sm:$0xff] %v8797_v11  ;;  %v2362_v1 = vrot.slane %v2343_v45, %v7443_v3  ;;  %v2353_v24 = vcombine.high %v2343_v45, %v2343_v45  ;;  %v8802_v51 = vpop.permute.xlu0 %3082  ;;  %4298 = vperm.xlu1 %6504, %v6173_v60  }
 0x1ea   : > { %11722 = vst [vmem:[#allocation10_spill] sm:$0xff] %v8802_v51  ;;  %v2374_v0 = vrot.slane %v8795_v30, %v7443_v3  ;;  %v2517_v54 = vadd.f32 %v2509_v31, %v2452_v33  ;;  %v2525_v5 = vadd.f32 %v2395_v10, %v8656_v21  ;;  %v6174_v51 = vld [vmem:[%s11353_s5 + $0x2a0] sm:$0xff]  ;;  %v11725_v31 = vld [vmem:[#allocation23_spill] sm:$0xff] }
 0x1eb   : > { %v2378_v49 = vrot.slane %v8791_v59, %v7443_v3  ;;  %v2354_v16 = vcombine.high %v8791_v59, %v8791_v59  ;;  %4293 = vperm.xlu0 %6503, %v6172_v20   ;;  %v2396_v45 = vmul.f32 %v2362_v1, %v8453_v43  ;;  %v2510_v60 = vmul.f32 %v8244_v19, %v2362_v1 }
 0x1ec   : > { %v2370_v11 = vrot.slane %v2353_v24, %v7443_v3  ;;  %v2397_v59 = vmul.f32 %v2366_v63, %v8453_v43  ;;  %v2511_v20 = vmul.f32 %v8284_v39, %v2366_v63  ;;  %v8824_v12 = vpop.permute.xlu1 %3097  ;;  %v2533_v33 = vadd.f32 %v2517_v54, %v8671_v55  ;;  %v6177_v63 = vld [vmem:[%s11353_s5 + $0x2b8] sm:$0xff] }
 0x1ed   : > { %v2400_v9 = vmul.f32 %v2378_v49, %v8453_v43  ;;  %11723 = vst [vmem:[#allocation48_spill] sm:$0xff] %v8824_v12  ;;  %v2518_v29 = vadd.f32 %v2510_v60, %v2453_v25  ;;  %v2526_v19 = vadd.f32 %v2396_v45, %v8662_v2  ;;  %v2543_v21 = vmul.f32 %v8763_v23, %v2525_v5  ;;  %v8829_v1 = vpop.permute.xlu0 %3092 }
 0x1ee   : > { %11724 = vst [vmem:[#allocation11_spill] sm:$0xff] %v8829_v1  ;;  %4308 = vperm.xlu1 %6504, %v6175_v57   ;;  %v2398_v10 = vmul.f32 %v2370_v11, %v8453_v43  ;;  %v2512_v24 = vmul.f32 %v11725_v31, %v2370_v11  ;;  %v2519_v22 = vadd.f32 %v2511_v20, %v2454_v34  ;;  %v6176_v57 = vld [vmem:[%s11353_s5 + $0x2b0] sm:$0xff]  ;;  %v6178_v20 = vld [vmem:[%s11353_s5 + $0x2c0] sm:$0xff] }
 0x1ef   : > { %v2527_v39 = vadd.f32 %v2397_v59, %v8686_v62  ;;  %4303 = vperm.xlu0 %6503, %v6174_v51   ;;  %v2534_v2 = vadd.f32 %v2518_v29, %v8679_v47  ;;  %v2544_v55 = vmul.f32 %v8763_v23, %v2526_v19  ;;  %v2551_v25 = vadd.f32 %v2543_v21, %v2533_v33  ;;  %v11727_v29 = vld [vmem:[#allocation58_spill] sm:$0xff] }
 0x1f0   : > { %v2514_v45 = vmul.f32 %v8327_v28, %v2378_v49  ;;  %v2520_v34 = vadd.f32 %v2512_v24, %v8731_v56  ;;  %v2528_v62 = vadd.f32 %v2398_v10, %v8682_v53  ;;  %v2535_v11 = vadd.f32 %v2519_v22, %v8709_v6  ;;  %v8847_v60 = vpop.permute.xlu1 %3107  ;;  %v6179_v59 = vld [vmem:[%s11353_s5 + $0x2c8] sm:$0xff] }
 0x1f1   : > { %v2545_v51 = vmul.f32 %v8763_v23, %v2527_v39  ;;  %11726 = vst [vmem:[#allocation87_spill] sm:$0xff] %v8847_v60  ;;  %v2458_v47 = vmul.f32 %v11727_v29, %v8453_v43  ;;  %v2552_v54 = vadd.f32 %v2544_v55, %v2534_v2  ;;  %v2530_v49 = vadd.f32 %v2400_v9, %v8697_v37  ;;  %v8853_v5 = vpop.permute.xlu0 %3102  ;;  %v11732_v55 = vld [vmem:[#allocation108_spill] sm:$0xff] }
 0x1f2   : > { %v2522_v28 = vadd.f32 %v2514_v45, %v8737_v44  ;;  %11728 = vst [vmem:[#allocation86_spill] sm:$0xff] %v8853_v5  ;;  %4318 = vperm.xlu1 %6504, %v6177_v63   ;;  %v2536_v56 = vadd.f32 %v2520_v34, %v8702_v13  ;;  %v2546_v53 = vmul.f32 %v8763_v23, %v2528_v62  ;;  %v11734_v29 = vld [vmem:[#allocation36_spill] sm:$0xff] }
 0x1f3   : > { %v8857_v22 = vadd.f32 %v2545_v51, %v2535_v11  ;;  %v2399_v6 = vmul.f32 %v2374_v0, %v8453_v43  ;;  %4313 = vperm.xlu0 %6503, %v6176_v57   ;;  %v8864_v44 = vadd.f32 %v8772_v50, %v2551_v25  ;;  %v2548_v9 = vmul.f32 %v8763_v23, %v2530_v49  ;;  %v6180_v57 = vld [vmem:[%s11353_s5 + $0x2d0] sm:$0xff] }
 0x1f4   : > { %v2538_v37 = vadd.f32 %v2522_v28, %v8711_v32  ;;  %v2513_v13 = vmul.f32 %v8329_v35, %v2374_v0  ;;  %v8873_v19 = vadd.f32 %v8772_v50, %v2552_v54  ;;  %v2554_v33 = vadd.f32 %v2546_v53, %v2536_v56  ;;  %v8877_v31 = vpop.permute.xlu1 %3247  ;;  %v11735_v53 = vld [vmem:[#allocation111_spill] sm:$0xff] }
 0x1f5   : > { %v2529_v21 = vadd.f32 %v2399_v6, %v8719_v18  ;;  %v2386_v10 = vrot.slane %v2354_v16, %v7443_v3  ;;  %11729 = vst [vmem:[#allocation91_spill] sm:$0xff] %v8877_v31  ;;  %v2352_v35 = vcombine.high %v8795_v30, %v8795_v30  ;;  %v8882_v0 = vpop.permute.xlu0 %3242  ;;  %v11731_v39 = vcombine.high %v8275_v15, %v8275_v15  ;;  %v6181_v30 = vld [vmem:[%s11353_s5 + $0x2d8] sm:$0xff] }
 0x1f6   : > { %v2556_v24 = vadd.f32 %v2548_v9, %v2538_v37  ;;  %v2521_v32 = vadd.f32 %v2513_v13, %v8756_v36  ;;  %11730 = vst [vmem:[#allocation92_spill] sm:$0xff] %v8882_v0  ;;  %4458 = vperm.xlu1 %6504, %v6179_v59   ;;  %v8889_v18 = vadd.f32 %v8772_v50, %v2554_v33  ;;  %v6183_v37 = vld [vmem:[%s11353_s5 + $0x2e8] sm:$0xff] }
 0x1f7   : > { %v3334_v63 = vrot.slane %v11731_v39, %v7432_v42  ;;  %v2547_v16 = vmul.f32 %v8763_v23, %v2529_v21  ;;  %v2402_v2 = vmul.f32 %v2386_v10, %v8453_v43  ;;  %v2516_v36 = vmul.f32 %v11732_v55, %v2386_v10  ;;  %4453 = vperm.xlu0 %6503, %v6178_v20   ;;  %v11737_v9 = vld [vmem:[#allocation22_spill] sm:$0xff]  ;;  %v6182_v21 = vld [vmem:[%s11353_s5 + $0x2e0] sm:$0xff]  ;;  %v11739_v39 = vld [vmem:[#allocation39_spill] sm:$0xff] }
 0x1f8   : > { %v8898_v25 = vadd.f32 %v8772_v50, %v2556_v24  ;;  %v2537_v15 = vadd.f32 %v2521_v32, %v8742_v38  ;;  %v2382_v45 = vrot.slane %v2352_v35, %v7443_v3  ;;  %v8910_v51 = vpop.permute.xlu1 %3257  ;;  %v8914_v54 = vrot.slane %v11734_v29, %v7443_v3 }
 0x1f9   : > { %v8906_v34 = vrot.slane %v3334_v63, %v7443_v3  ;;  %v2524_v62 = vadd.f32 %v2516_v36, %v8760_v40  ;;  %v2532_v11 = vadd.f32 %v2402_v2, %v8745_v52  ;;  %11733 = vst [vmem:[#allocation94_spill] sm:$0xff] %v8910_v51  ;;  %v3344_v38 = vcombine.high %v3334_v63, %v3334_v63  ;;  %v8920_v59 = vpop.permute.xlu0 %3252 }
 0x1fa   : > { %v2570_v28 = vmax.f32 %v8873_v19, %v8898_v25  ;;  %v2555_v49 = vadd.f32 %v2547_v16, %v2537_v15  ;;  %v2401_v56 = vmul.f32 %v2382_v45, %v8453_v43  ;;  %v2515_v6 = vmul.f32 %v11735_v53, %v2382_v45  ;;  %11736 = vst [vmem:[#allocation50_spill] sm:$0xff] %v8920_v59  ;;  %v6185_v45 = vld [vmem:[%s11353_s5 + $0x2f8] sm:$0xff] }
 0x1fb   : > { %4468 = vperm.xlu1 %6504, %v6181_v30   ;;  %v2540_v52 = vadd.f32 %v2524_v62, %v8769_v41  ;;  %v2550_v40 = vmul.f32 %v8763_v23, %v2532_v11  ;;  %4463 = vperm.xlu0 %6503, %v6180_v57   ;;  %v8929_v13 = vmul.f32 %v8906_v34, %v11737_v9 }
 0x1fc   : > { %v8933_v43 = vmul.f32 %v8914_v54, %v11737_v9  ;;  %v8936_v20 = vadd.f32 %v8772_v50, %v2555_v49  ;;  %v2523_v33 = vadd.f32 %v2515_v6, %v2458_v47  ;;  %v2531_v41 = vadd.f32 %v2401_v56, %v8749_v7  ;;  %v8945_v32 = vpop.permute.xlu1 %3267 }
 0x1fd   : > { %v8943_v10 = vrot.slane %v3344_v38, %v7443_v3  ;;  %v2558_v24 = vadd.f32 %v2550_v40, %v2540_v52  ;;  %11738 = vst [vmem:[#allocation95_spill] sm:$0xff] %v8945_v32  ;;  %v3342_v35 = vcombine.high %v11734_v29, %v11734_v29  ;;  %v11740_v63 = vcombine.high %v11739_v39, %v11739_v39  ;;  %v8959_v36 = vpop.permute.xlu0 %3262  ;;  %v6184_v29 = vld [vmem:[%s11353_s5 + $0x2f0] sm:$0xff] }
 0x1fe   : > { %v3327_v7 = vrot.slane %v11739_v39, %v7432_v42  ;;  %v2569_v16 = vmax.f32 %v8864_v44, %v8936_v20  ;;  %v2539_v2 = vadd.f32 %v2523_v33, %v8783_v8  ;;  %v2549_v55 = vmul.f32 %v8763_v23, %v2531_v41  ;;  %11741 = vst [vmem:[#allocation23_spill] sm:$0xff] %v8959_v36  ;;  %v11756_v36 = vld [vmem:[#allocation57_spill] sm:$0xff] }
 0x1ff   : > { %v3341_v47 = vrot.slane %v11740_v63, %v7432_v42  ;;  %4478 = vperm.xlu1 %6504, %v6183_v37   ;;  %v8963_v30 = vmul.f32 %v8943_v10, %v11737_v9  ;;  %v8966_v15 = vadd.f32 %v8772_v50, %v2558_v24  ;;  %4473 = vperm.xlu0 %6503, %v6182_v21   ;;  %v11744_v24 = vld [vmem:[#allocation31_spill] sm:$0xff] }
 0x200   : > { %v8972_v57 = vrot.slane %v3342_v35, %v7443_v3  ;;  %v8978_v8 = vrot.slane %v3327_v7, %v7443_v3  ;;  %v2573_v62 = vmax.f32 %v2569_v16, %v2570_v28  ;;  %v2557_v11 = vadd.f32 %v2549_v55, %v2539_v2  ;;  %v8985_v53 = vpop.permute.xlu1 %3277  ;;  %v11745_v35 = vld [vmem:[#allocation63_spill] sm:$0xff] }
 0x201   : > { %v8975_v23 = vrot.slane %v3341_v47, %v7443_v3  ;;  %v3345_v38 = vcombine.high %v3341_v47, %v3341_v47  ;;  %v3343_v49 = vcombine.high %v3327_v7, %v3327_v7  ;;  %v2572_v56 = vmax.f32 %v8889_v18, %v8966_v15  ;;  %11742 = vst [vmem:[#allocation58_spill] sm:$0xff] %v8985_v53  ;;  %v9006_v33 = vpop.permute.xlu0 %3272  ;;  %v11748_v7 = vld [vmem:[#allocation20_spill] sm:$0xff] }
 0x202   : > { %v8989_v6 = vmul.f32 %v8972_v57, %v11737_v9  ;;  %v8997_v28 = vmul.f32 %v8978_v8, %v11737_v9  ;;  %v9001_v40 = vadd.f32 %v8772_v50, %v8857_v22  ;;  %v9004_v37 = vadd.f32 %v8772_v50, %v2557_v11  ;;  %11743 = vst [vmem:[#allocation108_spill] sm:$0xff] %v9006_v33  ;;  %v6187_v22 = vld [vmem:[%s11351_s3 + $0x188] sm:$0xff]  ;;  %v11746_v50 = vld [vmem:[#allocation24_spill] sm:$0xff]  ;;  %v11755_v33 = vld [vmem:[#allocation29_spill] sm:$0xff] }
 0x203   : > { %v8993_v52 = vmul.f32 %v8975_v23, %v11737_v9  ;;  %4488 = vperm.xlu1 %6504, %v6185_v45   ;;  %v9009_v41 = vrot.slane %v3345_v38, %v7443_v3  ;;  %v9012_v21 = vrot.slane %v3343_v49, %v7443_v3  ;;  %v849_v39 = vadd.f32 %v11745_v35, %v11744_v24  ;;  %v6186_v45 = vld [vmem:[%s11351_s3 + $0x180] sm:$0xff] }
 0x204   : > { %4483 = vperm.xlu0 %6503, %v6184_v29   ;;  %v11747_v63 = vcombine.high %v11746_v50, %v11746_v50  ;;  %v9025_v16 = vrot.slane %v11748_v7, %v7443_v3  ;;  %v3562_v2 = vcombine.high %v11748_v7, %v11748_v7  ;;  %v2571_v55 = vmax.f32 %v9001_v40, %v9004_v37  ;;  %v11750_v38 = vld [vmem:[#allocation65_spill] sm:$0xff]  ;;  %v3411_v35 = vpop.permute.xlu1 %3410 }
 0x205   : > { %v9036_v11 = vmul.f32 %v9009_v41, %v11737_v9  ;;  %v9040_v29 = vmul.f32 %v9012_v21, %v11737_v9  ;;  %v11751_v49 = vcombine.high %v11750_v38, %v11750_v38  ;;  %v9058_v32 = vadd.f32 %v11756_v36, %v11755_v33  ;;  %v3406_v5 = vpop.permute.xlu0 %3405  ;;  %v6189_v36 = vld [vmem:[%s11351_s3 + $0x198] sm:$0xff] }
 0x206   : > { %v3554_v47 = vrot.slane %v11747_v63, %v7432_v42  ;;  %11749 = vst [vmem:[#allocation36_spill] sm:$0xff] %v9025_v16  ;;  %v11753_v63 = vld [vmem:[#allocation43_spill] sm:$0xff]  ;;  %v9054_v60 = vrot.slane %v3562_v2, %v7443_v3  ;;  %v2574_v51 = vmax.f32 %v2571_v55, %v2572_v56 }
 0x207   : > { %v9046_v24 = vrot.slane %v11751_v49, %v7432_v42  ;;  %v3606_v7 = vmul.f32 %v9025_v16, %v11753_v63  ;;  %11757 = vst [vmem:[#allocation39_spill] sm:$0xff] %v9058_v32  ;;  %v11758_v49 = vcombine.high %v8490_v17, %v8490_v17  ;;  %4621 = vperm.xlu1 %6504, %v6187_v22   ;;  %v6188_v2 = vld [vmem:[%s11351_s3 + $0x190] sm:$0xff] }
 0x208   : > { %v9049_v50 = vrot.slane %v3554_v47, %v7443_v3  ;;  %v3564_v53 = vcombine.high %v3554_v47, %v3554_v47  ;;  %11754 = vst [vmem:[#allocation22_spill] sm:$0xff] %v9054_v60  ;;  %4616 = vperm.xlu0 %6503, %v6186_v45   ;;  %v2575_v22 = vmax.f32 %v2573_v62, %v2574_v51 }
 0x209   : > { %v9064_v59 = vrot.slane %v11758_v49, %v7432_v42  ;;  %v9068_v16 = vrot.slane %v9046_v24, %v7443_v3  ;;  %v9078_v33 = vadd.f32 %v3606_v7, %v8933_v43  ;;  %v3608_v55 = vmul.f32 %v9054_v60, %v11753_v63 }
 0x20a   : > { %11752 = vst [vmem:[#allocation111_spill] sm:$0xff] %v9049_v50  ;;  %v3607_v17 = vmul.f32 %v9049_v50, %v11753_v63  ;;  %v9081_v56 = vrot.slane %v3564_v53, %v7443_v3  ;;  %v9092_v49 = vrot.slane %v11750_v38, %v7432_v42  ;;  %v4508_v43 = vcombine.high %v849_v39, %v849_v39  ;;  %v3421_v53 = vpop.permute.xlu1 %3420  ;;  %v3416_v50 = vpop.permute.xlu0 %3415 }
 0x20b   : > { %11759 = vst [vmem:[#allocation31_spill] sm:$0xff] %v9068_v16  ;;  %v3611_v45 = vmul.f32 %v9068_v16, %v11753_v63  ;;  %v9095_v7 = vrot.slane %v849_v39, %v7432_v42  ;;  %v2576_v47 = vsub.f32 %v8864_v44, %v2575_v22  ;;  %v2577_v60 = vsub.f32 %v8873_v19, %v2575_v22  ;;  %v6191_v44 = vld [vmem:[%s11351_s3 + $0x1a8] sm:$0xff]  ;;  %v11761_v19 = vld [vmem:[#allocation16_spill] sm:$0xff] }
 0x20c   : > { %11760 = vst [vmem:[#allocation63_spill] sm:$0xff] %v9081_v56  ;;  %v9098_v51 = vadd.f32 %v3607_v17, %v8929_v13  ;;  %v3609_v62 = vmul.f32 %v9081_v56, %v11753_v63  ;;  %v2578_v16 = vsub.f32 %v9001_v40, %v2575_v22  ;;  %v2579_v38 = vsub.f32 %v8889_v18, %v2575_v22  ;;  %v11762_v56 = vld [vmem:[#allocation66_spill] sm:$0xff] }
 0x20d   : > { %4631 = vperm.xlu1 %6504, %v6189_v36   ;;  %v2580_v39 = vsub.f32 %v8936_v20, %v2575_v22  ;;  %v2581_v1 = vsub.f32 %v8898_v25, %v2575_v22  ;;  %v2582_v13 = vsub.f32 %v9004_v37, %v2575_v22  ;;  %v2583_v17 = vsub.f32 %v8966_v15, %v2575_v22  ;;  %v6190_v20 = vld [vmem:[%s11351_s3 + $0x1a0] sm:$0xff] }
 0x20e   : > { %4626 = vperm.xlu0 %6503, %v6188_v2   ;;  %v9115_v40 = vadd.f32 %v11762_v56, %v11761_v19  ;;  %v2584_v18 = vmul.f32 1.442695, %v2576_v47  ;;  %v2586_v0 = vmul.f32 1.442695, %v2577_v60  ;;  %v9122_v25 = vrot.slane %v9092_v49, %v7443_v3  ;;  %v3431_v22 = vpop.permute.xlu1 %3430  ;;  %v11764_v60 = vld [vmem:[#allocation52_spill] sm:$0xff]  ;;  %v3426_v31 = vpop.permute.xlu0 %3425 }
 0x20f   : > { %v9125_v15 = vrot.slane %v4508_v43, %v7432_v42  ;;  %v4523_v37 = vcombine.high %v9095_v7, %v9095_v7  ;;  %v2588_v36 = vmul.f32 1.442695, %v2578_v16  ;;  %v3565_v47 = vcombine.high %v9046_v24, %v9046_v24  ;;  %v11765_v56 = vld [vmem:[#allocation64_spill] sm:$0xff] }
 0x210   : > { %11763 = vst [vmem:[#allocation24_spill] sm:$0xff] %v9115_v40  ;;  %v9133_v2 = vmul.f32 %v11765_v56, %v11764_v60  ;;  %6523 = vpow2.f32 %v2584_v18  ;;  %v3444_v19 = vmul.f32 %v3411_v35, %v11737_v9  ;;  %v3443_v40 = vmul.f32 %v3406_v5, %v11737_v9  ;;  %v6193_v16 = vld [vmem:[%s11351_s3 + $0x1b8] sm:$0xff]  ;;  %v6192_v5 = vld [vmem:[%s11351_s3 + $0x1b0] sm:$0xff] }
 0x211   : > { %4641 = vperm.xlu1 %6504, %v6191_v44   ;;  %6525 = vpow2.f32 %v2586_v0  ;;  %v2590_v43 = vmul.f32 1.442695, %v2579_v38  ;;  %v9138_v12 = vmul.f32 %v3421_v53, %v11737_v9  ;;  %v9144_v24 = vadd.f32 %v3609_v62, %v8963_v30 }
 0x212   : > { %4636 = vperm.xlu0 %6503, %v6190_v20   ;;  %v2592_v18 = vmul.f32 1.442695, %v2580_v39  ;;  %v9150_v35 = vadd.f32 %v3608_v55, %v8989_v6  ;;  %v9153_v0 = vadd.f32 %v3611_v45, %v8993_v52  ;;  %v3610_v53 = vmul.f32 %v9122_v25, %v11753_v63  ;;  %v3441_v44 = vpop.permute.xlu1 %3440  ;;  %v3436_v55 = vpop.permute.xlu0 %3435  ;;  %v6195_v45 = vld [vmem:[%s11352_s4 + $0x188] sm:$0xff] }
 0x213   : > { %6527 = vpow2.f32 %v2588_v36  ;;  %v2594_v38 = vmul.f32 1.442695, %v2581_v1  ;;  %v9158_v30 = vrot.slane %v3565_v47, %v7443_v3  ;;  %v3563_v62 = vcombine.high %v9092_v49, %v9092_v49 }
 0x214   : > { %v2596_v39 = vmul.f32 1.442695, %v2582_v13  ;;  %v2598_v20 = vmul.f32 1.442695, %v2583_v17  ;;  %v9163_v6 = vmul.f32 %v3416_v50, %v11737_v9  ;;  %v9166_v52 = vmul.f32 %v3431_v22, %v11737_v9  ;;  %v6194_v13 = vld [vmem:[%s11352_s4 + $0x180] sm:$0xff] }
 0x215   : > { %11766 = vst [vmem:[#allocation20_spill] sm:$0xff] %v9158_v30  ;;  %4651 = vperm.xlu1 %6504, %v6193_v16   ;;  %6529 = vpow2.f32 %v2590_v43  ;;  %v9169_v1 = vmul.f32 %v3426_v31, %v11737_v9  ;;  %v9175_v49 = vadd.f32 %v3610_v53, %v8997_v28  ;;  %v3613_v50 = vmul.f32 %v9158_v30, %v11753_v63 }
 0x216   : > { %4646 = vperm.xlu0 %6503, %v6192_v5   ;;  %6531 = vpow2.f32 %v2592_v18  ;;  %v9183_v17 = vrot.slane %v3563_v62, %v7443_v3  ;;  %v4545_v31 = vrot.slane %v4523_v37, %v7432_v42  ;;  %v4531_v36 = vrot.slane %v9095_v7, %v7432_v42  ;;  %v3468_v22 = vpop.permute.xlu1 %3467  ;;  %v3463_v16 = vpop.permute.xlu0 %3462  ;;  %v6197_v5 = vld [vmem:[%s11352_s4 + $0x198] sm:$0xff]  ;;  %v6196_v62 = vld [vmem:[%s11352_s4 + $0x190] sm:$0xff] }
 0x217   : > { %6533 = vpow2.f32 %v2594_v38  ;;  %v9189_v28 = vmul.f32 %v3441_v44, %v11737_v9  ;;  %v9192_v47 = vadd.f32 %v3613_v50, %v9036_v11  ;;  %v4524_v56 = vcombine.high %v9125_v15, %v9125_v15 }
 0x218   : > { %11767 = vst [vmem:[#allocation65_spill] sm:$0xff] %v9183_v17  ;;  %v3501_v43 = vmul.f32 %v3468_v22, %v8906_v34  ;;  %v3612_v37 = vmul.f32 %v9183_v17, %v11753_v63  ;;  %v9200_v7 = vrot.slane %v4545_v31, %v7443_v3  ;;  %v9203_v18 = vrot.slane %v4531_v36, %v7443_v3 }
 0x219   : > { %4678 = vperm.xlu1 %6504, %v6195_v45   ;;  %6535 = vpow2.f32 %v2596_v39  ;;  %v3500_v11 = vmul.f32 %v3463_v16, %v8914_v54  ;;  %v4555_v34 = vcombine.high %v4545_v31, %v4545_v31  ;;  %v4553_v53 = vcombine.high %v4531_v36, %v4531_v36 }
 0x21a   : > { %11768 = vst [vmem:[#allocation43_spill] sm:$0xff] %v9200_v7  ;;  %11769 = vst [vmem:[#allocation29_spill] sm:$0xff] %v9203_v18  ;;  %4673 = vperm.xlu0 %6503, %v6194_v13   ;;  %v9209_v38 = vpop.eup %6523  ;;  %v9211_v44 = vadd.f32 %v3501_v43, %v3444_v19  ;;  %v9217_v45 = vadd.f32 %v3612_v37, %v9040_v29  ;;  %v9221_v54 = vmul.f32 %v9200_v7, %v9058_v32  ;;  %v3478_v19 = vpop.permute.xlu1 %3477 }
 0x21b   : > { %v9225_v39 = vmul.f32 %v9203_v18, %v9058_v32  ;;  %v9227_v50 = vpop.eup %6525  ;;  %v9229_v13 = vadd.f32 %v3500_v11, %v3443_v40  ;;  %v9232_v31 = vrot.slane %v4555_v34, %v7443_v3  ;;  %v9235_v36 = vrot.slane %v4553_v53, %v7443_v3  ;;  %v3473_v16 = vpop.permute.xlu0 %3472  ;;  %v6198_v34 = vld [vmem:[%s11352_s4 + $0x1a0] sm:$0xff] }
 0x21c   : > { %v4552_v29 = vrot.slane %v4524_v56, %v7432_v42  ;;  %6537 = vpow2.f32 %v2598_v20  ;;  %v2600_v22 = vadd.f32 %v9227_v50, %v9209_v38  ;;  %v3503_v43 = vmul.f32 %v3478_v19, %v8943_v10  ;;  %v6199_v56 = vld [vmem:[%s11352_s4 + $0x1a8] sm:$0xff] }
 0x21d   : > { %11770 = vst [vmem:[#allocation57_spill] sm:$0xff] %v9232_v31  ;;  %11771 = vst [vmem:[#allocation16_spill] sm:$0xff] %v9235_v36  ;;  %4688 = vperm.xlu1 %6504, %v6197_v5   ;;  %v4538_v40 = vrot.slane %v9125_v15, %v7432_v42  ;;  %v9243_v37 = vpop.eup %6527  ;;  %v3502_v11 = vmul.f32 %v3473_v16, %v8972_v57  ;;  %v9251_v20 = vmul.f32 %v9232_v31, %v9058_v32 }
 0x21e   : > { %4683 = vperm.xlu0 %6503, %v6196_v62   ;;  %v9255_v10 = vmul.f32 %v9235_v36, %v9058_v32  ;;  %v9258_v5 = vrot.slane %v4552_v29, %v7443_v3  ;;  %v2601_v15 = vadd.f32 %v9243_v37, %v2600_v22  ;;  %v9262_v57 = vadd.f32 %v3503_v43, %v9138_v12  ;;  %v3488_v31 = vpop.permute.xlu1 %3487 }
 0x21f   : > { %v9268_v53 = vrot.slane %v4538_v40, %v7443_v3  ;;  %v4556_v62 = vcombine.high %v4552_v29, %v4552_v29  ;;  %v9270_v19 = vpop.eup %6529  ;;  %v3449_v16 = vmul.f32 %v3436_v55, %v11737_v9  ;;  %v9274_v36 = vadd.f32 %v3502_v11, %v9163_v6  ;;  %v3483_v29 = vpop.permute.xlu0 %3482 }
 0x220   : > { %11772 = vst [vmem:[#allocation66_spill] sm:$0xff] %v9258_v5  ;;  %v9278_v12 = vmul.f32 %v9258_v5, %v9058_v32  ;;  %v4554_v22 = vcombine.high %v4538_v40, %v4538_v40  ;;  %v9280_v43 = vpop.eup %6531  ;;  %v2602_v18 = vadd.f32 %v9270_v19, %v2601_v15  ;;  %v3505_v7 = vmul.f32 %v3488_v31, %v8975_v23  ;;  %v6201_v40 = vld [vmem:[%s11352_s4 + $0x1b8] sm:$0xff] }
 0x221   : > { %11773 = vst [vmem:[#allocation64_spill] sm:$0xff] %v9268_v53  ;;  %4698 = vperm.xlu1 %6504, %v6199_v56   ;;  %v9286_v9 = vmul.f32 %v9268_v53, %v9058_v32  ;;  %v9289_v6 = vrot.slane %v4556_v62, %v7443_v3  ;;  %v9291_v55 = vpop.eup %6533  ;;  %v3504_v11 = vmul.f32 %v3483_v29, %v8978_v8  ;;  %v6200_v62 = vld [vmem:[%s11352_s4 + $0x1b0] sm:$0xff] }
 0x222   : > { %4693 = vperm.xlu0 %6503, %v6198_v34   ;;  %v9300_v23 = vrot.slane %v4554_v22, %v7443_v3  ;;  %v11776_v31 = vcombine.high %v8541_v26, %v8541_v26  ;;  %v4751_v15 = vrot.slane %v8541_v26, %v7432_v42  ;;  %v2603_v8 = vadd.f32 %v9280_v43, %v2602_v18  ;;  %v3498_v18 = vpop.permute.xlu1 %3497 }
 0x223   : > { %11774 = vst [vmem:[#allocation118_spill] sm:$0xff] %v9289_v6  ;;  %v9310_v34 = vadd.f32 %v3505_v7, %v9166_v52  ;;  %v9317_v22 = vmul.f32 %v9289_v6, %v9058_v32  ;;  %v4744_v29 = vcombine.high %v9064_v59, %v9064_v59  ;;  %v9324_v26 = vadd.f32 %v3504_v11, %v9169_v1  ;;  %v3493_v17 = vpop.permute.xlu0 %3492 }
 0x224   : > { %11775 = vst [vmem:[#allocation119_spill] sm:$0xff] %v9300_v23  ;;  %v4765_v56 = vrot.slane %v11776_v31, %v7432_v42  ;;  %v9321_v31 = vpop.eup %6535  ;;  %v9330_v52 = vmul.f32 %v9300_v23, %v9058_v32  ;;  %v9336_v6 = vrot.slane %v4751_v15, %v7443_v3  ;;  %v2604_v53 = vadd.f32 %v9291_v55, %v2603_v8  ;;  %v6203_v23 = vld [vmem:[%s11351_s3 + $0x1c8] sm:$0xff] }
 0x225   : > { %11777 = vst [vmem:[#allocation120_spill] sm:$0xff] %v9324_v26  ;;  %v3507_v5 = vmul.f32 %v3498_v18, %v9009_v41  ;;  %4708 = vperm.xlu1 %6504, %v6201_v40   ;;  %v4773_v11 = vcombine.high %v4751_v15, %v4751_v15  ;;  %v3506_v26 = vmul.f32 %v3493_v17, %v9012_v21  ;;  %v6202_v21 = vld [vmem:[%s11351_s3 + $0x1c0] sm:$0xff]  ;;  %v11787_v18 = vld [vmem:[#allocation74_spill] sm:$0xff] }
 0x226   : > { %v9333_v7 = vrot.slane %v4765_v56, %v7443_v3  ;;  %11779 = vst [vmem:[#allocation122_spill] sm:$0xff] %v9336_v6  ;;  %v4775_v1 = vcombine.high %v4765_v56, %v4765_v56  ;;  %4703 = vperm.xlu0 %6503, %v6200_v62   ;;  %v4817_v30 = vmul.f32 %v9336_v6, %v8457_v4  ;;  %v9349_v41 = vpop.eup %6537 }
 0x227   : > { %v4772_v8 = vrot.slane %v4744_v29, %v7432_v42  ;;  %v2605_v40 = vadd.f32 %v9321_v31, %v2604_v53  ;;  %v9353_v56 = vadd.f32 %v3507_v5, %v9189_v28  ;;  %v9362_v15 = vrot.slane %v4773_v11, %v7443_v3  ;;  %v9366_v29 = vpop.permute.xlu1 %3630  ;;  %v9380_v6 = vpop.permute.xlu0 %3625 }
 0x228   : > { %11778 = vst [vmem:[#allocation121_spill] sm:$0xff] %v9333_v7  ;;  %v4818_v32 = vmul.f32 %v9333_v7, %v8457_v4  ;;  %v9359_v17 = vrot.slane %v4775_v1, %v7443_v3  ;;  %v9364_v62 = vadd.f32 %v3506_v26, %v3449_v16  ;;  %v9372_v28 = vadd.f32 %v4817_v30, %v9225_v39  ;;  %v11788_v30 = vld [vmem:[#allocation76_spill] sm:$0xff]  ;;  %v11790_v39 = vld [vmem:[#allocation82_spill] sm:$0xff] }
 0x229   : > { %11780 = vst [vmem:[#allocation123_spill] sm:$0xff] %v9353_v56  ;;  %11782 = vst [vmem:[#allocation125_spill] sm:$0xff] %v9362_v15  ;;  %v9375_v5 = vrot.slane %v4772_v8, %v7443_v3  ;;  %v1736_v1 = vmul.f32 %v11787_v18, %v11764_v60  ;;  %v2606_v11 = vadd.f32 %v9349_v41, %v2605_v40  ;;  %4841 = vperm.xlu1 %6504, %v6203_v23   ;;  %v6205_v40 = vld [vmem:[%s11351_s3 + $0x1d8] sm:$0xff] }
 0x22a   : > { %11781 = vst [vmem:[#allocation124_spill] sm:$0xff] %v9359_v17  ;;  %11783 = vst [vmem:[#allocation126_spill] sm:$0xff] %v9364_v62  ;;  %v9369_v53 = vadd.f32 %v4818_v32, %v9221_v54  ;;  %v4820_v16 = vmul.f32 %v9359_v17, %v8457_v4  ;;  %v4819_v32 = vmul.f32 %v9362_v15, %v8457_v4  ;;  %4836 = vperm.xlu0 %6503, %v6202_v21   ;;  %v6204_v15 = vld [vmem:[%s11351_s3 + $0x1d0] sm:$0xff]  ;;  %v11847_v62 = vld [vmem:[#allocation10_spill] sm:$0xff] }
 0x22b   : > { %11785 = vst [vmem:[#allocation128_spill] sm:$0xff] %v9372_v28  ;;  %11786 = vst [vmem:[#allocation129_spill] sm:$0xff] %v9375_v5  ;;  %v9388_v54 = vmul.f32 %v11788_v30, %v11764_v60  ;;  %v9392_v26 = vmul.f32 %v11790_v39, %v11764_v60  ;;  %v3753_v23 = vstv %s9297_s15  ;;  %v4822_v18 = vmul.f32 %v9375_v5, %v8457_v4  ;;  %v9411_v17 = vpop.permute.xlu1 %3640  ;;  %s10778_s15 = sld [smem:[#allocation3 + $0x83]] }
 0x22c   : > { %11784 = vst [vmem:[#allocation127_spill] sm:$0xff] %v9369_v53  ;;  %6539 = vrcp.f32 %v2606_v11  ;;  %v9404_v30 = vadd.f32 %v4820_v16, %v9251_v20  ;;  %v9407_v39 = vadd.f32 %v4819_v32, %v9255_v10  ;;  %v4758_v21 = vrot.slane %v9064_v59, %v7432_v42  ;;  %v11795_v53 = vld [vmem:[#allocation45_spill] sm:$0xff]  ;;  %v6207_v32 = vld [vmem:[%s11351_s3 + $0x1e8] sm:$0xff] }
 0x22d   : > { %11789 = vst [vmem:[#allocation74_spill] sm:$0xff] %v9388_v54  ;;  %11791 = vst [vmem:[#allocation76_spill] sm:$0xff] %v9392_v26  ;;  %v9414_v28 = vstv %s9326_s18  ;;  %v9417_v5 = vadd.f32 %v4822_v18, %v9278_v12  ;;  %v4776_v11 = vcombine.high %v4772_v8, %v4772_v8  ;;  %v1624_v7 = vcombine.high %v11795_v53, %v11795_v53  ;;  %v9421_v54 = vpop.permute.xlu0 %3635  ;;  %v11797_v16 = vld [vmem:[#allocation85_spill] sm:$0xff]  ;;  %v11803_v42 = vld [vmem:[#allocation46_spill] sm:$0xff]  ;;  %s5923_s18 = sshll.u32 %s11166_s23, 4  ;;  %s11301_s18 = int_to_ptr.vmem [resolvable:$true] %s5923_s18 }
 0x22e   : > { %11792 = vst [vmem:[#allocation82_spill] sm:$0xff] %v9404_v30  ;;  %11793 = vst [vmem:[#allocation130_spill] sm:$0xff] %v9407_v39  ;;  %4851 = vperm.xlu1 %6504, %v6205_v40   ;;  %v9424_v20 = vmul.f32 %v3753_v23, %v9098_v51  ;;  %v9427_v10 = vmul.f32 %v3753_v23, %v9078_v33  ;;  %v9430_v59 = vrot.slane %v4758_v21, %v7443_v3  ;;  %v11802_v30 = vld [vmem:[#allocation97_spill] sm:$0xff]  ;;  %s6592_s9 = scalar_lea.vmem %s11301_s18, 2048  ;;  %p6599_p13 = scmp.lt.s32.totalorder %s11301_s18, %s6597_s13 }
 0x22f   : > { %11794 = vst [vmem:[#allocation131_spill] sm:$0xff] %v9417_v5  ;;  %v11798_v12 = vcombine.high %v11797_v16, %v11797_v16  ;;  %4846 = vperm.xlu0 %6503, %v6204_v15   ;;  %v9440_v40 = vmul.f32 %v3753_v23, %v9144_v24  ;;  %v9443_v51 = vmul.f32 %v3753_v23, %v9150_v35  ;;  %v6206_v16 = vld [vmem:[%s11351_s3 + $0x1e0] sm:$0xff]  ;;  %p6593_p5 = scmp.ne.s32.totalorder %s11301_s18, %s6592_s9  ;;  %p6600_p0 = scmp.lt.s32.totalorder %s6598_s12, %s6592_s9 }
 0x230   : > { %11796 = vst [vmem:[#allocation45_spill] sm:$0xff] %v9430_v59  ;;  %v9446_v33 = vrot.slane %v4776_v11, %v7443_v3  ;;  %v4774_v18 = vcombine.high %v4758_v21, %v4758_v21  ;;  %v4821_v15 = vmul.f32 %v9430_v59, %v8457_v4  ;;  %v11800_v24 = vrot.slane %v11795_v53, %v7443_v3  ;;  %v3651_v11 = vpop.permute.xlu1 %3650 }
 0x231   : > { %v1652_v8 = vrot.slane %v11798_v12, %v7443_v3  ;;  %v1656_v12 = vrot.slane %v1624_v7, %v7443_v3  ;;  %v1675_v59 = vadd.f32 %v11803_v42, %v11802_v30  ;;  %v9469_v7 = vadd.f32 %v8604_v61, %v1736_v1  ;;  %v3646_v26 = vpop.permute.xlu0 %3645  ;;  %v6209_v42 = vld [vmem:[%s11351_s3 + $0x1f8] sm:$0xff]  ;;  %v11809_v1 = vld [vmem:[#allocation98_spill] sm:$0xff]  ;;  %p6594_p11 = pnand %p6593_p5, %p12207_p10  ;;  %p6601_p1 = por %p6600_p0, %p6599_p13 }
 0x232   : > { %11799 = vst [vmem:[#allocation85_spill] sm:$0xff] %v9446_v33  ;;  %v1670_v5 = vmul.f32 %v11800_v24, %v8113_v48  ;;  %v4824_v21 = vmul.f32 %v9446_v33, %v8457_v4  ;;  %v9464_v39 = vrot.slane %v4774_v18, %v7443_v3  ;;  %4861 = vperm.xlu1 %6504, %v6207_v32   ;;  %v11807_v33 = vld [vmem:[#allocation26_spill] sm:$0xff]  ;;  %v6208_v32 = vld [vmem:[%s11351_s3 + $0x1f0] sm:$0xff] }
 0x233   : > { %v9459_v35 = vmul.f32 %v1652_v8, %v8088_v27  ;;  %11804 = vst [vmem:[#allocation97_spill] sm:$0xff] %v9469_v7  ;;  %v9472_v53 = vmul.f32 %v3753_v23, %v9153_v0  ;;  %v9475_v8 = vadd.f32 %v4821_v15, %v9286_v9  ;;  %v9478_v24 = vmul.f32 %v1656_v12, %v11764_v60  ;;  %v11811_v15 = vld [vmem:[#allocation88_spill] sm:$0xff]  ;;  %p6595_p12 = pneg %p6594_p11 }
 0x234   : > { %11801 = vst [vmem:[#allocation132_spill] sm:$0xff] %v9464_v39  ;;  %v1455_v18 = vcombine.high %v11807_v33, %v11807_v33  ;;  %4856 = vperm.xlu0 %6503, %v6206_v16   ;;  %v9486_v61 = vmul.f32 %v3753_v23, %v9175_v49  ;;  %v9489_v0 = vadd.f32 %v4824_v21, %v9317_v22 }
 0x235   : > { %11805 = vst [vmem:[#allocation46_spill] sm:$0xff] %v9475_v8  ;;  %11806 = vst [vmem:[#allocation133_spill] sm:$0xff] %v9478_v24  ;;  %v4823_v9 = vmul.f32 %v9464_v39, %v8457_v4  ;;  %v1676_v30 = vadd.f32 %v1675_v59, %v11809_v1  ;;  %v9498_v16 = vmul.f32 %v3753_v23, %v9192_v47  ;;  %v9511_v59 = vpop.permute.xlu1 %3660  ;;  %p6602_p2 = pnand %p6601_p1, %p6595_p12 }
 0x236   : > { %11808 = vst [vmem:[#allocation26_spill] sm:$0xff] %v9489_v0  ;;  %v11812_v49 = vcombine.high %v11811_v15, %v11811_v15  ;;  %v1487_v22 = vrot.slane %v1455_v18, %v7443_v3  ;;  %v11813_v21 = vrot.slane %v11807_v33, %v7443_v3  ;;  %v9514_v1 = vmul.f32 %v3753_v23, %v9217_v45  ;;  %v11818_v15 = vld [vmem:[#allocation99_spill] sm:$0xff]  ;;  %v6540_v18 = vpop.eup %6539 }
 0x237   : > { %11810 = vst [vmem:[#allocation98_spill] sm:$0xff] %v9498_v16  ;;  %v9517_v47 = vadd.f32 %v4823_v9, %v9330_v52  ;;  %v9519_v39 = vadd.f32 %v1676_v30, %v1670_v5  ;;  %v9527_v33 = vmul.f32 %v9366_v29, %v11753_v63  ;;  %4871 = vperm.xlu1 %6504, %v6209_v42   ;;  %v11823_v5 = vld [vmem:[#allocation59_spill] sm:$0xff] }
 0x238   : > { %v1483_v12 = vrot.slane %v11812_v49, %v7443_v3  ;;  %v9509_v0 = vmul.f32 %v11813_v21, %v8113_v48  ;;  %11815 = vst [vmem:[#allocation134_spill] sm:$0xff] %v9514_v1  ;;  %v11819_v49 = vld [vmem:[#allocation102_spill] sm:$0xff]  ;;  %v9529_v21 = vpop.permute.xlu0 %3655  ;;  %v9535_v52 = vmul.f32 %v1487_v22, %v11764_v60  ;;  %v9539_v23 = vadd.f32 %v11823_v5, %v9133_v2 }
 0x239   : > { %11816 = vst [vmem:[#allocation135_spill] sm:$0xff] %v9517_v47  ;;  %11817 = vst [vmem:[#allocation136_spill] sm:$0xff] %v9519_v39  ;;  %v9523_v8 = vadd.f32 %v11819_v49, %v11818_v15  ;;  %v9542_v9 = vmul.f32 %v6540_v18, %v9321_v31  ;;  %v9545_v30 = vmul.f32 %v6540_v18, %v9227_v50  ;;  %4866 = vperm.xlu0 %6503, %v6208_v32   ;;  %v11833_v22 = vld [vmem:[#allocation14_spill] sm:$0xff]  ;;  %v11835_v47 = vld [vmem:[#allocation117_spill] sm:$0xff] }
 0x23a   : > { %11814 = vst [vmem:[#allocation88_spill] sm:$0xff] %v9509_v0  ;;  %v9532_v45 = vmul.f32 %v1483_v12, %v8088_v27  ;;  %11822 = vst [vmem:[#allocation137_spill] sm:$0xff] %v9535_v52  ;;  %v9548_v29 = vmul.f32 %v6540_v18, %v9209_v38  ;;  %v9551_v42 = vmul.f32 %v6540_v18, %v9270_v19  ;;  %v6211_v12 = vld [vmem:[%s11352_s4 + $0x1c8] sm:$0xff]  ;;  %v6210_v19 = vld [vmem:[%s11352_s4 + $0x1c0] sm:$0xff] }
 0x23b   : > { %11820 = vst [vmem:[#allocation99_spill] sm:$0xff] %v9523_v8  ;;  %11824 = vst [vmem:[#allocation59_spill] sm:$0xff] %v9539_v23  ;;  %v9557_v2 = vmul.f32 %v6540_v18, %v9243_v37  ;;  %v9560_v31 = vmul.f32 %v6540_v18, %v9291_v55  ;;  %v9563_v50 = vmul.f32 %v6540_v18, %v9280_v43  ;;  %4898 = vperm.xlu1 %6504, %v6211_v12   ;;  %v11838_v12 = vld [vmem:[#allocation61_spill] sm:$0xff]  ;;  %v11841_v60 = vld [vmem:[#allocation78_spill] sm:$0xff] }
 0x23c   : > { %11821 = vst [vmem:[#allocation102_spill] sm:$0xff] %v9532_v45  ;;  %11825 = vst [vmem:[#allocation138_spill] sm:$0xff] %v9542_v9  ;;  %v9566_v38 = vmul.f32 %v6540_v18, %v9349_v41  ;;  %v2771_v32 = vmul.f32 %v8412_v58, %v9545_v30  ;;  %v2770_v37 = vmul.f32 %v11833_v22, %v9548_v29  ;;  %v3688_v41 = vpop.permute.xlu1 %3687  ;;  %v11840_v23 = vld [vmem:[#allocation77_spill] sm:$0xff] }
 0x23d   : > { %11826 = vst [vmem:[#allocation139_spill] sm:$0xff] %v9545_v30  ;;  %11827 = vst [vmem:[#allocation140_spill] sm:$0xff] %v9548_v29  ;;  %v9577_v55 = vmul.f32 %v9380_v6, %v11753_v63  ;;  %v9581_v43 = vmul.f32 %v9411_v17, %v11753_v63  ;;  %v2773_v15 = vmul.f32 %v8459_v14, %v9551_v42  ;;  %v3683_v6 = vpop.permute.xlu0 %3682  ;;  %v11834_v17 = vld [vmem:[#allocation28_spill] sm:$0xff]  ;;  %v11836_v14 = vld [vmem:[#allocation75_spill] sm:$0xff]  ;;  %4893 = vperm.xlu0 %6503, %v6210_v19  }
 0x23e   : > { %11828 = vst [vmem:[#allocation141_spill] sm:$0xff] %v9551_v42  ;;  %11829 = vst [vmem:[#allocation142_spill] sm:$0xff] %v9557_v2  ;;  %v9587_v49 = vmul.f32 %v9421_v54, %v11753_v63  ;;  %v9590_v58 = vmul.f32 %v3651_v11, %v11753_v63  ;;  %v9593_v18 = vmul.f32 %v3646_v26, %v11753_v63  ;;  %v6213_v54 = vld [vmem:[%s11352_s4 + $0x1d8] sm:$0xff]  ;;  %v11837_v26 = vld [vmem:[#allocation30_spill] sm:$0xff] }
 0x23f   : > { %11830 = vst [vmem:[#allocation143_spill] sm:$0xff] %v9560_v31  ;;  %11831 = vst [vmem:[#allocation144_spill] sm:$0xff] %v9563_v50  ;;  %v2778_v5 = vadd.f32 %v2771_v32, %v2770_v37  ;;  %v2772_v22 = vmul.f32 %v11834_v17, %v9557_v2  ;;  %v2941_v4 = vmul.f32 %v11835_v47, %v9545_v30  ;;  %v11839_v37 = vld [vmem:[#allocation56_spill] sm:$0xff]  ;;  %v6212_v19 = vld [vmem:[%s11352_s4 + $0x1d0] sm:$0xff]  ;;  %4908 = vperm.xlu1 %6504, %v6213_v54  }
 0x240   : > { %11832 = vst [vmem:[#allocation145_spill] sm:$0xff] %v9566_v38  ;;  %v2940_v38 = vmul.f32 %v11836_v14, %v9548_v29  ;;  %v2775_v11 = vmul.f32 %v11837_v26, %v9560_v31  ;;  %v2774_v32 = vmul.f32 %v11838_v12, %v9563_v50  ;;  %v2776_v17 = vmul.f32 %v11839_v37, %v9542_v9  ;;  %v3698_v1 = vpop.permute.xlu1 %3697  ;;  %v11842_v12 = vld [vmem:[#allocation79_spill] sm:$0xff]  ;;  %v11843_v37 = vld [vmem:[#allocation80_spill] sm:$0xff]  ;;  %v11845_v0 = vld [vmem:[#allocation9_spill] sm:$0xff] }
 0x241   : > { %v2943_v47 = vmul.f32 %v11840_v23, %v9551_v42  ;;  %v2779_v14 = vadd.f32 %v2778_v5, %v2772_v22  ;;  %v2942_v45 = vmul.f32 %v11841_v60, %v9557_v2  ;;  %v3111_v26 = vmul.f32 %v8739_v46, %v9545_v30  ;;  %v11844_v23 = vld [vmem:[#allocation84_spill] sm:$0xff]  ;;  %4903 = vperm.xlu0 %6503, %v6212_v19  }
 0x242   : > { %v2948_v52 = vadd.f32 %v2941_v4, %v2940_v38  ;;  %v2945_v27 = vmul.f32 %v11842_v12, %v9560_v31  ;;  %v2944_v48 = vmul.f32 %v11843_v37, %v9563_v50  ;;  %v2946_v7 = vmul.f32 %v11844_v23, %v9542_v9  ;;  %v3693_v4 = vpop.permute.xlu0 %3692  ;;  %v11846_v22 = vld [vmem:[#allocation44_spill] sm:$0xff]  ;;  %v6215_v12 = vld [vmem:[%s11352_s4 + $0x1e8] sm:$0xff] }
 0x243   : > { %v3110_v5 = vmul.f32 %v11845_v0, %v9548_v29  ;;  %v2780_v38 = vadd.f32 %v2779_v14, %v2773_v15  ;;  %v3113_v46 = vmul.f32 %v11846_v22, %v9551_v42  ;;  %v3112_v16 = vmul.f32 %v11847_v62, %v9557_v2  ;;  %v11848_v23 = vld [vmem:[#allocation48_spill] sm:$0xff]  ;;  %v11849_v0 = vld [vmem:[#allocation91_spill] sm:$0xff]  ;;  %v6214_v15 = vld [vmem:[%s11352_s4 + $0x1e0] sm:$0xff]  ;;  %4918 = vperm.xlu1 %6504, %v6215_v12  }
 0x244   : > { %v2949_v60 = vadd.f32 %v2948_v52, %v2942_v45  ;;  %v3115_v3 = vmul.f32 %v11848_v23, %v9560_v31  ;;  %v3281_v54 = vmul.f32 %v11849_v0, %v9545_v30  ;;  %v11850_v45 = vld [vmem:[#allocation92_spill] sm:$0xff]  ;;  %v11851_v14 = vld [vmem:[#allocation11_spill] sm:$0xff]  ;;  %v3708_v24 = vpop.permute.xlu1 %3707  ;;  %v11853_v0 = vld [vmem:[#allocation94_spill] sm:$0xff] }
 0x245   : > { %v3118_v37 = vadd.f32 %v3111_v26, %v3110_v5  ;;  %v3280_v52 = vmul.f32 %v11850_v45, %v9548_v29  ;;  %v2781_v62 = vadd.f32 %v2780_v38, %v2774_v32  ;;  %v3114_v22 = vmul.f32 %v11851_v14, %v9563_v50  ;;  %v11852_v26 = vld [vmem:[#allocation86_spill] sm:$0xff]  ;;  %4913 = vperm.xlu0 %6503, %v6214_v15  }
 0x246   : > { %v2950_v19 = vadd.f32 %v2949_v60, %v2943_v47  ;;  %v3116_v5 = vmul.f32 %v11852_v26, %v9542_v9  ;;  %v3283_v30 = vmul.f32 %v11853_v0, %v9551_v42  ;;  %v11854_v45 = vld [vmem:[#allocation50_spill] sm:$0xff]  ;;  %v3703_v56 = vpop.permute.xlu0 %3702  ;;  %v11855_v47 = vld [vmem:[#allocation95_spill] sm:$0xff] }
 0x247   : > { %v3119_v23 = vadd.f32 %v3118_v37, %v3112_v16  ;;  %v3288_v8 = vadd.f32 %v3281_v54, %v3280_v52  ;;  %v3282_v29 = vmul.f32 %v11854_v45, %v9557_v2  ;;  %v2782_v39 = vadd.f32 %v2781_v62, %v2775_v11  ;;  %v11856_v60 = vld [vmem:[#allocation23_spill] sm:$0xff]  ;;  %v6217_v16 = vld [vmem:[%s11352_s4 + $0x1f8] sm:$0xff] }
 0x248   : > { %v2951_v32 = vadd.f32 %v2950_v19, %v2944_v48  ;;  %v3285_v38 = vmul.f32 %v11855_v47, %v9560_v31  ;;  %v3284_v14 = vmul.f32 %v11856_v60, %v9563_v50  ;;  %v11857_v52 = vld [vmem:[#allocation108_spill] sm:$0xff]  ;;  %v11858_v0 = vld [vmem:[#allocation111_spill] sm:$0xff]  ;;  %v3718_v60 = vpop.permute.xlu1 %3717  ;;  %4928 = vperm.xlu1 %6504, %v6217_v16  }
 0x249   : > { %v3120_v37 = vadd.f32 %v3119_v23, %v3113_v46  ;;  %v3289_v54 = vadd.f32 %v3288_v8, %v3282_v29  ;;  %v3286_v26 = vmul.f32 %v11857_v52, %v9542_v9  ;;  %v3721_v12 = vmul.f32 %v3688_v41, %v11858_v0  ;;  %v6216_v48 = vld [vmem:[%s11352_s4 + $0x1f0] sm:$0xff]  ;;  %v11860_v19 = vld [vmem:[#allocation36_spill] sm:$0xff]  ;;  %v11862_v29 = vld [vmem:[#allocation22_spill] sm:$0xff] }
 0x24a   : > { %v9664_v11 = vadd.f32 %v2782_v39, %v2776_v17  ;;  %v2952_v62 = vadd.f32 %v2951_v32, %v2945_v27  ;;  %v3720_v15 = vmul.f32 %v3683_v6, %v11860_v19  ;;  %v11861_v45 = vld [vmem:[#allocation63_spill] sm:$0xff]  ;;  %v3722_v23 = vmul.f32 %v3693_v4, %v11862_v29  ;;  %v3713_v52 = vpop.permute.xlu0 %3712  ;;  %4923 = vperm.xlu0 %6503, %v6216_v48   ;;  %v11869_v48 = vld [vmem:[#allocation65_spill] sm:$0xff] }
 0x24b   : > { %v3723_v47 = vmul.f32 %v3698_v1, %v11861_v45  ;;  %v3121_v31 = vadd.f32 %v3120_v37, %v3114_v22  ;;  %v3290_v46 = vadd.f32 %v3289_v54, %v3283_v30  ;;  %v3729_v8 = vadd.f32 %v3721_v12, %v9527_v33  ;;  %v11864_v27 = vld [vmem:[#allocation31_spill] sm:$0xff]  ;;  %v6221_v1 = vld [vmem:[%s11353_s5 + $0x308] sm:$0xff]  ;;  %v11868_v37 = vld [vmem:[#allocation120_spill] sm:$0xff] }
 0x24c   : > { %11859 = vst [vmem:[#allocation14_spill] sm:$0xff] %v9664_v11  ;;  %v9670_v41 = vadd.f32 %v2952_v62, %v2946_v7  ;;  %v3728_v0 = vadd.f32 %v3720_v15, %v9577_v55  ;;  %v3725_v17 = vmul.f32 %v3708_v24, %v11864_v27  ;;  %v3730_v4 = vadd.f32 %v3722_v23, %v9587_v49  ;;  %v6220_v7 = vld [vmem:[%s11353_s5 + $0x300] sm:$0xff]  ;;  %v9687_v32 = vpop.permute.xlu1 %3948  ;;  %v6225_v15 = vld [vmem:[%s11353_s5 + $0x328] sm:$0xff]  ;;  %v11870_v45 = vld [vmem:[#allocation136_spill] sm:$0xff] }
 0x24d   : > { %v3731_v39 = vadd.f32 %v3723_v47, %v9581_v43  ;;  %v3122_v30 = vadd.f32 %v3121_v31, %v3115_v3  ;;  %v3291_v6 = vadd.f32 %v3290_v46, %v3284_v14  ;;  %v3745_v33 = vadd.f32 %v3729_v8, %v9211_v44  ;;  %5159 = vperm.xlu1 %6504, %v6221_v1   ;;  %v6224_v29 = vld [vmem:[%s11353_s5 + $0x320] sm:$0xff]  ;;  %v11872_v23 = vld [vmem:[#allocation100_spill] sm:$0xff] }
 0x24e   : > { %11863 = vst [vmem:[#allocation28_spill] sm:$0xff] %v9670_v41  ;;  %v3744_v55 = vadd.f32 %v3728_v0, %v9229_v13  ;;  %v3733_v24 = vadd.f32 %v3725_v17, %v9590_v58  ;;  %v3724_v22 = vmul.f32 %v3703_v56, %v9122_v25  ;;  %v3746_v49 = vadd.f32 %v3730_v4, %v9274_v36  ;;  %v9693_v14 = vpop.permute.xlu0 %3943  ;;  %v6223_v56 = vld [vmem:[%s11353_s5 + $0x318] sm:$0xff]  ;;  %v11875_v1 = vld [vmem:[#allocation133_spill] sm:$0xff] }
 0x24f   : > { %v3747_v43 = vadd.f32 %v3731_v39, %v9262_v57  ;;  %v9689_v3 = vadd.f32 %v3122_v30, %v3116_v5  ;;  %v3292_v31 = vadd.f32 %v3291_v6, %v3285_v38  ;;  %v3763_v44 = vadd.f32 %v9424_v20, %v3745_v33  ;;  %5154 = vperm.xlu0 %6503, %v6220_v7   ;;  %v11867_v38 = vld [vmem:[#allocation20_spill] sm:$0xff]  ;;  %v11874_v39 = vld [vmem:[#allocation27_spill] sm:$0xff]  ;;  %v11877_v33 = vld [vmem:[#allocation89_spill] sm:$0xff] }
 0x250   : > { %v3762_v13 = vadd.f32 %v9427_v10, %v3744_v55  ;;  %v3749_v58 = vadd.f32 %v3733_v24, %v9310_v34  ;;  %v3732_v25 = vadd.f32 %v3724_v22, %v9593_v18  ;;  %v3670_v36 = vmul.f32 %v9511_v59, %v11753_v63  ;;  %v6222_v34 = vld [vmem:[%s11353_s5 + $0x310] sm:$0xff]  ;;  %v11876_v6 = vld [vmem:[#allocation40_spill] sm:$0xff]  ;;  %v11879_v55 = vld [vmem:[#allocation98_spill] sm:$0xff] }
 0x251   : > { %11865 = vst [vmem:[#allocation117_spill] sm:$0xff] %v9689_v3  ;;  %v3765_v57 = vadd.f32 %v9440_v40, %v3747_v43  ;;  %v9702_v5 = vadd.f32 %v3292_v31, %v3286_v26  ;;  %v3764_v20 = vadd.f32 %v9443_v51, %v3746_v49  ;;  %v3727_v10 = vmul.f32 %v3718_v60, %v11867_v38  ;;  %v9718_v26 = vpop.permute.xlu1 %3958  ;;  %v11871_v60 = vld [vmem:[#allocation123_spill] sm:$0xff]  ;;  %v11880_v24 = vld [vmem:[#allocation126_spill] sm:$0xff] }
 0x252   : > { %v3669_v40 = vmul.f32 %v9529_v21, %v11753_v63  ;;  %v9714_v18 = vadd.f32 %v9414_v28, %v3763_v44  ;;  %v3767_v16 = vadd.f32 %v9472_v53, %v3749_v58  ;;  %v3748_v54 = vadd.f32 %v3732_v25, %v11868_v37  ;;  %v9727_v19 = vpop.permute.xlu0 %3953  ;;  %5169 = vperm.xlu1 %6504, %v6223_v56   ;;  %v11881_v44 = vld [vmem:[#allocation88_spill] sm:$0xff]  ;;  %v11882_v25 = vld [vmem:[#allocation97_spill] sm:$0xff] }
 0x253   : > { %11866 = vst [vmem:[#allocation75_spill] sm:$0xff] %v9702_v5  ;;  %v9721_v51 = vadd.f32 %v9414_v28, %v3762_v13  ;;  %v9724_v59 = vadd.f32 %v9414_v28, %v3765_v57  ;;  %v3735_v12 = vadd.f32 %v3727_v10, %v3670_v36  ;;  %v3726_v62 = vmul.f32 %v3713_v52, %v11869_v48  ;;  %v11873_v52 = vld [vmem:[#allocation99_spill] sm:$0xff]  ;;  %v6227_v58 = vld [vmem:[%s11353_s5 + $0x338] sm:$0xff]  ;;  %v11886_v10 = vld [vmem:[#allocation93_spill] sm:$0xff] }
 0x254   : > { %v9730_v63 = vadd.f32 %v9414_v28, %v3764_v20  ;;  %v9733_v53 = vadd.f32 %v9414_v28, %v3767_v16  ;;  %v3766_v21 = vadd.f32 %v9486_v61, %v3748_v54  ;;  %5164 = vperm.xlu0 %6503, %v6222_v34   ;;  %v1678_v47 = vadd.f32 %v11870_v45, %v9459_v35  ;;  %v11884_v36 = vld [vmem:[#allocation96_spill] sm:$0xff]  ;;  %v11887_v16 = vld [vmem:[#allocation134_spill] sm:$0xff]  ;;  %v6226_v54 = vld [vmem:[%s11353_s5 + $0x330] sm:$0xff] }
 0x255   : > { %v3751_v46 = vadd.f32 %v3735_v12, %v11871_v60  ;;  %v3734_v8 = vadd.f32 %v3726_v62, %v3669_v40  ;;  %v1507_v0 = vadd.f32 %v11873_v52, %v11872_v23  ;;  %v1964_v61 = vcombine.high %v11874_v39, %v11874_v39  ;;  %v9754_v35 = vpop.permute.xlu1 %3968  ;;  %v11888_v12 = vld [vmem:[#allocation102_spill] sm:$0xff]  ;;  %v11889_v62 = vld [vmem:[#allocation52_spill] sm:$0xff]  ;;  %v11892_v60 = vld [vmem:[#allocation105_spill] sm:$0xff] }
 0x256   : > { %v3781_v27 = vmax.f32 %v9714_v18, %v9733_v53  ;;  %v9752_v17 = vadd.f32 %v9414_v28, %v3766_v21  ;;  %v1679_v30 = vadd.f32 %v1678_v47, %v11875_v1  ;;  %v11878_v4 = vcombine.high %v11877_v33, %v11877_v33  ;;  %v9763_v31 = vpop.permute.xlu0 %3963  ;;  %5179 = vperm.xlu1 %6504, %v6225_v15   ;;  %v11891_v47 = vld [vmem:[#allocation47_spill] sm:$0xff]  ;;  %v11895_v52 = vld [vmem:[#allocation54_spill] sm:$0xff] }
 0x257   : > { %v3769_v43 = vadd.f32 %v11879_v55, %v3751_v46  ;;  %v3750_v22 = vadd.f32 %v3734_v8, %v11880_v24  ;;  %v1508_v49 = vadd.f32 %v1507_v0, %v11881_v44  ;;  %v1996_v13 = vrot.slane %v1964_v61, %v11876_v6  ;;  %v11893_v8 = vld [vmem:[#allocation76_spill] sm:$0xff]  ;;  %v11897_v33 = vld [vmem:[#allocation90_spill] sm:$0xff] }
 0x258   : > { %v1992_v7 = vrot.slane %v11878_v4, %v11876_v6  ;;  %v3780_v57 = vmax.f32 %v9721_v51, %v9752_v17  ;;  %5174 = vperm.xlu0 %6503, %v6224_v29   ;;  %v9773_v56 = vadd.f32 %v11882_v25, %v1679_v30  ;;  %v11885_v20 = vrot.slane %v11874_v39, %v11876_v6  ;;  %v11894_v29 = vld [vmem:[#allocation83_spill] sm:$0xff]  ;;  %v6229_v55 = vld [vmem:[%s11353_s5 + $0x348] sm:$0xff]  ;;  %v6228_v25 = vld [vmem:[%s11353_s5 + $0x340] sm:$0xff] }
 0x259   : > { %v9781_v40 = vadd.f32 %v9414_v28, %v3769_v43  ;;  %v3768_v37 = vadd.f32 %v11887_v16, %v3750_v22  ;;  %v1509_v48 = vadd.f32 %v1508_v49, %v11888_v12  ;;  %v2012_v21 = vmul.f32 %v1996_v13, %v11889_v62  ;;  %v9789_v45 = vpop.permute.xlu1 %3978  ;;  %v11899_v43 = vld [vmem:[#allocation101_spill] sm:$0xff]  ;;  %v11901_v49 = vld [vmem:[#allocation103_spill] sm:$0xff] }
 0x25a   : > { %11883 = vst [vmem:[#allocation30_spill] sm:$0xff] %v9773_v56  ;;  %v2010_v38 = vmul.f32 %v11885_v20, %v11884_v36  ;;  %v2011_v34 = vmul.f32 %v1992_v7, %v11886_v10  ;;  %v3784_v15 = vmax.f32 %v3780_v57, %v3781_v27  ;;  %11890 = vst [vmem:[#allocation61_spill] sm:$0xff] %v9789_v45  ;;  %v9802_v1 = vpop.permute.xlu0 %3973  ;;  %5189 = vperm.xlu1 %6504, %v6227_v58   ;;  %v11896_v27 = vld [vmem:[#allocation137_spill] sm:$0xff]  ;;  %v11903_v20 = vld [vmem:[#allocation59_spill] sm:$0xff] }
 0x25b   : > { %v2015_v46 = vadd.f32 %v11892_v60, %v11891_v47  ;;  %v2083_v23 = vadd.f32 %v11894_v29, %v11893_v8  ;;  %v1794_v0 = vcombine.high %v11895_v52, %v11895_v52  ;;  %v3783_v39 = vmax.f32 %v9724_v59, %v9781_v40  ;;  %v11902_v13 = vld [vmem:[#allocation53_spill] sm:$0xff] }
 0x25c   : > { %v9800_v61 = vadd.f32 %v9414_v28, %v3768_v37  ;;  %v1510_v30 = vadd.f32 %v1509_v48, %v11896_v27  ;;  %v11898_v4 = vcombine.high %v11897_v33, %v11897_v33  ;;  %5184 = vperm.xlu0 %6503, %v6226_v54   ;;  %v11900_v22 = vrot.slane %v11895_v52, %v11876_v6  ;;  %v11905_v54 = vld [vmem:[#allocation74_spill] sm:$0xff]  ;;  %v11906_v12 = vld [vmem:[#allocation81_spill] sm:$0xff]  ;;  %v11910_v52 = vld [vmem:[#allocation104_spill] sm:$0xff] }
 0x25d   : > { %v2016_v24 = vadd.f32 %v2015_v46, %v11899_v43  ;;  %v1826_v28 = vrot.slane %v1794_v0, %v11876_v6  ;;  %v1845_v57 = vadd.f32 %v11902_v13, %v11901_v49  ;;  %v1913_v48 = vadd.f32 %v11906_v12, %v11905_v54  ;;  %v9837_v46 = vpop.permute.xlu1 %4118  ;;  %v11911_v27 = vld [vmem:[#allocation113_spill] sm:$0xff]  ;;  %v11916_v43 = vld [vmem:[#allocation115_spill] sm:$0xff] }
 0x25e   : > { %v1822_v7 = vrot.slane %v11898_v4, %v11876_v6  ;;  %v1840_v44 = vmul.f32 %v11900_v22, %v11884_v36  ;;  %v3782_v58 = vmax.f32 %v9730_v63, %v9800_v61  ;;  %v9826_v16 = vadd.f32 %v11903_v20, %v1510_v30  ;;  %v11907_v36 = vld [vmem:[#allocation51_spill] sm:$0xff]  ;;  %v9853_v13 = vpop.permute.xlu0 %4113  ;;  %5329 = vperm.xlu1 %6504, %v6229_v55   ;;  %v6231_v20 = vld [vmem:[%s11353_s5 + $0x358] sm:$0xff]  ;;  %v11930_v4 = vld [vmem:[#allocation70_spill] sm:$0xff] }
 0x25f   : > { %v11908_v47 = vcombine.high %v11907_v36, %v11907_v36  ;;  %v2017_v8 = vadd.f32 %v2016_v24, %v2010_v38  ;;  %v1842_v29 = vmul.f32 %v1826_v28, %v11889_v62  ;;  %v1846_v0 = vadd.f32 %v1845_v57, %v11910_v52  ;;  %v11918_v38 = vld [vmem:[#allocation114_spill] sm:$0xff]  ;;  %v11921_v28 = vld [vmem:[#allocation116_spill] sm:$0xff] }
 0x260   : > { %11904 = vst [vmem:[#allocation56_spill] sm:$0xff] %v9826_v16  ;;  %v1841_v37 = vmul.f32 %v1822_v7, %v11886_v10  ;;  %v11912_v10 = vcombine.high %v11911_v27, %v11911_v27  ;;  %v11915_v7 = vld [vmem:[#allocation38_spill] sm:$0xff]  ;;  %v3785_v49 = vmax.f32 %v3782_v58, %v3783_v39  ;;  %v11919_v62 = vcombine.high %v11918_v38, %v11918_v38 }
 0x261   : > { %v9835_v60 = vrot.slane %v11908_v47, %v11876_v6  ;;  %v9851_v22 = vrot.slane %v11916_v43, %v11915_v7  ;;  %v4213_v57 = vcombine.high %v11921_v28, %v11921_v28  ;;  %5324 = vperm.xlu0 %6503, %v6228_v25   ;;  %v2018_v54 = vadd.f32 %v2017_v8, %v2011_v34  ;;  %v11924_v47 = vld [vmem:[#allocation24_spill] sm:$0xff]  ;;  %v6230_v25 = vld [vmem:[%s11353_s5 + $0x350] sm:$0xff] }
 0x262   : > { %v9845_v30 = vrot.slane %v11912_v10, %v11876_v6  ;;  %v9859_v24 = vrot.slane %v11919_v62, %v11915_v7  ;;  %v1847_v12 = vadd.f32 %v1846_v0, %v1840_v44  ;;  %v11922_v39 = vcombine.high %v11916_v43, %v11916_v43  ;;  %v11925_v44 = vld [vmem:[#allocation17_spill] sm:$0xff]  ;;  %v11926_v8 = vld [vmem:[#allocation68_spill] sm:$0xff]  ;;  %v9887_v43 = vpop.permute.xlu1 %4128  ;;  %v9897_v58 = vpop.permute.xlu0 %4123  ;;  %5339 = vperm.xlu1 %6504, %v6231_v20  }
 0x263   : > { %11909 = vst [vmem:[#allocation77_spill] sm:$0xff] %v9835_v60  ;;  %11917 = vst [vmem:[#allocation79_spill] sm:$0xff] %v9851_v22  ;;  %v2787_v52 = vcombine.high %v11924_v47, %v11924_v47  ;;  %v9876_v10 = vmax.f32 %v3784_v15, %v3785_v49  ;;  %v2794_v34 = vrot.slane %v11924_v47, %v11915_v7 }
 0x264   : > { %11913 = vst [vmem:[#allocation78_spill] sm:$0xff] %v9845_v30  ;;  %11920 = vst [vmem:[#allocation80_spill] sm:$0xff] %v9859_v24  ;;  %v9870_v55 = vrot.slane %v11922_v39, %v11915_v7  ;;  %v9885_v0 = vadd.f32 %v11926_v8, %v11925_v44  ;;  %v2019_v38 = vadd.f32 %v2018_v54, %v2012_v21 }
 0x265   : > { %v1848_v62 = vadd.f32 %v1847_v12, %v1841_v37  ;;  %v3787_v39 = vsub.f32 %v9721_v51, %v9876_v10  ;;  %v3788_v15 = vsub.f32 %v9714_v18, %v9876_v10  ;;  %v3789_v49 = vsub.f32 %v9730_v63, %v9876_v10  ;;  %5334 = vperm.xlu0 %6503, %v6230_v25  }
 0x266   : > { %11923 = vst [vmem:[#allocation84_spill] sm:$0xff] %v9870_v55  ;;  %v3790_v47 = vsub.f32 %v9724_v59, %v9876_v10  ;;  %v3791_v44 = vsub.f32 %v9752_v17, %v9876_v10  ;;  %v3792_v21 = vsub.f32 %v9733_v53, %v9876_v10  ;;  %v3793_v51 = vsub.f32 %v9800_v61, %v9876_v10  ;;  %v6233_v59 = vld [vmem:[%s11353_s5 + $0x368] sm:$0xff]  ;;  %v6232_v17 = vld [vmem:[%s11353_s5 + $0x360] sm:$0xff]  ;;  %v9920_v25 = vpop.permute.xlu1 %4138  ;;  %v11935_v61 = vld [vmem:[#allocation19_spill] sm:$0xff] }
 0x267   : > { %v2801_v63 = vrot.slane %v2787_v52, %v11915_v7  ;;  %v3795_v37 = vmul.f32 1.442695, %v3787_v39  ;;  %v3797_v20 = vmul.f32 1.442695, %v3788_v15  ;;  %v9914_v53 = vadd.f32 %v2083_v23, %v2019_v38  ;;  %11928 = vst [vmem:[#allocation44_spill] sm:$0xff] %v9920_v25  ;;  %v11929_v15 = vld [vmem:[#allocation18_spill] sm:$0xff]  ;;  %v9926_v23 = vpop.permute.xlu0 %4133  ;;  %5349 = vperm.xlu1 %6504, %v6233_v59  }
 0x268   : > { %v3799_v12 = vmul.f32 1.442695, %v3789_v49  ;;  %v1849_v8 = vadd.f32 %v1848_v62, %v1842_v29  ;;  %v4215_v52 = vcombine.high %v9859_v24, %v9859_v24  ;;  %v2802_v39 = vcombine.high %v2794_v34, %v2794_v34  ;;  %11931 = vst [vmem:[#allocation10_spill] sm:$0xff] %v9926_v23  ;;  %v6235_v29 = vld [vmem:[%s11353_s5 + $0x378] sm:$0xff] }
 0x269   : > { %11927 = vst [vmem:[#allocation9_spill] sm:$0xff] %v9914_v53  ;;  %v794_v18 = vadd.f32 %v11930_v4, %v11929_v15  ;;  %6541 = vpow2.f32 %v3795_v37  ;;  %v3801_v54 = vmul.f32 1.442695, %v3790_v47  ;;  %5344 = vperm.xlu0 %6503, %v6232_v17   ;;  %v9936_v49 = vrot.slane %v4213_v57, %v11876_v6  ;;  %v6234_v47 = vld [vmem:[%s11353_s5 + $0x370] sm:$0xff]  ;;  %v11936_v38 = vld [vmem:[#allocation72_spill] sm:$0xff] }
 0x26a   : > { %6543 = vpow2.f32 %v3797_v20  ;;  %v9933_v62 = vadd.f32 %v1913_v48, %v1849_v8  ;;  %v2803_v4 = vcombine.high %v2801_v63, %v2801_v63  ;;  %v9939_v37 = vrot.slane %v2794_v34, %v11915_v7  ;;  %v9951_v17 = vpop.permute.xlu1 %4148 }
 0x26b   : > { %11933 = vst [vmem:[#allocation91_spill] sm:$0xff] %v9936_v49  ;;  %v2617_v59 = vcombine.high %v9885_v0, %v9885_v0  ;;  %v9947_v20 = vrot.slane %v2801_v63, %v11915_v7  ;;  %v2624_v48 = vrot.slane %v9885_v0, %v11915_v7  ;;  %6545 = vpow2.f32 %v3799_v12  ;;  %11934 = vst [vmem:[#allocation92_spill] sm:$0xff] %v9951_v17  ;;  %v9960_v53 = vpop.permute.xlu0 %4143  ;;  %v6237_v12 = vld [vmem:[%s11353_s5 + $0x388] sm:$0xff] }
 0x26c   : > { %11932 = vst [vmem:[#allocation48_spill] sm:$0xff] %v9933_v62  ;;  %v3803_v57 = vmul.f32 1.442695, %v3791_v44  ;;  %v9956_v8 = vrot.slane %v2802_v39, %v11915_v7  ;;  %v3127_v15 = vcombine.high %v794_v18, %v794_v18  ;;  %v789_v62 = vadd.f32 %v11936_v38, %v11935_v61  ;;  %11937 = vst [vmem:[#allocation11_spill] sm:$0xff] %v9960_v53 }
 0x26d   : > { %5359 = vperm.xlu1 %6504, %v6235_v29   ;;  %v9963_v63 = vrot.slane %v4215_v52, %v11876_v6  ;;  %v3134_v0 = vrot.slane %v794_v18, %v11915_v7  ;;  %6547 = vpow2.f32 %v3801_v54  ;;  %v3805_v44 = vmul.f32 1.442695, %v3792_v21  ;;  %5354 = vperm.xlu0 %6503, %v6234_v47   ;;  %v6236_v21 = vld [vmem:[%s11353_s5 + $0x380] sm:$0xff] }
 0x26e   : > { %v9970_v39 = vrot.slane %v2803_v4, %v11915_v7  ;;  %v2832_v61 = vcombine.high %v9939_v37, %v9939_v37  ;;  %v2631_v52 = vrot.slane %v2617_v59, %v11915_v7  ;;  %v2632_v54 = vcombine.high %v2624_v48, %v2624_v48  ;;  %v9982_v4 = vpop.permute.xlu1 %4288 }
 0x26f   : > { %11938 = vst [vmem:[#allocation86_spill] sm:$0xff] %v9963_v63  ;;  %6549 = vpow2.f32 %v3803_v57  ;;  %v3807_v29 = vmul.f32 1.442695, %v3793_v51  ;;  %11939 = vst [vmem:[#allocation94_spill] sm:$0xff] %v9982_v4  ;;  %v2834_v47 = vcombine.high %v9956_v8, %v9956_v8  ;;  %v3141_v59 = vrot.slane %v3127_v15, %v11915_v7  ;;  %v9989_v16 = vpop.permute.xlu0 %4283  ;;  %v6239_v63 = vld [vmem:[%s11353_s5 + $0x398] sm:$0xff] }
 0x270   : > { %v2957_v38 = vcombine.high %v789_v62, %v789_v62  ;;  %11940 = vst [vmem:[#allocation50_spill] sm:$0xff] %v9989_v16  ;;  %v3142_v56 = vcombine.high %v3134_v0, %v3134_v0  ;;  %v2964_v18 = vrot.slane %v789_v62, %v11915_v7  ;;  %6551 = vpow2.f32 %v3805_v44 }
 0x271   : > { %5499 = vperm.xlu1 %6504, %v6237_v12   ;;  %v11941_v51 = vsub.f32 %v9781_v40, %v9876_v10  ;;  %5494 = vperm.xlu0 %6503, %v6236_v21   ;;  %v2633_v22 = vcombine.high %v2631_v52, %v2631_v52  ;;  %v10003_v12 = vrot.slane %v2624_v48, %v11915_v7  ;;  %v6238_v40 = vld [vmem:[%s11353_s5 + $0x390] sm:$0xff]  ;;  %6553 = vpow2.f32 %v3807_v29 }
 0x272   : > { %v10006_v62 = vrot.slane %v2631_v52, %v11915_v7  ;;  %v10014_v44 = vrot.slane %v2832_v61, %v11876_v6  ;;  %v10021_v48 = vpop.permute.xlu1 %4298  ;;  %v10024_v52 = vrot.slane %v2834_v47, %v11876_v6  ;;  %v10027_v15 = vrot.slane %v3134_v0, %v11915_v7  ;;  %v6241_v0 = vld [vmem:[%s11353_s5 + $0x3a8] sm:$0xff] }
 0x273   : > { %v3809_v57 = vmul.f32 1.442695, %v11941_v51  ;;  %v9998_v34 = vpop.eup %6541  ;;  %v10019_v51 = vrot.slane %v2632_v54, %v11915_v7  ;;  %11942 = vst [vmem:[#allocation95_spill] sm:$0xff] %v10021_v48  ;;  %v2971_v49 = vrot.slane %v2957_v38, %v11915_v7  ;;  %v10032_v24 = vpop.permute.xlu0 %4293  ;;  %v3143_v54 = vcombine.high %v3141_v59, %v3141_v59 }
 0x274   : > { %v10011_v10 = vpop.eup %6543  ;;  %11943 = vst [vmem:[#allocation23_spill] sm:$0xff] %v10032_v24  ;;  %v10037_v29 = vrot.slane %v3142_v56, %v11915_v7  ;;  %v2972_v28 = vcombine.high %v2964_v18, %v2964_v18  ;;  %v10043_v38 = vrot.slane %v2633_v22, %v11915_v7  ;;  %v2662_v47 = vcombine.high %v10003_v12, %v10003_v12  ;;  %v6240_v56 = vld [vmem:[%s11353_s5 + $0x3a0] sm:$0xff] }
 0x275   : > { %v3811_v61 = vadd.f32 %v10011_v10, %v9998_v34  ;;  %5509 = vperm.xlu1 %6504, %v6239_v63   ;;  %v10034_v21 = vpop.eup %6545  ;;  %6555 = vpow2.f32 %v3809_v57  ;;  %5504 = vperm.xlu0 %6503, %v6238_v40   ;;  %v2664_v40 = vcombine.high %v10019_v51, %v10019_v51  ;;  %v10060_v30 = vrot.slane %v3141_v59, %v11915_v7 }
 0x276   : > { %v10063_v60 = vrot.slane %v2964_v18, %v11915_v7  ;;  %v10065_v63 = vpop.permute.xlu1 %4308  ;;  %v2973_v36 = vcombine.high %v2971_v49, %v2971_v49  ;;  %v10077_v59 = vrot.slane %v3143_v54, %v11915_v7  ;;  %v3172_v18 = vcombine.high %v10027_v15, %v10027_v15 }
 0x277   : > { %v3812_v55 = vadd.f32 %v10034_v21, %v3811_v61  ;;  %v10053_v57 = vpop.eup %6547  ;;  %11945 = vst [vmem:[#allocation111_spill] sm:$0xff] %v10065_v63  ;;  %v10072_v3 = vpop.permute.xlu0 %4303  ;;  %v3174_v61 = vcombine.high %v10037_v29, %v10037_v29  ;;  %v10084_v5 = vrot.slane %v2972_v28, %v11915_v7  ;;  %v10095_v27 = vrot.slane %v2971_v49, %v11915_v7  ;;  %v6242_v28 = vld [vmem:[%s11353_s5 + $0x3b0] sm:$0xff] }
 0x278   : > { %11944 = vst [vmem:[#allocation108_spill] sm:$0xff] %v10063_v60  ;;  %11946 = vst [vmem:[#allocation36_spill] sm:$0xff] %v10072_v3  ;;  %v10104_v41 = vrot.slane %v2664_v40, %v11876_v6  ;;  %v3002_v49 = vcombine.high %v10063_v60, %v10063_v60  ;;  %v10119_v40 = vrot.slane %v2973_v36, %v11915_v7 }
 0x279   : > { %v3813_v45 = vadd.f32 %v10053_v57, %v3812_v55  ;;  %5519 = vperm.xlu1 %6504, %v6241_v0   ;;  %v10074_v22 = vpop.eup %6549  ;;  %11947 = vst [vmem:[#allocation63_spill] sm:$0xff] %v10084_v5  ;;  %5514 = vperm.xlu0 %6503, %v6240_v56   ;;  %v6243_v55 = vld [vmem:[%s11353_s5 + $0x3b8] sm:$0xff]  ;;  %v10090_v0 = vrot.slane %v2662_v47, %v11876_v6  ;;  %11948 = vst [vmem:[#allocation22_spill] sm:$0xff] %v10095_v27 }
 0x27a   : > { %v10101_v56 = vpop.eup %6551  ;;  %v3173_v47 = vcombine.high %v10060_v30, %v10060_v30  ;;  %v10112_v3 = vpop.permute.xlu1 %4318  ;;  %11950 = vst [vmem:[#allocation20_spill] sm:$0xff] %v10119_v40  ;;  %v10127_v16 = vrot.slane %v3172_v18, %v11876_v6  ;;  %v3004_v36 = vcombine.high %v10084_v5, %v10084_v5  ;;  %v10152_v7 = vrot.slane %v3002_v49, %v11876_v6 }
 0x27b   : > { %v3814_v11 = vadd.f32 %v10074_v22, %v3813_v45  ;;  %11949 = vst [vmem:[#allocation31_spill] sm:$0xff] %v10112_v3  ;;  %v10122_v48 = vpop.permute.xlu0 %4313  ;;  %v10124_v54 = vpop.eup %6553  ;;  %v10130_v3 = vrot.slane %v3174_v61, %v11876_v6  ;;  %v6244_v45 = vld [vmem:[%s11353_s5 + $0x3c0] sm:$0xff]  ;;  %v2835_v18 = vcombine.high %v9970_v39, %v9970_v39  ;;  %v3175_v49 = vcombine.high %v10077_v59, %v10077_v59  ;;  %v11959_v61 = vld [vmem:[#allocation42_spill] sm:$0xff] }
 0x27c   : > { %11951 = vst [vmem:[#allocation120_spill] sm:$0xff] %v10122_v48  ;;  %11952 = vst [vmem:[#allocation65_spill] sm:$0xff] %v10152_v7  ;;  %v3005_v48 = vcombine.high %v10119_v40, %v10119_v40  ;;  %v11956_v7 = vld [vmem:[#allocation145_spill] sm:$0xff]  ;;  %v11962_v40 = vld [vmem:[#allocation87_spill] sm:$0xff] }
 0x27d   : > { %v3815_v24 = vadd.f32 %v10101_v56, %v3814_v11  ;;  %5529 = vperm.xlu1 %6504, %v6243_v55   ;;  %5524 = vperm.xlu0 %6503, %v6242_v28   ;;  %v6245_v11 = vld [vmem:[%s11353_s5 + $0x3c8] sm:$0xff]  ;;  %v3003_v55 = vcombine.high %v10095_v27, %v10095_v27  ;;  %v10172_v27 = vrot.slane %v3004_v36, %v11876_v6 }
 0x27e   : > { %v10156_v4 = vpop.permute.xlu1 %4458  ;;  %v10180_v17 = vmul.f32 %v11959_v61, %v11956_v7  ;;  %v10189_v36 = vmul.f32 %v11962_v40, %v11956_v7  ;;  %v11966_v61 = vcombine.high %v9947_v20, %v9947_v20  ;;  %v11968_v40 = vcombine.high %v10006_v62, %v10006_v62 }
 0x27f   : > { %v3816_v63 = vadd.f32 %v10124_v54, %v3815_v24  ;;  %v10149_v28 = vpop.eup %6555  ;;  %11953 = vst [vmem:[#allocation136_spill] sm:$0xff] %v10156_v4  ;;  %v2665_v24 = vcombine.high %v10043_v38, %v10043_v38  ;;  %v10165_v60 = vpop.permute.xlu0 %4453  ;;  %11955 = vst [vmem:[#allocation100_spill] sm:$0xff] %v10172_v27  ;;  %v11957_v4 = vld [vmem:[#allocation13_spill] sm:$0xff]  ;;  %v11964_v27 = vld [vmem:[#allocation58_spill] sm:$0xff]  ;;  %v10214_v23 = vrot.slane %v3175_v49, %v11876_v6 }
 0x280   : > { %11954 = vst [vmem:[#allocation123_spill] sm:$0xff] %v10165_v60  ;;  %v10176_v53 = vmul.f32 %v11957_v4, %v11956_v7  ;;  %11960 = vst [vmem:[#allocation27_spill] sm:$0xff] %v10180_v17  ;;  %v10193_v4 = vmul.f32 %v11964_v27, %v11956_v7  ;;  %v2693_v27 = vrot.slane %v11968_v40, %v11876_v6  ;;  %v11976_v49 = vld [vmem:[#allocation112_spill] sm:$0xff] }
 0x281   : > { %v3817_v5 = vadd.f32 %v10149_v28, %v3816_v63  ;;  %5669 = vperm.xlu1 %6504, %v6245_v11   ;;  %5664 = vperm.xlu0 %6503, %v6244_v45   ;;  %v6247_v63 = vld [vmem:[%s11353_s5 + $0x3d8] sm:$0xff]  ;;  %v11961_v11 = vld [vmem:[#allocation37_spill] sm:$0xff]  ;;  %11963 = vst [vmem:[#allocation133_spill] sm:$0xff] %v10189_v36  ;;  %v6246_v45 = vld [vmem:[%s11353_s5 + $0x3d0] sm:$0xff]  ;;  %v3203_v36 = vrot.slane %v3173_v47, %v11876_v6 }
 0x282   : > { %11958 = vst [vmem:[#allocation99_spill] sm:$0xff] %v10176_v53  ;;  %v4046_v60 = vcombine.high %v11961_v11, %v11961_v11  ;;  %11965 = vst [vmem:[#allocation40_spill] sm:$0xff] %v10193_v4  ;;  %v2863_v53 = vrot.slane %v11966_v61, %v11876_v6  ;;  %v10202_v17 = vpop.permute.xlu1 %4468  ;;  %v2867_v11 = vrot.slane %v2835_v18, %v11876_v6  ;;  %v6249_v47 = vld [vmem:[%s11353_s5 + $0x3e8] sm:$0xff] }
 0x283   : > { %6557 = vrcp.f32 %v3817_v5  ;;  %11967 = vst [vmem:[#allocation89_spill] sm:$0xff] %v10202_v17  ;;  %v2697_v5 = vrot.slane %v2665_v24, %v11876_v6  ;;  %v10211_v4 = vpop.permute.xlu0 %4463  ;;  %11969 = vst [vmem:[#allocation98_spill] sm:$0xff] %v10214_v23  ;;  %v10217_v61 = vrot.slane %v3003_v55, %v11876_v6  ;;  %v10220_v18 = vrot.slane %v3005_v48, %v11876_v6  ;;  %v11972_v17 = vld [vmem:[#allocation21_spill] sm:$0xff]  ;;  %v11977_v48 = vld [vmem:[#allocation107_spill] sm:$0xff] }
 0x284   : > { %v11973_v40 = vcombine.high %v11972_v17, %v11972_v17  ;;  %v10232_v24 = vrot.slane %v4046_v60, %v11876_v6  ;;  %v3876_v55 = vcombine.high %v11976_v49, %v11976_v49  ;;  %v11981_v60 = vrot.slane %v9939_v37, %v11876_v6  ;;  %v11982_v17 = vld [vmem:[#allocation139_spill] sm:$0xff] }
 0x285   : > { %5679 = vperm.xlu1 %6504, %v6247_v63   ;;  %11970 = vst [vmem:[#allocation126_spill] sm:$0xff] %v10217_v61  ;;  %11971 = vst [vmem:[#allocation88_spill] sm:$0xff] %v10220_v18  ;;  %5674 = vperm.xlu0 %6503, %v6246_v45   ;;  %v11978_v63 = vcombine.high %v11977_v48, %v11977_v48  ;;  %v6248_v45 = vld [vmem:[%s11353_s5 + $0x3e0] sm:$0xff]  ;;  %v11983_v49 = vrot.slane %v9956_v8, %v11876_v6  ;;  %v11985_v37 = vld [vmem:[#allocation143_spill] sm:$0xff] }
 0x286   : > { %v10226_v25 = vrot.slane %v11973_v40, %v11876_v6  ;;  %11975 = vst [vmem:[#allocation96_spill] sm:$0xff] %v10232_v24  ;;  %v2879_v40 = vmul.f32 %v10024_v52, %v9551_v42  ;;  %v10259_v33 = vpop.permute.xlu1 %4478 }
 0x287   : > { %v10240_v18 = vrot.slane %v11978_v63, %v11876_v6  ;;  %v2877_v61 = vmul.f32 %v11983_v49, %v11982_v17  ;;  %v2878_v63 = vmul.f32 %v10014_v44, %v9557_v2  ;;  %v10274_v49 = vmul.f32 %v2863_v53, %v9542_v9  ;;  %v10279_v52 = vpop.permute.xlu0 %4473 }
 0x288   : > { %11974 = vst [vmem:[#allocation97_spill] sm:$0xff] %v10226_v25  ;;  %v11980_v25 = vld [vmem:[#allocation140_spill] sm:$0xff]  ;;  %v10277_v44 = vmul.f32 %v2867_v11, %v11956_v7  ;;  %v2708_v53 = vmul.f32 %v10090_v0, %v9557_v2 }
 0x289   : > { %11979 = vst [vmem:[#allocation93_spill] sm:$0xff] %v10240_v18  ;;  %v2876_v24 = vmul.f32 %v11981_v60, %v11980_v25  ;;  %v11984_v18 = vrot.slane %v9947_v20, %v11876_v6  ;;  %v11986_v60 = vrot.slane %v9970_v39, %v11876_v6  ;;  %5689 = vperm.xlu1 %6504, %v6249_v47   ;;  %v6251_v11 = vld [vmem:[%s11353_s5 + $0x3f8] sm:$0xff] }
 0x28a   : > { %v11987_v20 = vrot.slane %v10003_v12, %v11876_v6  ;;  %v11988_v39 = vrot.slane %v10019_v51, %v11876_v6  ;;  %5684 = vperm.xlu0 %6503, %v6248_v45   ;;  %v11989_v12 = vrot.slane %v10006_v62, %v11876_v6  ;;  %v11990_v51 = vrot.slane %v10043_v38, %v11876_v6  ;;  %v10325_v38 = vpop.permute.xlu1 %4488 }
 0x28b   : > { %v10265_v48 = vmul.f32 %v11984_v18, %v9563_v50  ;;  %v10271_v8 = vmul.f32 %v11986_v60, %v11985_v37  ;;  %v2884_v23 = vadd.f32 %v2877_v61, %v2876_v24  ;;  %v10296_v61 = vmul.f32 %v10104_v41, %v9551_v42  ;;  %v6250_v41 = vld [vmem:[%s11353_s5 + $0x3f0] sm:$0xff] }
 0x28c   : > { %v2706_v18 = vmul.f32 %v11987_v20, %v11980_v25  ;;  %v2707_v60 = vmul.f32 %v11988_v39, %v11982_v17  ;;  %v10302_v47 = vmul.f32 %v11989_v12, %v9563_v50  ;;  %v10308_v0 = vmul.f32 %v11990_v51, %v11985_v37 }
 0x28d   : > { %v10311_v24 = vmul.f32 %v2693_v27, %v9542_v9  ;;  %v2885_v45 = vadd.f32 %v2884_v23, %v2878_v63  ;;  %v10317_v20 = vmul.f32 %v2697_v5, %v11956_v7  ;;  %v11992_v39 = vrot.slane %v10027_v15, %v11876_v6  ;;  %5699 = vperm.xlu1 %6504, %v6251_v11  }
 0x28e   : > { %v2714_v62 = vadd.f32 %v2707_v60, %v2706_v18  ;;  %v11993_v27 = vrot.slane %v10037_v29, %v11876_v6  ;;  %v10335_v23 = vmul.f32 %v10127_v16, %v9557_v2  ;;  %v10339_v5 = vmul.f32 %v10130_v3, %v9551_v42  ;;  %v6558_v18 = vpop.eup %6557  ;;  %v10347_v60 = vpop.permute.xlu0 %4483  ;;  %5694 = vperm.xlu0 %6503, %v6250_v41  }
 0x28f   : > { %11991 = vst [vmem:[#allocation134_spill] sm:$0xff] %v10317_v20  ;;  %v10323_v12 = vmul.f32 %v11992_v39, %v11980_v25  ;;  %v11994_v15 = vrot.slane %v10060_v30, %v11876_v6  ;;  %v10349_v29 = vadd.f32 %v2885_v45, %v2879_v40  ;;  %v11996_v16 = vrot.slane %v10077_v59, %v11876_v6  ;;  %v6253_v59 = vld [vmem:[%s11355_s7 + $0x1] ss:$0 sm:$0xff]  ;;  %v4622_v41 = vpop.permute.xlu1 %4621 }
 0x290   : > { %v10331_v51 = vmul.f32 %v11993_v27, %v11982_v17  ;;  %v10351_v39 = vadd.f32 %v2714_v62, %v2708_v53  ;;  %v10360_v27 = vmul.f32 %v3203_v36, %v9542_v9  ;;  %v10363_v30 = vmul.f32 %v6558_v18, %v10124_v54  ;;  %v12008_v9 = vld [vmem:[#allocation50_spill] sm:$0xff] }
 0x291   : > { %v10345_v63 = vmul.f32 %v11994_v15, %v9563_v50  ;;  %v10357_v3 = vmul.f32 %v11996_v16, %v11985_v37  ;;  %v10366_v15 = vmul.f32 %v6558_v18, %v10011_v10  ;;  %v10369_v40 = vmul.f32 %v6558_v18, %v9998_v34  ;;  %5819 = vperm.xlu1 %6504, %v6253_v59   ;;  %v12003_v59 = vld [vmem:[#allocation10_spill] sm:$0xff]  ;;  %v12009_v37 = vld [vmem:[#allocation95_spill] sm:$0xff] }
 0x292   : > { %11998 = vst [vmem:[#allocation47_spill] sm:$0xff] %v10360_v27  ;;  %v10372_v53 = vmul.f32 %v6558_v18, %v10053_v57  ;;  %v10378_v36 = vmul.f32 %v6558_v18, %v10034_v21  ;;  %v10381_v54 = vmul.f32 %v6558_v18, %v10101_v56  ;;  %v10384_v10 = vmul.f32 %v6558_v18, %v10074_v22  ;;  %v6252_v57 = vld [vmem:[%s11355_s7] ss:$0 sm:$0xff]  ;;  %v12011_v50 = vld [vmem:[#allocation111_spill] sm:$0xff] }
 0x293   : > { %11995 = vst [vmem:[#allocation102_spill] sm:$0xff] %v10345_v63  ;;  %11997 = vst [vmem:[#allocation52_spill] sm:$0xff] %v10357_v3  ;;  %v10387_v34 = vmul.f32 %v6558_v18, %v10149_v28  ;;  %v3982_v11 = vmul.f32 %v9687_v32, %v10366_v15  ;;  %v3981_v21 = vmul.f32 %v9693_v14, %v10369_v40  ;;  %v4617_v14 = vpop.permute.xlu0 %4616  ;;  %5815 = vperm.xlu0 %6503, %v6252_v57   ;;  %v12013_v63 = vld [vmem:[#allocation31_spill] sm:$0xff] }
 0x294   : > { %11999 = vst [vmem:[#allocation105_spill] sm:$0xff] %v10366_v15  ;;  %12000 = vst [vmem:[#allocation76_spill] sm:$0xff] %v10369_v40  ;;  %v3984_v56 = vmul.f32 %v9718_v26, %v10372_v53  ;;  %v10399_v22 = vrot.slane %v3876_v55, %v11876_v6  ;;  %v3983_v28 = vmul.f32 %v9727_v19, %v10378_v36 }
 0x295   : > { %v3986_v45 = vmul.f32 %v9754_v35, %v10381_v54  ;;  %v3985_v62 = vmul.f32 %v9763_v31, %v10384_v10  ;;  %v3987_v32 = vmul.f32 %v9802_v1, %v10363_v30  ;;  %v3989_v18 = vadd.f32 %v3982_v11, %v3981_v21  ;;  %v6255_v35 = vld [vmem:[%s11355_s7 + $0x3] ss:$0 sm:$0xff]  ;;  %v12002_v1 = vld [vmem:[#allocation44_spill] sm:$0xff] }
 0x296   : > { %12001 = vst [vmem:[#allocation83_spill] sm:$0xff] %v10399_v22  ;;  %v4152_v26 = vmul.f32 %v9837_v46, %v10366_v15  ;;  %v4151_v55 = vmul.f32 %v9853_v13, %v10369_v40  ;;  %v4154_v19 = vmul.f32 %v9887_v43, %v10372_v53  ;;  %v4153_v31 = vmul.f32 %v9897_v58, %v10378_v36  ;;  %v12004_v11 = vld [vmem:[#allocation92_spill] sm:$0xff]  ;;  %v6254_v43 = vld [vmem:[%s11355_s7 + $0x2] ss:$0 sm:$0xff]  ;;  %v12006_v22 = vld [vmem:[#allocation11_spill] sm:$0xff] }
 0x297   : > { %v4156_v16 = vmul.f32 %v12002_v1, %v10381_v54  ;;  %v4155_v46 = vmul.f32 %v12003_v59, %v10384_v10  ;;  %v10426_v13 = vmul.f32 %v12004_v11, %v10387_v34  ;;  %v3990_v57 = vadd.f32 %v3989_v18, %v3983_v28  ;;  %v12007_v58 = vld [vmem:[#allocation94_spill] sm:$0xff]  ;;  %v4632_v1 = vpop.permute.xlu1 %4631  ;;  %v4627_v18 = vpop.permute.xlu0 %4626  ;;  %5827 = vperm.xlu1 %6504, %v6255_v35   ;;  %v12016_v35 = vld [vmem:[#allocation136_spill] sm:$0xff] }
 0x298   : > { %v4159_v21 = vadd.f32 %v4152_v26, %v4151_v55  ;;  %v4157_v27 = vmul.f32 %v12006_v22, %v10363_v30  ;;  %v4322_v3 = vmul.f32 %v12007_v58, %v10366_v15  ;;  %v4321_v59 = vmul.f32 %v12008_v9, %v10369_v40  ;;  %v12012_v55 = vld [vmem:[#allocation36_spill] sm:$0xff]  ;;  %5823 = vperm.xlu0 %6503, %v6254_v43   ;;  %v6257_v9 = vld [vmem:[%s11355_s7 + $0x5] ss:$0 sm:$0xff] }
 0x299   : > { %12005 = vst [vmem:[#allocation54_spill] sm:$0xff] %v10426_v13  ;;  %v4324_v11 = vmul.f32 %v12009_v37, %v10372_v53  ;;  %v12010_v13 = vld [vmem:[#allocation23_spill] sm:$0xff]  ;;  %v4326_v28 = vmul.f32 %v12011_v50, %v10381_v54  ;;  %v3991_v26 = vadd.f32 %v3990_v57, %v3984_v56  ;;  %v4325_v58 = vmul.f32 %v12012_v55, %v10384_v10  ;;  %v12018_v55 = vld [vmem:[#allocation89_spill] sm:$0xff] }
 0x29a   : > { %v4323_v20 = vmul.f32 %v12010_v13, %v10378_v36  ;;  %v4160_v22 = vadd.f32 %v4159_v21, %v4153_v31  ;;  %v10447_v42 = vmul.f32 %v12013_v63, %v10387_v34  ;;  %v4329_v37 = vadd.f32 %v4322_v3, %v4321_v59  ;;  %v12015_v13 = vld [vmem:[#allocation120_spill] sm:$0xff]  ;;  %v12017_v31 = vld [vmem:[#allocation123_spill] sm:$0xff]  ;;  %v6256_v63 = vld [vmem:[%s11355_s7 + $0x4] ss:$0 sm:$0xff] }
 0x29b   : > { %v4327_v50 = vmul.f32 %v12015_v13, %v10363_v30  ;;  %v4492_v56 = vmul.f32 %v12016_v35, %v10366_v15  ;;  %v4491_v57 = vmul.f32 %v12017_v31, %v10369_v40  ;;  %v3992_v21 = vadd.f32 %v3991_v26, %v3985_v62  ;;  %v4642_v59 = vpop.permute.xlu1 %4641  ;;  %v4637_v15 = vpop.permute.xlu0 %4636  ;;  %5835 = vperm.xlu1 %6504, %v6257_v9  }
 0x29c   : > { %12014 = vst [vmem:[#allocation137_spill] sm:$0xff] %v10447_v42  ;;  %v4161_v43 = vadd.f32 %v4160_v22, %v4154_v19  ;;  %v4494_v42 = vmul.f32 %v12018_v55, %v10372_v53  ;;  %v4493_v3 = vmul.f32 %v10211_v4, %v10378_v36  ;;  %v4330_v13 = vadd.f32 %v4329_v37, %v4323_v20  ;;  %v6259_v20 = vld [vmem:[%s11355_s7 + $0x7] ss:$0 sm:$0xff]  ;;  %v12019_v22 = vld [vmem:[#allocation39_spill] sm:$0xff] }
 0x29d   : > { %v4499_v2 = vadd.f32 %v4492_v56, %v4491_v57  ;;  %v4496_v35 = vmul.f32 %v10259_v33, %v10381_v54  ;;  %v4495_v31 = vmul.f32 %v10279_v52, %v10384_v10  ;;  %v3993_v40 = vadd.f32 %v3992_v21, %v3986_v45  ;;  %5831 = vperm.xlu0 %6503, %v6256_v63   ;;  %v6258_v45 = vld [vmem:[%s11355_s7 + $0x6] ss:$0 sm:$0xff] }
 0x29e   : > { %v4162_v62 = vadd.f32 %v4161_v43, %v4155_v46  ;;  %v10471_v19 = vmul.f32 %v10325_v38, %v10387_v34  ;;  %v4497_v4 = vmul.f32 %v10347_v60, %v10363_v30  ;;  %v4331_v33 = vadd.f32 %v4330_v13, %v4324_v11  ;;  %v12023_v13 = vld [vmem:[#allocation14_spill] sm:$0xff] }
 0x29f   : > { %v4500_v26 = vadd.f32 %v4499_v2, %v4493_v3  ;;  %v4655_v52 = vmul.f32 %v4622_v41, %v12019_v22  ;;  %v4654_v9 = vmul.f32 %v4617_v14, %v12019_v22  ;;  %v10483_v38 = vadd.f32 %v3993_v40, %v3987_v32  ;;  %v4652_v56 = vpop.permute.xlu1 %4651  ;;  %v4647_v14 = vpop.permute.xlu0 %4646  ;;  %5843 = vperm.xlu1 %6504, %v6259_v20  }
 0x2a0   : > { %v4163_v46 = vadd.f32 %v4162_v62, %v4156_v16  ;;  %v4657_v60 = vmul.f32 %v4632_v1, %v12019_v22  ;;  %v10487_v37 = vmul.f32 %v4627_v18, %v12019_v22  ;;  %v4332_v57 = vadd.f32 %v4331_v33, %v4325_v58  ;;  %v12020_v18 = vld [vmem:[#allocation27_spill] sm:$0xff]  ;;  %v12021_v58 = vld [vmem:[#allocation28_spill] sm:$0xff] }
 0x2a1   : > { %v4501_v11 = vadd.f32 %v4500_v26, %v4494_v42  ;;  %v10490_v2 = vmul.f32 %v4642_v59, %v12019_v22  ;;  %v10493_v41 = vmul.f32 %v4637_v15, %v12019_v22  ;;  %v10498_v40 = vmul.f32 %v4652_v56, %v12019_v22  ;;  %5839 = vperm.xlu0 %6503, %v6258_v45   ;;  %v6261_v42 = vld [vmem:[%s11355_s7 + $0x9] ss:$0 sm:$0xff]  ;;  %v12022_v59 = vld [vmem:[#allocation99_spill] sm:$0xff]  ;;  %v6263_v45 = vld [vmem:[%s11355_s7 + $0xb] ss:$0 sm:$0xff] }
 0x2a2   : > { %v10495_v63 = vadd.f32 %v4163_v46, %v4157_v27  ;;  %v10501_v32 = vmul.f32 %v4647_v14, %v12019_v22  ;;  %v2887_v16 = vadd.f32 %v10349_v29, %v10265_v48  ;;  %v4333_v15 = vadd.f32 %v4332_v57, %v4326_v28  ;;  %v6260_v27 = vld [vmem:[%s11355_s7 + $0x8] ss:$0 sm:$0xff]  ;;  %v12025_v33 = vld [vmem:[#allocation43_spill] sm:$0xff]  ;;  %v12029_v14 = vld [vmem:[#allocation108_spill] sm:$0xff] }
 0x2a3   : > { %v4502_v1 = vadd.f32 %v4501_v11, %v4495_v31  ;;  %v2954_v21 = vadd.f32 %v12021_v58, %v12020_v18  ;;  %v2716_v43 = vadd.f32 %v10351_v39, %v10296_v61  ;;  %v4679_v55 = vpop.permute.xlu1 %4678  ;;  %v2784_v62 = vadd.f32 %v12023_v13, %v12022_v59  ;;  %v12024_v48 = vld [vmem:[#allocation98_spill] sm:$0xff]  ;;  %v4674_v22 = vpop.permute.xlu0 %4673  ;;  %5851 = vperm.xlu1 %6504, %v6261_v42   ;;  %v12033_v18 = vld [vmem:[#allocation57_spill] sm:$0xff]  ;;  %v12037_v59 = vld [vmem:[#allocation100_spill] sm:$0xff] }
 0x2a4   : > { %v2888_v3 = vadd.f32 %v2887_v16, %v10271_v8  ;;  %v10520_v29 = vmul.f32 %v12024_v48, %v11956_v7  ;;  %v3224_v28 = vadd.f32 %v10331_v51, %v10323_v12  ;;  %v10524_v31 = vadd.f32 %v4333_v15, %v4327_v50  ;;  %v12026_v8 = vld [vmem:[#allocation29_spill] sm:$0xff]  ;;  %v12027_v51 = vld [vmem:[#allocation40_spill] sm:$0xff]  ;;  %v12028_v50 = vld [vmem:[#allocation75_spill] sm:$0xff] }
 0x2a5   : > { %v4503_v20 = vadd.f32 %v4502_v1, %v4496_v35  ;;  %v4712_v26 = vmul.f32 %v4679_v55, %v12025_v33  ;;  %v2717_v61 = vadd.f32 %v2716_v43, %v10302_v47  ;;  %v4711_v39 = vmul.f32 %v4674_v22, %v12026_v8  ;;  %5847 = vperm.xlu0 %6503, %v6260_v27   ;;  %v6262_v47 = vld [vmem:[%s11355_s7 + $0xa] ss:$0 sm:$0xff]  ;;  %v12040_v33 = vld [vmem:[#allocation144_spill] sm:$0xff]  ;;  %v6264_v8 = vld [vmem:[%s11355_s7 + $0xc] ss:$0 sm:$0xff] }
 0x2a6   : > { %v2889_v46 = vadd.f32 %v2888_v3, %v10274_v49  ;;  %v3225_v12 = vadd.f32 %v3224_v28, %v10335_v23  ;;  %v10536_v35 = vadd.f32 %v12028_v50, %v12027_v51  ;;  %v12030_v49 = vrot.slane %v12029_v14, %v11876_v6  ;;  %v12034_v55 = vld [vmem:[#allocation142_spill] sm:$0xff]  ;;  %v12036_v3 = vld [vmem:[#allocation141_spill] sm:$0xff] }
 0x2a7   : > { %v10538_v56 = vadd.f32 %v4503_v20, %v4497_v4  ;;  %v10540_v57 = vadd.f32 %v4712_v26, %v4655_v52  ;;  %v2718_v11 = vadd.f32 %v2717_v61, %v10308_v0  ;;  %v10550_v23 = vadd.f32 %v4711_v39, %v4654_v9  ;;  %v4689_v16 = vpop.permute.xlu1 %4688  ;;  %v12031_v52 = vld [vmem:[#allocation63_spill] sm:$0xff]  ;;  %v4684_v0 = vpop.permute.xlu0 %4683  ;;  %5859 = vperm.xlu1 %6504, %v6263_v45   ;;  %v12039_v28 = vld [vmem:[#allocation102_spill] sm:$0xff] }
 0x2a8   : > { %v3046_v42 = vmul.f32 %v12030_v49, %v11980_v25  ;;  %v2890_v15 = vadd.f32 %v2889_v46, %v10277_v44  ;;  %v3226_v4 = vadd.f32 %v3225_v12, %v10339_v5  ;;  %v12032_v1 = vrot.slane %v12031_v52, %v11876_v6  ;;  %v12035_v25 = vld [vmem:[#allocation65_spill] sm:$0xff]  ;;  %v12038_v44 = vld [vmem:[#allocation16_spill] sm:$0xff]  ;;  %v6265_v5 = vld [vmem:[%s11355_s7 + $0xd] ss:$0 sm:$0xff] }
 0x2a9   : > { %v4714_v58 = vmul.f32 %v4689_v16, %v12033_v18  ;;  %v2719_v43 = vadd.f32 %v2718_v11, %v10311_v24  ;;  %v3048_v9 = vmul.f32 %v12035_v25, %v12034_v55  ;;  %v3049_v13 = vmul.f32 %v12037_v59, %v12036_v3  ;;  %5855 = vperm.xlu0 %6503, %v6262_v47   ;;  %v12041_v26 = vld [vmem:[#allocation22_spill] sm:$0xff]  ;;  %v12044_v46 = vld [vmem:[#allocation143_spill] sm:$0xff]  ;;  %v12045_v12 = vld [vmem:[#allocation20_spill] sm:$0xff] }
 0x2aa   : > { %v3047_v27 = vmul.f32 %v12032_v1, %v11982_v17  ;;  %v4713_v48 = vmul.f32 %v4684_v0, %v12038_v44  ;;  %v10568_v17 = vadd.f32 %v2954_v21, %v2890_v15  ;;  %v3227_v20 = vadd.f32 %v3226_v4, %v12039_v28  ;;  %v12043_v39 = vld [vmem:[#allocation134_spill] sm:$0xff]  ;;  %v12050_v15 = vld [vmem:[#allocation88_spill] sm:$0xff]  ;;  %v12054_v55 = vld [vmem:[#allocation117_spill] sm:$0xff] }
 0x2ab   : > { %v12042_v24 = vrot.slane %v12041_v26, %v11876_v6  ;;  %v10575_v61 = vadd.f32 %v4714_v58, %v4657_v60  ;;  %v2720_v45 = vadd.f32 %v2719_v43, %v12043_v39  ;;  %v12046_v21 = vrot.slane %v12045_v12, %v11876_v6  ;;  %v12047_v50 = vld [vmem:[#allocation138_spill] sm:$0xff]  ;;  %v4699_v49 = vpop.permute.xlu1 %4698  ;;  %v12049_v60 = vld [vmem:[#allocation52_spill] sm:$0xff]  ;;  %v4694_v58 = vpop.permute.xlu0 %4693  ;;  %5867 = vperm.xlu1 %6504, %v6265_v5   ;;  %v12053_v43 = vld [vmem:[#allocation133_spill] sm:$0xff] }
 0x2ac   : > { %v12048_v47 = vld [vmem:[#allocation126_spill] sm:$0xff]  ;;  %v10588_v14 = vadd.f32 %v4713_v48, %v10487_v37  ;;  %v3228_v16 = vadd.f32 %v3227_v20, %v12049_v60  ;;  %v3053_v4 = vmul.f32 %v12050_v15, %v11956_v7  ;;  %v3054_v52 = vadd.f32 %v3047_v27, %v3046_v42  ;;  %v12055_v3 = vld [vmem:[#allocation76_spill] sm:$0xff]  ;;  %v12056_v59 = vld [vmem:[#allocation41_spill] sm:$0xff] }
 0x2ad   : > { %v3050_v22 = vmul.f32 %v12042_v24, %v12040_v33  ;;  %v3051_v51 = vmul.f32 %v12046_v21, %v12044_v46  ;;  %v3052_v11 = vmul.f32 %v12048_v47, %v12047_v50  ;;  %v12051_v1 = vld [vmem:[#allocation66_spill] sm:$0xff]  ;;  %v10594_v0 = vadd.f32 %v2784_v62, %v2720_v45  ;;  %v12058_v48 = vld [vmem:[#allocation64_spill] sm:$0xff]  ;;  %5863 = vperm.xlu0 %6503, %v6264_v8   ;;  %v12059_v42 = vld [vmem:[#allocation47_spill] sm:$0xff] }
 0x2ae   : > { %v4716_v18 = vmul.f32 %v4699_v49, %v12051_v1  ;;  %v3124_v25 = vadd.f32 %v12054_v55, %v12053_v43  ;;  %v12057_v37 = vrot.slane %v12056_v59, %v11876_v6  ;;  %v4715_v28 = vmul.f32 %v4694_v58, %v12058_v48  ;;  %v6267_v7 = vld [vmem:[%s11355_s7 + $0xf] ss:$0 sm:$0xff]  ;;  %v12060_v62 = vld [vmem:[#allocation105_spill] sm:$0xff]  ;;  %v6266_v39 = vld [vmem:[%s11355_s7 + $0xe] ss:$0 sm:$0xff] }
 0x2af   : > { %12052 = vst [vmem:[#allocation90_spill] sm:$0xff] %v10594_v0  ;;  %v3229_v27 = vadd.f32 %v3228_v16, %v12059_v42  ;;  %v3055_v5 = vadd.f32 %v3054_v52, %v3048_v9  ;;  %v12061_v20 = vld [vmem:[#allocation25_spill] sm:$0xff]  ;;  %v12064_v46 = vld [vmem:[#allocation110_spill] sm:$0xff]  ;;  %v4704_v58 = vpop.permute.xlu0 %4703  ;;  %5875 = vperm.xlu1 %6504, %v6267_v7   ;;  %v12071_v59 = vld [vmem:[#allocation96_spill] sm:$0xff] }
 0x2b0   : > { %v4087_v44 = vmul.f32 %v12057_v37, %v12055_v3  ;;  %v12062_v33 = vrot.slane %v12061_v20, %v11876_v6  ;;  %v10612_v24 = vadd.f32 %v4716_v18, %v10490_v2  ;;  %v12063_v8 = vld [vmem:[#allocation109_spill] sm:$0xff]  ;;  %v4090_v12 = vmul.f32 %v12064_v46, %v10372_v53  ;;  %v4709_v2 = vpop.permute.xlu1 %4708  ;;  %v12069_v1 = vld [vmem:[#allocation118_spill] sm:$0xff]  ;;  %v12072_v48 = vld [vmem:[#allocation119_spill] sm:$0xff] }
 0x2b1   : > { %v4089_v45 = vmul.f32 %v12063_v8, %v10378_v36  ;;  %v12065_v9 = vld [vmem:[#allocation21_spill] sm:$0xff]  ;;  %v10626_v47 = vadd.f32 %v4715_v28, %v10493_v41  ;;  %v3230_v49 = vadd.f32 %v3229_v27, %v10520_v29  ;;  %v3056_v60 = vadd.f32 %v3055_v5, %v3049_v13  ;;  %5871 = vperm.xlu0 %6503, %v6266_v39   ;;  %v12074_v42 = vld [vmem:[#allocation54_spill] sm:$0xff] }
 0x2b2   : > { %v4088_v26 = vmul.f32 %v12062_v33, %v12060_v62  ;;  %v12066_v21 = vrot.slane %v12065_v9, %v11876_v6  ;;  %v12067_v16 = vld [vmem:[#allocation37_spill] sm:$0xff]  ;;  %v4718_v18 = vmul.f32 %v4709_v2, %v12069_v1  ;;  %v4094_v41 = vmul.f32 %v12071_v59, %v10387_v34  ;;  %v12084_v1 = vld [vmem:[#allocation112_spill] sm:$0xff] }
 0x2b3   : > { %v12068_v15 = vrot.slane %v12067_v16, %v11876_v6  ;;  %v12070_v43 = vld [vmem:[#allocation97_spill] sm:$0xff]  ;;  %v4717_v28 = vmul.f32 %v4704_v58, %v12072_v48  ;;  %v10640_v29 = vadd.f32 %v10536_v35, %v3230_v49  ;;  %v3057_v13 = vadd.f32 %v3056_v60, %v3050_v22  ;;  %v10666_v49 = vpop.permute.xlu0 %4836  ;;  %v12082_v16 = vld [vmem:[#allocation107_spill] sm:$0xff] }
 0x2b4   : > { %v4091_v50 = vmul.f32 %v12066_v21, %v10384_v10  ;;  %v4093_v55 = vmul.f32 %v12070_v43, %v10363_v30  ;;  %v4095_v37 = vadd.f32 %v4088_v26, %v4087_v44  ;;  %v4165_v27 = vadd.f32 %v10495_v63, %v12074_v42  ;;  %v12075_v20 = vld [vmem:[#allocation49_spill] sm:$0xff]  ;;  %v12077_v44 = vld [vmem:[#allocation106_spill] sm:$0xff]  ;;  %v10658_v22 = vpop.permute.xlu1 %4841 }
 0x2b5   : > { %v4092_v52 = vmul.f32 %v12068_v15, %v10381_v54  ;;  %12073 = vst [vmem:[#allocation101_spill] sm:$0xff] %v10640_v29  ;;  %v10645_v5 = vadd.f32 %v4718_v18, %v10498_v40  ;;  %v12076_v33 = vrot.slane %v12075_v20, %v11876_v6  ;;  %v12078_v26 = vrot.slane %v12077_v44, %v11876_v6  ;;  %v12079_v40 = vld [vmem:[#allocation60_spill] sm:$0xff]  ;;  %v12081_v21 = vld [vmem:[#allocation61_spill] sm:$0xff] }
 0x2b6   : > { %v4096_v7 = vadd.f32 %v4095_v37, %v4089_v45  ;;  %v10656_v35 = vadd.f32 %v4717_v28, %v10501_v32  ;;  %v3058_v63 = vadd.f32 %v3057_v13, %v3051_v51  ;;  %v3919_v46 = vmul.f32 %v12079_v40, %v10378_v36  ;;  %v12080_v45 = vld [vmem:[#allocation62_spill] sm:$0xff]  ;;  %v12086_v43 = vld [vmem:[#allocation93_spill] sm:$0xff]  ;;  %v12087_v37 = vld [vmem:[#allocation83_spill] sm:$0xff] }
 0x2b7   : > { %v3917_v8 = vmul.f32 %v12076_v33, %v12055_v3  ;;  %v3918_v39 = vmul.f32 %v12078_v26, %v12060_v62  ;;  %v3920_v9 = vmul.f32 %v12080_v45, %v10372_v53  ;;  %v3988_v2 = vmul.f32 %v12081_v21, %v10387_v34  ;;  %v12088_v28 = vld [vmem:[#allocation15_spill] sm:$0xff]  ;;  %v12092_v40 = vld [vmem:[#allocation113_spill] sm:$0xff] }
 0x2b8   : > { %v4097_v60 = vadd.f32 %v4096_v7, %v4090_v12  ;;  %v12083_v32 = vrot.slane %v12082_v16, %v11876_v6  ;;  %v12085_v51 = vrot.slane %v12084_v1, %v11876_v6  ;;  %v3059_v58 = vadd.f32 %v3058_v63, %v3052_v11  ;;  %v12090_v33 = vld [vmem:[#allocation51_spill] sm:$0xff]  ;;  %v10689_v26 = vpop.permute.xlu1 %4851  ;;  %v12094_v16 = vld [vmem:[#allocation77_spill] sm:$0xff] }
 0x2b9   : > { %v3923_v59 = vmul.f32 %v12086_v43, %v10363_v30  ;;  %v3924_v48 = vmul.f32 %v12087_v37, %v10387_v34  ;;  %v12089_v12 = vcombine.high %v12088_v28, %v12088_v28  ;;  %v3925_v7 = vadd.f32 %v3918_v39, %v3917_v8 }
 0x2ba   : > { %v3921_v15 = vmul.f32 %v12083_v32, %v10384_v10  ;;  %v3922_v18 = vmul.f32 %v12085_v51, %v10381_v54  ;;  %v4098_v42 = vadd.f32 %v4097_v60, %v4091_v50  ;;  %v3995_v20 = vadd.f32 %v10483_v38, %v3988_v2  ;;  %v12095_v50 = vld [vmem:[#allocation78_spill] sm:$0xff]  ;;  %v10699_v38 = vpop.permute.xlu0 %4846  ;;  %v12096_v60 = vld [vmem:[#allocation55_spill] sm:$0xff] }
 0x2bb   : > { %v4414_v13 = vrot.slane %v12089_v12, %v11876_v6  ;;  %v12091_v44 = vrot.slane %v12090_v33, %v11876_v6  ;;  %v3060_v63 = vadd.f32 %v3059_v58, %v3053_v4  ;;  %v12093_v45 = vrot.slane %v12092_v40, %v11876_v6 }
 0x2bc   : > { %v4429_v32 = vmul.f32 %v12094_v16, %v10378_v36  ;;  %v4430_v8 = vmul.f32 %v12095_v50, %v10372_v53  ;;  %v4099_v39 = vadd.f32 %v4098_v42, %v4092_v52  ;;  %v3926_v2 = vadd.f32 %v3925_v7, %v3919_v46  ;;  %v12101_v46 = vld [vmem:[#allocation84_spill] sm:$0xff] }
 0x2bd   : > { %v4427_v11 = vmul.f32 %v12091_v44, %v12055_v3  ;;  %v4428_v21 = vmul.f32 %v12093_v45, %v12060_v62  ;;  %v12097_v1 = vcombine.high %v12096_v60, %v12096_v60  ;;  %v12098_v51 = vrot.slane %v12088_v28, %v11876_v6  ;;  %v10719_v45 = vpop.permute.xlu1 %4861  ;;  %v12102_v28 = vld [vmem:[#allocation116_spill] sm:$0xff] }
 0x2be   : > { %v10709_v43 = vadd.f32 %v3124_v25, %v3060_v63  ;;  %v12100_v37 = vrot.slane %v12096_v60, %v11876_v6  ;;  %v4433_v52 = vmul.f32 %v4414_v13, %v10363_v30  ;;  %v4216_v42 = vcombine.high %v12101_v46, %v12101_v46  ;;  %v12104_v13 = vld [vmem:[#allocation80_spill] sm:$0xff] }
 0x2bf   : > { %v4418_v4 = vrot.slane %v12097_v1, %v11876_v6  ;;  %v4431_v58 = vmul.f32 %v12098_v51, %v10384_v10  ;;  %v4100_v7 = vadd.f32 %v4099_v39, %v4093_v55  ;;  %v3927_v33 = vadd.f32 %v3926_v2, %v3920_v9  ;;  %v12106_v9 = vld [vmem:[#allocation91_spill] sm:$0xff] }
 0x2c0   : > { %12099 = vst [vmem:[#allocation103_spill] sm:$0xff] %v10709_v43  ;;  %v4432_v12 = vmul.f32 %v12100_v37, %v10381_v54  ;;  %v4435_v40 = vadd.f32 %v4428_v21, %v4427_v11  ;;  %v4505_v25 = vadd.f32 %v10538_v56, %v10471_v19  ;;  %v12103_v63 = vrot.slane %v12102_v28, %v11876_v6  ;;  %v10733_v11 = vpop.permute.xlu0 %4856  ;;  %v12107_v19 = vld [vmem:[#allocation79_spill] sm:$0xff]  ;;  %v12113_v28 = vld [vmem:[#allocation137_spill] sm:$0xff] }
 0x2c1   : > { %v4434_v44 = vmul.f32 %v4418_v4, %v10387_v34  ;;  %v12105_v50 = vrot.slane %v12104_v13, %v11876_v6  ;;  %v4259_v39 = vmul.f32 %v12106_v9, %v10378_v36  ;;  %v4101_v21 = vadd.f32 %v4100_v7, %v4094_v41  ;;  %v12109_v4 = vld [vmem:[#allocation86_spill] sm:$0xff] }
 0x2c2   : > { %v4257_v16 = vmul.f32 %v12103_v63, %v12055_v3  ;;  %v3928_v2 = vadd.f32 %v3927_v33, %v3921_v15  ;;  %v4436_v60 = vadd.f32 %v4435_v40, %v4429_v32  ;;  %v12108_v56 = vcombine.high %v12107_v19, %v12107_v19 }
 0x2c3   : > { %v4258_v55 = vmul.f32 %v12105_v50, %v12060_v62  ;;  %v4248_v3 = vrot.slane %v4216_v42, %v11876_v6  ;;  %v4260_v51 = vmul.f32 %v12109_v4, %v10372_v53  ;;  %v12110_v62 = vrot.slane %v12107_v19, %v11876_v6  ;;  %v4872_v42 = vpop.permute.xlu1 %4871 }
 0x2c4   : > { %v4244_v1 = vrot.slane %v12108_v56, %v11876_v6  ;;  %v12111_v41 = vrot.slane %v12101_v46, %v11876_v6  ;;  %v10750_v32 = vadd.f32 %v4165_v27, %v4101_v21  ;;  %v3929_v37 = vadd.f32 %v3928_v2, %v3922_v18  ;;  %v4867_v13 = vpop.permute.xlu0 %4866  ;;  %v12115_v21 = vld [vmem:[#allocation121_spill] sm:$0xff] }
 0x2c5   : > { %v4261_v36 = vmul.f32 %v12110_v62, %v10384_v10  ;;  %v4437_v7 = vadd.f32 %v4436_v60, %v4430_v8  ;;  %v4264_v40 = vmul.f32 %v4248_v3, %v10387_v34  ;;  %v4265_v53 = vadd.f32 %v4258_v55, %v4257_v16  ;;  %v12114_v8 = vld [vmem:[#allocation12_spill] sm:$0xff]  ;;  %v12118_v60 = vld [vmem:[#allocation127_spill] sm:$0xff] }
 0x2c6   : > { %v4262_v15 = vmul.f32 %v12111_v41, %v10381_v54  ;;  %12112 = vst [vmem:[#allocation53_spill] sm:$0xff] %v10750_v32  ;;  %v4263_v33 = vmul.f32 %v4244_v1, %v10363_v30  ;;  %v4335_v63 = vadd.f32 %v10524_v31, %v12113_v28  ;;  %v3930_v10 = vadd.f32 %v3929_v37, %v3923_v59  ;;  %v12117_v59 = vld [vmem:[#allocation122_spill] sm:$0xff]  ;;  %v12119_v3 = vld [vmem:[#allocation128_spill] sm:$0xff] }
 0x2c7   : > { %v4438_v50 = vadd.f32 %v4437_v7, %v4431_v58  ;;  %v4266_v9 = vadd.f32 %v4265_v53, %v4259_v39  ;;  %v10756_v54 = vstv %s6218_s22  ;;  %v4899_v27 = vpop.permute.xlu1 %4898  ;;  %v4875_v30 = vmul.f32 %v10658_v22, %v12114_v8  ;;  %v12122_v7 = vld [vmem:[#allocation125_spill] sm:$0xff] }
 0x2c8   : > { %v3931_v19 = vadd.f32 %v3930_v10, %v3924_v48  ;;  %v4932_v2 = vmul.f32 %v4899_v27, %v12115_v21  ;;  %v4894_v34 = vpop.permute.xlu0 %4893  ;;  %v4874_v31 = vmul.f32 %v10666_v49, %v12114_v8  ;;  %v4966_v56 = vmul.f32 %v10756_v54, %v12118_v60  ;;  %v12120_v49 = vld [vmem:[#allocation124_spill] sm:$0xff]  ;;  %v12124_v27 = vld [vmem:[#allocation130_spill] sm:$0xff] }
 0x2c9   : > { %v4439_v46 = vadd.f32 %v4438_v50, %v4432_v12  ;;  %v4267_v18 = vadd.f32 %v4266_v9, %v4260_v51  ;;  %v4931_v58 = vmul.f32 %v4894_v34, %v12117_v59  ;;  %v4965_v22 = vmul.f32 %v10756_v54, %v12119_v3  ;;  %v12123_v50 = vld [vmem:[#allocation82_spill] sm:$0xff]  ;;  %v12126_v34 = vld [vmem:[#allocation45_spill] sm:$0xff] }
 0x2ca   : > { %v10761_v16 = vadd.f32 %v3995_v20, %v3931_v19  ;;  %v4940_v12 = vadd.f32 %v4932_v2, %v4875_v30  ;;  %v4877_v20 = vmul.f32 %v10689_v26, %v12114_v8  ;;  %v4878_v21 = vmul.f32 %v10733_v11, %v12114_v8  ;;  %v12129_v11 = vld [vmem:[#allocation46_spill] sm:$0xff] }
 0x2cb   : > { %v4440_v55 = vadd.f32 %v4439_v46, %v4433_v52  ;;  %v4268_v48 = vadd.f32 %v4267_v18, %v4261_v36  ;;  %v4939_v1 = vadd.f32 %v4931_v58, %v4874_v31  ;;  %v4909_v4 = vpop.permute.xlu1 %4908  ;;  %v4879_v46 = vmul.f32 %v10719_v45, %v12114_v8  ;;  %v12125_v18 = vld [vmem:[#allocation129_spill] sm:$0xff] }
 0x2cc   : > { %12116 = vst [vmem:[#allocation59_spill] sm:$0xff] %v10761_v16  ;;  %v4956_v52 = vadd.f32 %v4940_v12, %v10540_v57  ;;  %v4934_v62 = vmul.f32 %v4909_v4, %v12120_v49  ;;  %v4904_v41 = vpop.permute.xlu0 %4903  ;;  %v4968_v57 = vmul.f32 %v10756_v54, %v12123_v50 }
 0x2cd   : > { %v4441_v39 = vadd.f32 %v4440_v55, %v4434_v44  ;;  %v4269_v51 = vadd.f32 %v4268_v48, %v4262_v15  ;;  %v4876_v44 = vmul.f32 %v10699_v38, %v12114_v8  ;;  %v4955_v37 = vadd.f32 %v4939_v1, %v10550_v23 }
 0x2ce   : > { %v4933_v53 = vmul.f32 %v4904_v41, %v12122_v7  ;;  %v4974_v28 = vadd.f32 %v4966_v56, %v4956_v52  ;;  %v4942_v10 = vadd.f32 %v4934_v62, %v4877_v20  ;;  %v4967_v23 = vmul.f32 %v10756_v54, %v12124_v27  ;;  %v12132_v7 = vld [vmem:[#allocation26_spill] sm:$0xff] }
 0x2cf   : > { %v10774_v36 = vadd.f32 %v4505_v25, %v4441_v39  ;;  %v4270_v15 = vadd.f32 %v4269_v51, %v4263_v33  ;;  %v4973_v26 = vadd.f32 %v4965_v22, %v4955_v37  ;;  %v4919_v19 = vpop.permute.xlu1 %4918  ;;  %v4881_v39 = vmul.f32 %v4872_v42, %v12114_v8  ;;  %v12131_v51 = vld [vmem:[#allocation132_spill] sm:$0xff] }
 0x2d0   : > { %v4941_v9 = vadd.f32 %v4933_v53, %v4876_v44  ;;  %v4958_v38 = vadd.f32 %v4942_v10, %v10575_v61  ;;  %v4936_v30 = vmul.f32 %v4919_v19, %v12125_v18  ;;  %v4914_v33 = vpop.permute.xlu0 %4913  ;;  %v12128_v61 = vld [vmem:[#allocation131_spill] sm:$0xff]  ;;  %v4969_v56 = vmul.f32 %v10756_v54, %v12129_v11 }
 0x2d1   : > { %12121 = vst [vmem:[#allocation74_spill] sm:$0xff] %v10774_v36  ;;  %v4271_v25 = vadd.f32 %v4270_v15, %v4264_v40  ;;  %v4935_v55 = vmul.f32 %v4914_v33, %v12126_v34  ;;  %v4970_v58 = vmul.f32 %v10756_v54, %v12128_v61  ;;  %v4982_v22 = vstv %s10778_s15  ;;  %v12133_v10 = vld [vmem:[#allocation135_spill] sm:$0xff] }
 0x2d2   : > { %v4957_v2 = vadd.f32 %v4941_v9, %v10588_v14  ;;  %v4976_v31 = vadd.f32 %v4968_v57, %v4958_v38  ;;  %v4944_v45 = vadd.f32 %v4936_v30, %v4879_v46  ;;  %v12130_v14 = vld [vmem:[#allocation85_spill] sm:$0xff]  ;;  %v4972_v53 = vmul.f32 %v10756_v54, %v12132_v7 }
 0x2d3   : > { %v10794_v40 = vadd.f32 %v4335_v63, %v4271_v25  ;;  %v4943_v48 = vadd.f32 %v4935_v55, %v4878_v21  ;;  %v4929_v12 = vpop.permute.xlu1 %4928  ;;  %v4880_v63 = vmul.f32 %v4867_v13, %v12114_v8  ;;  %v4983_v13 = vadd.f32 %v4982_v22, %v4973_v26  ;;  %v12137_v7 = vld [vmem:[#allocation33_spill] sm:$0xff] }
 0x2d4   : > { %v4975_v59 = vadd.f32 %v4967_v23, %v4957_v2  ;;  %v4960_v60 = vadd.f32 %v4944_v45, %v10612_v24  ;;  %v4938_v1 = vmul.f32 %v4929_v12, %v12130_v14  ;;  %v4924_v3 = vpop.permute.xlu0 %4923  ;;  %v4984_v24 = vadd.f32 %v4982_v22, %v4974_v28 }
 0x2d5   : > { %12127 = vst [vmem:[#allocation81_spill] sm:$0xff] %v10794_v40  ;;  %v4959_v4 = vadd.f32 %v4943_v48, %v10626_v47  ;;  %v4937_v20 = vmul.f32 %v4924_v3, %v12131_v51  ;;  %v4971_v50 = vmul.f32 %v10756_v54, %v12133_v10  ;;  %v4986_v46 = vadd.f32 %v4982_v22, %v4976_v31 }
 0x2d6   : > { %v4978_v52 = vadd.f32 %v4970_v58, %v4960_v60  ;;  %v4946_v49 = vadd.f32 %v4938_v1, %v4881_v39  ;;  %v4985_v27 = vadd.f32 %v4982_v22, %v4975_v59 }
 0x2d7   : > { %v4977_v62 = vadd.f32 %v4969_v56, %v4959_v4  ;;  %v4945_v41 = vadd.f32 %v4937_v20, %v4880_v63  ;;  %v10807_v42 = vpop.permute.xlu1 %5159  ;;  %v12134_v63 = vld [vmem:[#allocation32_spill] sm:$0xff] }
 0x2d8   : > { %v4988_v44 = vadd.f32 %v4982_v22, %v4978_v52  ;;  %v4962_v37 = vadd.f32 %v4946_v49, %v10645_v5  ;;  %v10812_v15 = vpop.permute.xlu0 %5154 }
 0x2d9   : > { %v4987_v8 = vadd.f32 %v4982_v22, %v4977_v62  ;;  %v4961_v47 = vadd.f32 %v4945_v41, %v10656_v35 }
 0x2da   : > { %v4992_v57 = vmax.f32 %v4984_v24, %v4988_v44  ;;  %v4980_v9 = vadd.f32 %v4972_v53, %v4962_v37  ;;  %v12138_v53 = vld [vmem:[#allocation69_spill] sm:$0xff] }
 0x2db   : > { %v4991_v19 = vmax.f32 %v4983_v13, %v4987_v8  ;;  %v4979_v25 = vadd.f32 %v4971_v50, %v4961_v47  ;;  %v10817_v28 = vpop.permute.xlu1 %5169 }
 0x2dc   : > { %v4990_v5 = vadd.f32 %v4982_v22, %v4980_v9  ;;  %v10819_v38 = vpop.permute.xlu0 %5164 }
 0x2dd   : > { %v4995_v23 = vmax.f32 %v4991_v19, %v4992_v57  ;;  %v4989_v18 = vadd.f32 %v4982_v22, %v4979_v25  ;;  %v12135_v22 = vld [vmem:[#allocation67_spill] sm:$0xff]  ;;  %v12139_v25 = vld [vmem:[#allocation34_spill] sm:$0xff] }
 0x2de   : > { %v4994_v26 = vmax.f32 %v4986_v46, %v4990_v5  ;;  %v864_v4 = vadd.f32 %v12135_v22, %v12134_v63 }
 0x2df   : > { %v4993_v30 = vmax.f32 %v4985_v27, %v4989_v18  ;;  %v10821_v33 = vpop.permute.xlu1 %5179 }
 0x2e0   : > { %v10823_v35 = vpop.permute.xlu0 %5174  ;;  %v5209_v62 = vcombine.high %v864_v4, %v864_v4 }
 0x2e1   : > { %v4996_v54 = vmax.f32 %v4993_v30, %v4994_v26 }
 0x2e3   : > { %v4997_v21 = vmax.f32 %v4995_v23, %v4996_v54  ;;  %v10825_v2 = vpop.permute.xlu1 %5189  ;;  %v12142_v23 = vld [vmem:[#allocation73_spill] sm:$0xff] }
 0x2e4   : > { %v10827_v34 = vpop.permute.xlu0 %5184 }
 0x2e5   : > { %v4998_v55 = vsub.f32 %v4983_v13, %v4997_v21  ;;  %v4999_v31 = vsub.f32 %v4984_v24, %v4997_v21  ;;  %v5000_v45 = vsub.f32 %v4985_v27, %v4997_v21  ;;  %v5001_v61 = vsub.f32 %v4986_v46, %v4997_v21  ;;  %v12140_v46 = vld [vmem:[#allocation71_spill] sm:$0xff] }
 0x2e6   : > { %v5002_v58 = vsub.f32 %v4987_v8, %v4997_v21  ;;  %v5003_v59 = vsub.f32 %v4988_v44, %v4997_v21  ;;  %v5004_v48 = vsub.f32 %v4989_v18, %v4997_v21  ;;  %v5005_v12 = vsub.f32 %v4990_v5, %v4997_v21  ;;  %v12136_v44 = vld [vmem:[#allocation38_spill] sm:$0xff]  ;;  %v12141_v27 = vld [vmem:[#allocation35_spill] sm:$0xff] }
 0x2e7   : > { %v5006_v39 = vmul.f32 1.442695, %v4998_v55  ;;  %v5008_v60 = vmul.f32 1.442695, %v4999_v31  ;;  %v10829_v11 = vpop.permute.xlu1 %5329  ;;  %v5010_v56 = vmul.f32 1.442695, %v5000_v45  ;;  %v5216_v37 = vrot.slane %v864_v4, %v12136_v44 }
 0x2e8   : > { %v10831_v14 = vpop.permute.xlu0 %5324  ;;  %v5012_v1 = vmul.f32 1.442695, %v5001_v61  ;;  %v5014_v51 = vmul.f32 1.442695, %v5002_v58  ;;  %v5016_v52 = vmul.f32 1.442695, %v5003_v59  ;;  %v859_v13 = vadd.f32 %v12138_v53, %v12137_v7 }
 0x2e9   : > { %6559 = vpow2.f32 %v5006_v39  ;;  %v5018_v41 = vmul.f32 1.442695, %v5004_v48  ;;  %v5020_v8 = vmul.f32 1.442695, %v5005_v12  ;;  %v5223_v57 = vrot.slane %v5209_v62, %v12136_v44 }
 0x2ea   : > { %6561 = vpow2.f32 %v5008_v60  ;;  %v5224_v19 = vcombine.high %v5216_v37, %v5216_v37  ;;  %v874_v5 = vadd.f32 %v12140_v46, %v12139_v25  ;;  %v869_v18 = vadd.f32 %v12142_v23, %v12141_v27 }
 0x2eb   : > { %v10833_v3 = vpop.permute.xlu1 %5339  ;;  %6563 = vpow2.f32 %v5010_v56  ;;  %v5039_v54 = vcombine.high %v859_v13, %v859_v13  ;;  %v5046_v21 = vrot.slane %v859_v13, %v12136_v44  ;;  %v5225_v61 = vcombine.high %v5223_v57, %v5223_v57 }
 0x2ec   : > { %v10837_v20 = vpop.permute.xlu0 %5334  ;;  %6565 = vpow2.f32 %v5012_v1  ;;  %v10870_v58 = vrot.slane %v5216_v37, %v12136_v44  ;;  %v10873_v59 = vrot.slane %v5223_v57, %v12136_v44  ;;  %v10878_v12 = vrot.slane %v5224_v19, %v12136_v44 }
 0x2ed   : > { %6567 = vpow2.f32 %v5014_v51  ;;  %v5549_v39 = vcombine.high %v874_v5, %v874_v5  ;;  %v5379_v60 = vcombine.high %v869_v18, %v869_v18  ;;  %v5053_v63 = vrot.slane %v5039_v54, %v12136_v44 }
 0x2ee   : > { %6569 = vpow2.f32 %v5016_v52  ;;  %v5054_v22 = vcombine.high %v5046_v21, %v5046_v21  ;;  %v5556_v4 = vrot.slane %v874_v5, %v12136_v44  ;;  %v5386_v51 = vrot.slane %v869_v18, %v12136_v44 }
 0x2ef   : > { %v10839_v49 = vpop.permute.xlu1 %5349  ;;  %6571 = vpow2.f32 %v5018_v41  ;;  %v10892_v37 = vrot.slane %v5225_v61, %v12136_v44  ;;  %v5254_v7 = vcombine.high %v10870_v58, %v10870_v58  ;;  %v5256_v57 = vcombine.high %v10878_v12, %v10878_v12 }
 0x2f0   : > { %v10841_v24 = vpop.permute.xlu0 %5344  ;;  %6573 = vpow2.f32 %v5020_v8  ;;  %v5563_v19 = vrot.slane %v5549_v39, %v12136_v44  ;;  %v5393_v25 = vrot.slane %v5379_v60, %v12136_v44  ;;  %v5055_v27 = vcombine.high %v5053_v63, %v5053_v63 }
 0x2f1   : > { %v10910_v23 = vrot.slane %v5046_v21, %v12136_v44  ;;  %v10913_v18 = vrot.slane %v5054_v22, %v12136_v44  ;;  %v5394_v61 = vcombine.high %v5386_v51, %v5386_v51  ;;  %v10925_v21 = vrot.slane %v5254_v7, %v11876_v6 }
 0x2f2   : > { %v10933_v54 = vrot.slane %v5556_v4, %v12136_v44  ;;  %v5565_v13 = vcombine.high %v5563_v19, %v5563_v19  ;;  %v5395_v53 = vcombine.high %v5393_v25, %v5393_v25  ;;  %v10942_v7 = vrot.slane %v5055_v27, %v12136_v44 }
 0x2f3   : > { %v10846_v47 = vpop.eup %6559  ;;  %v10848_v10 = vpop.permute.xlu1 %5359  ;;  %12143 = vst [vmem:[#allocation104_spill] sm:$0xff] %v10910_v23  ;;  %12144 = vst [vmem:[#allocation115_spill] sm:$0xff] %v10913_v18  ;;  %v5084_v22 = vcombine.high %v10910_v23, %v10910_v23  ;;  %v10952_v36 = vrot.slane %v5563_v19, %v12136_v44  ;;  %v10978_v43 = vrot.slane %v5393_v25, %v12136_v44 }
 0x2f4   : > { %v10850_v50 = vpop.eup %6561  ;;  %v10853_v9 = vpop.permute.xlu0 %5354  ;;  %12146 = vst [vmem:[#allocation24_spill] sm:$0xff] %v10933_v54  ;;  %12147 = vst [vmem:[#allocation17_spill] sm:$0xff] %v10942_v7  ;;  %v5594_v19 = vcombine.high %v10933_v54, %v10933_v54  ;;  %v10981_v29 = vrot.slane %v5395_v53, %v12136_v44  ;;  %v5257_v25 = vcombine.high %v10892_v37, %v10892_v37 }
 0x2f5   : > { %v5022_v26 = vadd.f32 %v10850_v50, %v10846_v47  ;;  %v10861_v30 = vpop.eup %6563  ;;  %12149 = vst [vmem:[#allocation18_spill] sm:$0xff] %v10952_v36  ;;  %12151 = vst [vmem:[#allocation19_spill] sm:$0xff] %v10978_v43  ;;  %v10984_v32 = vrot.slane %v5084_v22, %v11876_v6  ;;  %v5425_v54 = vcombine.high %v10978_v43, %v10978_v43 }
 0x2f6   : > { %v10867_v45 = vpop.eup %6565  ;;  %12152 = vst [vmem:[#allocation72_spill] sm:$0xff] %v10981_v29 }
 0x2f7   : > { %v5023_v55 = vadd.f32 %v10861_v30, %v5022_v26  ;;  %v10865_v31 = vpop.permute.xlu1 %5499  ;;  %v10881_v1 = vpop.eup %6567  ;;  %v5564_v26 = vcombine.high %v5556_v4, %v5556_v4  ;;  %12153 = vst [vmem:[#allocation145_spill] sm:$0xff] %v10984_v32  ;;  %v11063_v43 = vrot.slane %v5425_v54, %v11876_v6 }
 0x2f8   : > { %v10875_v48 = vpop.permute.xlu0 %5494  ;;  %v10889_v41 = vpop.eup %6569 }
 0x2f9   : > { %v5024_v56 = vadd.f32 %v10867_v45, %v5023_v55  ;;  %v10907_v5 = vpop.eup %6571  ;;  %v10949_v4 = vrot.slane %v5564_v26, %v12136_v44  ;;  %12159 = vst [vmem:[#allocation140_spill] sm:$0xff] %v11063_v43 }
 0x2fb   : > { %v5025_v52 = vadd.f32 %v10881_v1, %v5024_v56  ;;  %v10887_v62 = vpop.permute.xlu1 %5509  ;;  %v10922_v56 = vpop.eup %6573  ;;  %12148 = vst [vmem:[#allocation68_spill] sm:$0xff] %v10949_v4 }
 0x2fc   : > { %v10900_v8 = vpop.permute.xlu0 %5504 }
 0x2fd   : > { %v5026_v46 = vadd.f32 %v10889_v41, %v5025_v52  ;;  %v10930_v52 = vrot.slane %v5053_v63, %v12136_v44  ;;  %v5086_v63 = vcombine.high %v10913_v18, %v10913_v18  ;;  %v5087_v18 = vcombine.high %v10942_v7, %v10942_v7 }
 0x2ff   : > { %v5027_v39 = vadd.f32 %v10907_v5, %v5026_v46  ;;  %v10920_v60 = vpop.permute.xlu1 %5519  ;;  %12145 = vst [vmem:[#allocation114_spill] sm:$0xff] %v10930_v52  ;;  %v10938_v46 = vrot.slane %v5256_v57, %v11876_v6  ;;  %v10955_v57 = vrot.slane %v5386_v51, %v12136_v44  ;;  %v5085_v16 = vcombine.high %v10930_v52, %v10930_v52 }
 0x300   : > { %v10935_v55 = vpop.permute.xlu0 %5514  ;;  %v10987_v26 = vrot.slane %v5086_v63, %v11876_v6  ;;  %v11006_v52 = vrot.slane %v5594_v19, %v11876_v6  ;;  %v5427_v19 = vcombine.high %v10981_v29, %v10981_v29 }
 0x301   : > { %v5028_v40 = vadd.f32 %v10922_v56, %v5027_v39  ;;  %12150 = vst [vmem:[#allocation70_spill] sm:$0xff] %v10955_v57  ;;  %v10958_v39 = vrot.slane %v5394_v61, %v12136_v44  ;;  %v5596_v61 = vcombine.high %v10949_v4, %v10949_v4 }
 0x302   : > { %12154 = vst [vmem:[#allocation13_spill] sm:$0xff] %v10987_v26  ;;  %12155 = vst [vmem:[#allocation42_spill] sm:$0xff] %v11006_v52 }
 0x303   : > { %6575 = vrcp.f32 %v5028_v40  ;;  %v10960_v27 = vpop.permute.xlu1 %5529  ;;  %v10975_v40 = vrot.slane %v5565_v13, %v12136_v44  ;;  %v5595_v13 = vcombine.high %v10952_v36, %v10952_v36  ;;  %v5424_v44 = vcombine.high %v10955_v57, %v10955_v57 }
 0x304   : > { %v10970_v51 = vpop.permute.xlu0 %5524  ;;  %v5426_v53 = vcombine.high %v10958_v39, %v10958_v39  ;;  %v11023_v52 = vrot.slane %v5596_v61, %v11876_v6  ;;  %v12158_v36 = vcombine.high %v10873_v59, %v10873_v59  ;;  %v11057_v61 = vrot.slane %v5087_v18, %v11876_v6 }
 0x305   : > { %v5597_v63 = vcombine.high %v10975_v40, %v10975_v40  ;;  %v11032_v7 = vrot.slane %v5424_v44, %v11876_v6  ;;  %v11048_v44 = vrot.slane %v5257_v25, %v11876_v6  ;;  %v11054_v4 = vrot.slane %v5595_v13, %v11876_v6 }
 0x306   : > { %12156 = vst [vmem:[#allocation87_spill] sm:$0xff] %v11023_v52  ;;  %v11035_v23 = vrot.slane %v5426_v53, %v11876_v6  ;;  %v11045_v57 = vrot.slane %v12158_v36, %v11876_v6  ;;  %v11051_v53 = vrot.slane %v5085_v16, %v11876_v6  ;;  %v11066_v36 = vrot.slane %v5427_v19, %v11876_v6 }
 0x307   : > { %v11001_v22 = vpop.permute.xlu1 %5669  ;;  %v11060_v29 = vrot.slane %v5597_v63, %v11876_v6 }
 0x308   : > { %v11010_v32 = vpop.permute.xlu0 %5664  ;;  %12157 = vst [vmem:[#allocation58_spill] sm:$0xff] %v11035_v23  ;;  %12160 = vst [vmem:[#allocation139_spill] sm:$0xff] %v11066_v36 }
 0x30b   : > { %v5680_v52 = vpop.permute.xlu1 %5679 }
 0x30c   : > { %v5675_v26 = vpop.permute.xlu0 %5674 }
 0x30d   : > { %v6576_v0 = vpop.eup %6575 }
 0x30e   : > { %v11069_v25 = vmul.f32 %v6576_v0, %v10907_v5  ;;  %v11072_v16 = vmul.f32 %v6576_v0, %v10850_v50  ;;  %v11075_v13 = vmul.f32 %v6576_v0, %v10846_v47  ;;  %v11078_v18 = vmul.f32 %v6576_v0, %v10867_v45 }
 0x30f   : > { %v11081_v63 = vmul.f32 %v6576_v0, %v10861_v30  ;;  %v11084_v54 = vmul.f32 %v6576_v0, %v10889_v41  ;;  %v11087_v19 = vmul.f32 %v6576_v0, %v10881_v1  ;;  %v11090_v5 = vmul.f32 %v6576_v0, %v10922_v56  ;;  %v5690_v50 = vpop.permute.xlu1 %5689 }
 0x310   : > { %v5193_v47 = vmul.f32 %v10807_v42, %v11072_v16  ;;  %v5192_v45 = vmul.f32 %v10812_v15, %v11075_v13  ;;  %v5195_v30 = vmul.f32 %v10817_v28, %v11078_v18  ;;  %v5198_v41 = vmul.f32 %v10827_v34, %v11069_v25  ;;  %v5685_v36 = vpop.permute.xlu0 %5684 }
 0x311   : > { %v5194_v1 = vmul.f32 %v10819_v38, %v11081_v63  ;;  %v5197_v0 = vmul.f32 %v10821_v33, %v11084_v54  ;;  %v5196_v56 = vmul.f32 %v10823_v35, %v11087_v19  ;;  %v11108_v42 = vmul.f32 %v10825_v2, %v11090_v5 }
 0x312   : > { %v5200_v15 = vadd.f32 %v5193_v47, %v5192_v45  ;;  %v5363_v28 = vmul.f32 %v10829_v11, %v11072_v16  ;;  %v5362_v34 = vmul.f32 %v10831_v14, %v11075_v13  ;;  %v5365_v38 = vmul.f32 %v10833_v3, %v11078_v18 }
 0x313   : > { %v5364_v33 = vmul.f32 %v10837_v20, %v11081_v63  ;;  %v5367_v35 = vmul.f32 %v10839_v49, %v11084_v54  ;;  %v5366_v2 = vmul.f32 %v10841_v24, %v11087_v19  ;;  %v11124_v47 = vmul.f32 %v10848_v10, %v11090_v5  ;;  %v5700_v11 = vpop.permute.xlu1 %5699 }
 0x314   : > { %v5201_v45 = vadd.f32 %v5200_v15, %v5194_v1  ;;  %v5370_v43 = vadd.f32 %v5363_v28, %v5362_v34  ;;  %v5368_v14 = vmul.f32 %v10853_v9, %v11069_v25  ;;  %v5533_v3 = vmul.f32 %v10865_v31, %v11072_v16  ;;  %v5695_v20 = vpop.permute.xlu0 %5694 }
 0x315   : > { %v5532_v49 = vmul.f32 %v10875_v48, %v11075_v13  ;;  %v5535_v24 = vmul.f32 %v10887_v62, %v11078_v18  ;;  %v5534_v10 = vmul.f32 %v10900_v8, %v11081_v63  ;;  %v5537_v1 = vmul.f32 %v10920_v60, %v11084_v54 }
 0x316   : > { %v5202_v15 = vadd.f32 %v5201_v45, %v5195_v30  ;;  %v5371_v28 = vadd.f32 %v5370_v43, %v5364_v33  ;;  %v5536_v9 = vmul.f32 %v10935_v55, %v11087_v19  ;;  %v11142_v31 = vmul.f32 %v10960_v27, %v11090_v5 }
 0x317   : > { %v5540_v34 = vadd.f32 %v5533_v3, %v5532_v49  ;;  %v5538_v48 = vmul.f32 %v10970_v51, %v11069_v25  ;;  %v5703_v62 = vmul.f32 %v11001_v22, %v11072_v16  ;;  %v5702_v8 = vmul.f32 %v11010_v32, %v11075_v13  ;;  %v5820_v60 = vpop.permute.xlu1 %5819 }
 0x318   : > { %12161 = vst [vmem:[#allocation44_spill] sm:$0xff] %v11142_v31  ;;  %v5203_v30 = vadd.f32 %v5202_v15, %v5196_v56  ;;  %v5372_v43 = vadd.f32 %v5371_v28, %v5365_v38  ;;  %v5705_v33 = vmul.f32 %v5680_v52, %v11078_v18  ;;  %v5704_v55 = vmul.f32 %v5675_v26, %v11081_v63  ;;  %v5816_v45 = vpop.permute.xlu0 %5815  ;;  %v12162_v52 = vld [vmem:[#allocation30_spill] sm:$0xff]  ;;  %v12163_v26 = vld [vmem:[#allocation56_spill] sm:$0xff] }
 0x319   : > { %v5541_v27 = vadd.f32 %v5540_v34, %v5534_v10  ;;  %v5710_v31 = vadd.f32 %v5703_v62, %v5702_v8  ;;  %v5707_v3 = vmul.f32 %v5690_v50, %v11084_v54  ;;  %v5706_v51 = vmul.f32 %v5685_v36, %v11087_v19  ;;  %v12164_v50 = vld [vmem:[#allocation9_spill] sm:$0xff] }
 0x31a   : > { %v5204_v49 = vadd.f32 %v5203_v30, %v5197_v0  ;;  %v5373_v22 = vadd.f32 %v5372_v43, %v5366_v2  ;;  %v11155_v23 = vmul.f32 %v5700_v11, %v11090_v5  ;;  %v5708_v32 = vmul.f32 %v5695_v20, %v11069_v25 }
 0x31b   : > { %v5542_v56 = vadd.f32 %v5541_v27, %v5535_v24  ;;  %v5711_v38 = vadd.f32 %v5710_v31, %v5704_v55  ;;  %v5879_v15 = vadd.f32 %v5820_v60, %v12162_v52  ;;  %v5878_v28 = vadd.f32 %v5816_v45, %v12163_v26  ;;  %v5828_v10 = vpop.permute.xlu1 %5827 }
 0x31c   : > { %v5205_v34 = vadd.f32 %v5204_v49, %v5198_v41  ;;  %v5374_v62 = vadd.f32 %v5373_v22, %v5367_v35  ;;  %v5881_v8 = vadd.f32 %v5828_v10, %v12164_v50  ;;  %v5824_v36 = vpop.permute.xlu0 %5823  ;;  %v12165_v0 = vrot.slane %v10870_v58, %v11876_v6  ;;  %v12166_v41 = vld [vmem:[#allocation48_spill] sm:$0xff]  ;;  %v12177_v50 = vld [vmem:[#allocation114_spill] sm:$0xff] }
 0x31d   : > { %v5543_v11 = vadd.f32 %v5542_v56, %v5536_v9  ;;  %v5712_v30 = vadd.f32 %v5711_v38, %v5705_v33  ;;  %5895 = vst [vmem:[%s11166_s23 + $0x8] sm:$0xff] %v5879_v15  ;;  %5894 = vst [vmem:[%s11166_s23] sm:$0xff] %v5878_v28  ;;  %v5880_v35 = vadd.f32 %v5824_v36, %v12166_v41  ;;  %v12170_v56 = vld [vmem:[#allocation90_spill] sm:$0xff]  ;;  %v12171_v38 = vld [vmem:[#allocation104_spill] sm:$0xff] }
 0x31e   : > { %v5298_v2 = vmul.f32 %v12165_v0, %v11075_v13  ;;  %v12167_v20 = vrot.slane %v10878_v12, %v11876_v6  ;;  %v5375_v31 = vadd.f32 %v5374_v62, %v5368_v14  ;;  %5897 = vst [vmem:[%s11166_s23 + $0x18] sm:$0xff] %v5881_v8  ;;  %v5300_v58 = vmul.f32 %v10925_v21, %v11081_v63  ;;  %v12173_v15 = vld [vmem:[#allocation115_spill] sm:$0xff]  ;;  %v12179_v0 = vld [vmem:[#allocation17_spill] sm:$0xff] }
 0x31f   : > { %v5301_v9 = vmul.f32 %v10938_v46, %v11078_v18  ;;  %v12168_v60 = vrot.slane %v10873_v59, %v11876_v6  ;;  %v5544_v33 = vadd.f32 %v5543_v11, %v5537_v1  ;;  %v5713_v55 = vadd.f32 %v5712_v30, %v5706_v51  ;;  %5896 = vst [vmem:[%s11166_s23 + $0x10] sm:$0xff] %v5880_v35  ;;  %v5836_v45 = vpop.permute.xlu1 %5835  ;;  %v12181_v41 = vld [vmem:[#allocation101_spill] sm:$0xff] }
 0x320   : > { %v5299_v24 = vmul.f32 %v12167_v20, %v11072_v16  ;;  %v12169_v12 = vrot.slane %v10892_v37, %v11876_v6  ;;  %v5304_v21 = vmul.f32 %v11045_v57, %v11069_v25  ;;  %v5883_v46 = vadd.f32 %v5836_v45, %v10568_v17  ;;  %v5832_v27 = vpop.permute.xlu0 %5831 }
 0x321   : > { %v5302_v43 = vmul.f32 %v12168_v60, %v11087_v19  ;;  %v5305_v59 = vmul.f32 %v11048_v44, %v11090_v5  ;;  %v11195_v1 = vadd.f32 %v5375_v31, %v11124_v47  ;;  %v11197_v51 = vadd.f32 %v5544_v33, %v5538_v48  ;;  %v12175_v47 = vld [vmem:[#allocation145_spill] sm:$0xff] }
 0x322   : > { %v5303_v14 = vmul.f32 %v12169_v12, %v11084_v54  ;;  %v5306_v49 = vadd.f32 %v5299_v24, %v5298_v2  ;;  %v5714_v22 = vadd.f32 %v5713_v55, %v5707_v3  ;;  %v5882_v37 = vadd.f32 %v5832_v27, %v12170_v56  ;;  %5899 = vst [vmem:[%s11166_s23 + $0x28] sm:$0xff] %v5883_v46  ;;  %v12176_v48 = vld [vmem:[#allocation13_spill] sm:$0xff]  ;;  %v12183_v55 = vld [vmem:[#allocation24_spill] sm:$0xff]  ;;  %v12188_v56 = vld [vmem:[#allocation87_spill] sm:$0xff] }
 0x323   : > { %v12172_v57 = vrot.slane %v12171_v38, %v11876_v6  ;;  %v12174_v44 = vrot.slane %v12173_v15, %v11876_v6  ;;  %v5130_v28 = vmul.f32 %v12175_v47, %v11081_v63  ;;  %v5131_v3 = vmul.f32 %v12176_v48, %v11078_v18  ;;  %v5844_v62 = vpop.permute.xlu1 %5843  ;;  %v12185_v46 = vld [vmem:[#allocation68_spill] sm:$0xff] }
 0x324   : > { %v5307_v17 = vadd.f32 %v5306_v49, %v5300_v58  ;;  %v5715_v10 = vadd.f32 %v5714_v22, %v5708_v32  ;;  %5898 = vst [vmem:[%s11166_s23 + $0x20] sm:$0xff] %v5882_v37  ;;  %v12178_v8 = vrot.slane %v12177_v50, %v11876_v6  ;;  %v12180_v2 = vrot.slane %v12179_v0, %v11876_v6  ;;  %v5840_v20 = vpop.permute.xlu0 %5839  ;;  %v12182_v58 = vld [vmem:[#allocation103_spill] sm:$0xff] }
 0x325   : > { %v5128_v52 = vmul.f32 %v12172_v57, %v11075_v13  ;;  %v5129_v26 = vmul.f32 %v12174_v44, %v11072_v16  ;;  %v5134_v30 = vmul.f32 %v11051_v53, %v11069_v25  ;;  %v5885_v35 = vadd.f32 %v5844_v62, %v12181_v41  ;;  %v12192_v44 = vld [vmem:[#allocation53_spill] sm:$0xff]  ;;  %v12193_v50 = vld [vmem:[#allocation59_spill] sm:$0xff] }
 0x326   : > { %v5132_v36 = vmul.f32 %v12178_v8, %v11087_v19  ;;  %v5133_v11 = vmul.f32 %v12180_v2, %v11084_v54  ;;  %v5308_v32 = vadd.f32 %v5307_v17, %v5301_v9  ;;  %v5135_v24 = vmul.f32 %v11057_v61, %v11090_v5  ;;  %v12187_v61 = vld [vmem:[#allocation42_spill] sm:$0xff] }
 0x327   : > { %v5136_v31 = vadd.f32 %v5129_v26, %v5128_v52  ;;  %v5884_v60 = vadd.f32 %v5840_v20, %v12182_v58  ;;  %v5206_v33 = vadd.f32 %v5205_v34, %v11108_v42  ;;  %v12184_v45 = vrot.slane %v12183_v55, %v11876_v6  ;;  %5901 = vst [vmem:[%s11166_s23 + $0x38] sm:$0xff] %v5885_v35  ;;  %v5852_v42 = vpop.permute.xlu1 %5851  ;;  %v12189_v34 = vld [vmem:[#allocation18_spill] sm:$0xff] }
 0x328   : > { %v12186_v53 = vrot.slane %v12185_v46, %v11876_v6  ;;  %v5309_v9 = vadd.f32 %v5308_v32, %v5302_v43  ;;  %v5640_v22 = vmul.f32 %v12187_v61, %v11081_v63  ;;  %v5641_v37 = vmul.f32 %v12188_v56, %v11078_v18  ;;  %v5848_v47 = vpop.permute.xlu0 %5847  ;;  %v12204_v46 = vld [vmem:[#allocation81_spill] sm:$0xff] }
 0x329   : > { %v5638_v12 = vmul.f32 %v12184_v45, %v11075_v13  ;;  %v5137_v49 = vadd.f32 %v5136_v31, %v5130_v28  ;;  %5900 = vst [vmem:[%s11166_s23 + $0x30] sm:$0xff] %v5884_v60  ;;  %v12190_v38 = vrot.slane %v12189_v34, %v11876_v6  ;;  %v12191_v52 = vrot.slane %v10975_v40, %v11876_v6  ;;  %v12194_v40 = vld [vmem:[#allocation70_spill] sm:$0xff] }
 0x32a   : > { %v5639_v27 = vmul.f32 %v12186_v53, %v11072_v16  ;;  %v5644_v17 = vmul.f32 %v11054_v4, %v11069_v25  ;;  %v5645_v15 = vmul.f32 %v11060_v29, %v11090_v5  ;;  %v5887_v26 = vadd.f32 %v5852_v42, %v12192_v44 }
 0x32b   : > { %v5642_v57 = vmul.f32 %v12190_v38, %v11087_v19  ;;  %v5643_v43 = vmul.f32 %v12191_v52, %v11084_v54  ;;  %v5310_v28 = vadd.f32 %v5309_v9, %v5303_v14  ;;  %v5138_v48 = vadd.f32 %v5137_v49, %v5131_v3  ;;  %v12206_v49 = vld [vmem:[#allocation44_spill] sm:$0xff] }
 0x32c   : > { %v5646_v62 = vadd.f32 %v5639_v27, %v5638_v12  ;;  %v5886_v8 = vadd.f32 %v5848_v47, %v12193_v50  ;;  %v5716_v0 = vadd.f32 %v5715_v10, %v11155_v23  ;;  %v12195_v2 = vrot.slane %v12194_v40, %v11876_v6  ;;  %5903 = vst [vmem:[%s11166_s23 + $0x48] sm:$0xff] %v5887_v26  ;;  %v5860_v23 = vpop.permute.xlu1 %5859  ;;  %v12197_v10 = vld [vmem:[#allocation58_spill] sm:$0xff]  ;;  %v5856_v55 = vpop.permute.xlu0 %5855  ;;  %v12205_v27 = vld [vmem:[#allocation139_spill] sm:$0xff] }
 0x32d   : > { %v12196_v4 = vrot.slane %v10958_v39, %v11876_v6  ;;  %v5311_v35 = vadd.f32 %v5310_v28, %v5304_v21  ;;  %v5139_v20 = vadd.f32 %v5138_v48, %v5132_v36  ;;  %v5470_v3 = vmul.f32 %v11032_v7, %v11081_v63  ;;  %v12200_v39 = vld [vmem:[#allocation72_spill] sm:$0xff]  ;;  %v12203_v63 = vld [vmem:[#allocation74_spill] sm:$0xff] }
 0x32e   : > { %v5468_v41 = vmul.f32 %v12195_v2, %v11075_v13  ;;  %v5647_v14 = vadd.f32 %v5646_v62, %v5640_v22  ;;  %5902 = vst [vmem:[%s11166_s23 + $0x40] sm:$0xff] %v5886_v8  ;;  %v5471_v32 = vmul.f32 %v12197_v10, %v11078_v18  ;;  %v12198_v13 = vld [vmem:[#allocation19_spill] sm:$0xff]  ;;  %v12202_v36 = vld [vmem:[#allocation140_spill] sm:$0xff]  ;;  %v5889_v60 = vadd.f32 %v5860_v23, %v12203_v63 }
 0x32f   : > { %v5469_v29 = vmul.f32 %v12196_v4, %v11072_v16  ;;  %v12199_v31 = vrot.slane %v12198_v13, %v11876_v6  ;;  %v12201_v16 = vrot.slane %v12200_v39, %v11876_v6  ;;  %v5474_v7 = vmul.f32 %v12202_v36, %v11069_v25 }
 0x330   : > { %v5312_v45 = vadd.f32 %v5311_v35, %v5305_v59  ;;  %v5140_v12 = vadd.f32 %v5139_v20, %v5133_v11  ;;  %v5648_v18 = vadd.f32 %v5647_v14, %v5641_v37  ;;  %v5888_v53 = vadd.f32 %v5856_v55, %v12204_v46  ;;  %5905 = vst [vmem:[%s11166_s23 + $0x58] sm:$0xff] %v5889_v60  ;;  %v5868_v59 = vpop.permute.xlu1 %5867  ;;  %v5864_v42 = vpop.permute.xlu0 %5863 }
 0x331   : > { %v5472_v58 = vmul.f32 %v12199_v31, %v11087_v19  ;;  %v5473_v21 = vmul.f32 %v12201_v16, %v11084_v54  ;;  %v5475_v19 = vmul.f32 %v12205_v27, %v11090_v5  ;;  %v5476_v9 = vadd.f32 %v5469_v29, %v5468_v41 }
 0x332   : > { %v5546_v6 = vadd.f32 %v11197_v51, %v12206_v49  ;;  %v5377_v54 = vadd.f32 %v11195_v1, %v5312_v45  ;;  %v5141_v25 = vadd.f32 %v5140_v12, %v5134_v30  ;;  %v5649_v61 = vadd.f32 %v5648_v18, %v5642_v57  ;;  %5904 = vst [vmem:[%s11166_s23 + $0x50] sm:$0xff] %v5888_v53 }
 0x333   : > { %v5477_v11 = vadd.f32 %v5476_v9, %v5470_v3 }
 0x334   : > { %v5891_v22 = vadd.f32 %v5868_v59, %v5377_v54  ;;  %v5142_v56 = vadd.f32 %v5141_v25, %v5135_v24  ;;  %v5650_v37 = vadd.f32 %v5649_v61, %v5643_v43  ;;  %v5876_v30 = vpop.permute.xlu1 %5875  ;;  %v5872_v47 = vpop.permute.xlu0 %5871 }
 0x335   : > { %v5478_v5 = vadd.f32 %v5477_v11, %v5471_v32 }
 0x336   : > { %5907 = vst [vmem:[%s11166_s23 + $0x68] sm:$0xff] %v5891_v22  ;;  %v5207_v34 = vadd.f32 %v5206_v33, %v5142_v56  ;;  %v5651_v51 = vadd.f32 %v5650_v37, %v5644_v17 }
 0x337   : > { %v5479_v38 = vadd.f32 %v5478_v5, %v5472_v58 }
 0x338   : > { %v5890_v52 = vadd.f32 %v5864_v42, %v5207_v34  ;;  %v5652_v1 = vadd.f32 %v5651_v51, %v5645_v15 }
 0x339   : > { %v5480_v57 = vadd.f32 %v5479_v38, %v5473_v21 }
 0x33a   : > { %5906 = vst [vmem:[%s11166_s23 + $0x60] sm:$0xff] %v5890_v52  ;;  %v5717_v44 = vadd.f32 %v5716_v0, %v5652_v1 }
 0x33b   : > { %v5481_v24 = vadd.f32 %v5480_v57, %v5474_v7 }
 0x33c   : > { %v5893_v26 = vadd.f32 %v5876_v30, %v5717_v44 }
 0x33d   : > { %v5482_v43 = vadd.f32 %v5481_v24, %v5475_v19 }
 0x33e   : > { %5909 = vst [vmem:[%s11166_s23 + $0x78] sm:$0xff] %v5893_v26 }
 0x33f   : > { %v5547_v28 = vadd.f32 %v5546_v6, %v5482_v43 }
 0x341   : > { %v5892_v33 = vadd.f32 %v5872_v47, %v5547_v28 }
 0x343   : > { %5908 = vst [vmem:[%s11166_s23 + $0x70] sm:$0xff] %v5892_v33 }
 0x344   : > { %6605 = shalt.err (!%p6602_p2)
}
 0x345   : > { %s6606_s19 = scalar_lea.hbm %s11299_s26, 2048  ;;  %s6610_s23 = scalar_lea.hbm %s11356_s8, 4096 }
 0x346   : > { %p6607_p3 = scmp.ne.s32.totalorder %s11299_s26, %s6606_s19  ;;  %p6611_p8 = scmp.lt.u32.totalorder %s11299_s26, %s11356_s8 }
 0x347   : > { %p6612_p9 = scmp.lt.u32.totalorder %s6610_s23, %s6606_s19  ;;  %p6614_p11 = scmp.lt.u32.totalorder %s6606_s19, %s11299_s26 }
 0x348   : > { %p6608_p4 = pnand %p6607_p3, %p12207_p10 }
 0x349   : > { %p6613_p5 = por %p6612_p9, %p6611_p8 }
 0x34a   : > { %p6609_p7 = pneg %p6608_p4 }
 0x34b   : > { %p6615_p12 = por %p6614_p11, %p6613_p5 }
 0x34d   : > { %p6616_p13 = pnand %p6615_p12, %p6609_p7 }
 0x34f   : > { %6619 = shalt.err (!%p6616_p13)
}
 0x350   : > { %s6664_s25 = smov 128   ;;  %s6665_s9 = smov 256  }
 0x351   : > { %s6666_s10 = smov 8  }
 0x352   : > { %6452 = dma.vmem_to_hbm [thread:$0]  (%p12207_p10), %s11301_s18, 2048, %s11299_s26, %s11306_s21, %s6664_s25, %s6665_s9, %s6666_s10  }
 0x353 PF: > { %s5938_s13 = sand.u32 1, %s6646_s27   ;;  %p12208_p0 = scmp.ne.s32.totalorder %s11490_s17, 0 }
 0x354   : > { %s5939_s12 = scalar_lea.sflag [#allocation4], %s5938_s13 }
 0x355   : > { %p6459_p1 = pnand %p6006_p6, %p12208_p0 }
 0x357   : > { %6641 = dma.done.wait (!%p6459_p1), %s5939_s12, 2048  }
 0x358   : > { %6643 = vsyncadd (!%p6459_p1), %s5939_s12, 4294965248  ;;  %p19_p2 = scmp.ge.s32.totalorder %s6737_s11, 4   ;;  %s12209_s27 = smov %s6650_s28 }
 0x359   : > { %s12210_s28 = smov %s6654_s29  ;;  %s12211_s29 = smov %s6749_s14 }
 0x35a   : > { %s12212_s30 = smov %s6737_s11  ;;  %21 = sbr.rel (!%p19_p2) target bundleno = 4 (0x4), region = 164 }
 0x361   :  { %5944 = vsyncpa [#allocation4], 1 }
 0x362   :  { %5946 = vsyncpa [#allocation4 + $0x1], 1 }
 0x363   :  { %5947 = vsyncpa [#allocation5], 1 }
 0x364   :  { %5949 = vsyncpa [#allocation5 + $0x1], 1 }

</bundles_post_ra>
